<compile_context>
chip_gen: v7x
topology: tpu7x:2x2x1
jax: 0.10.0
libtpu: 0.0.40
codegen_flags: <defaults>
</compile_context>

<pallas_src>
import functools

import numpy as np
import jax
import jax.numpy as jnp
from jax import lax
from jax.experimental import pallas as pl
from jax.experimental.pallas import tpu as pltpu

PAD = 3                      # max half-window (covers 3x3, 5x5, 7x7)
KSIZES = (3, 5, 7)
NTAPS = sum(k * k for k in KSIZES)   # 83


def _lfem_kernel(xflat_ref, wm_ref, wc_ref, beff_ref, out_ref, dw_ref,
                 *, H, W, C, OFF):
    """One batch element.

    xflat_ref : (1, C, L)      bf16  flat zero-padded activations
    wm_ref    : (NTAPS, C, HW) f32   per-tap depthwise weights * W-edge mask
    wc_ref    : (COUT, 3C)     f32   folded pointwise+concat+1x1 matrix
    beff_ref  : (COUT, 1)      f32   fused bias
    out_ref   : (1, COUT, HW)  f32   NCHW output (flattened spatially)
    dw_ref    : (3C, HW)       f32   VMEM scratch holding stacked depthwise out
    """
    HW = H * W
    t = 0
    for g, ks in enumerate(KSIZES):
        half = ks // 2
        dw = None
        for dy in range(ks):
            for dx in range(ks):
                # shifted window: pure static lane-offset slice, no reshape
                start = OFF + (dy - half) * W + (dx - half)
                win = xflat_ref[0, :, start:start + HW].astype(jnp.float32)
                term = win * wm_ref[t]                 # (C, HW), mask folded in
                dw = term if dw is None else dw + term
                t += 1
        dw_ref[g * C:(g + 1) * C, :] = dw              # stack branch into 3C rows

    # single fused matmul: (COUT, 3C) @ (3C, HW) -> (COUT, HW) on the MXU
    acc = jnp.dot(wc_ref[...], dw_ref[...], preferred_element_type=jnp.float32)
    out_ref[0] = (acc + beff_ref[...]).astype(out_ref.dtype)


def local_feature_extraction_2d(x_nchw, params):
    (w3, b3, w5, b5, w7, b7,
     p3, pb3, p5, pb5, p7, pb7, wf, bff) = params
    B, C, H, W = x_nchw.shape
    COUT = wf.shape[0]
    HW = H * W
    f32 = jnp.float32

    # flat-stream geometry: pad H by PAD rows (= PAD*W flat zeros) plus PAD
    # extra lanes on each side so every tap offset is a non-negative slice.
    OFF = PAD * W + PAD
    L = ((HW + 2 * OFF + 127) // 128) * 128

    # ---- fold pointwise convs + concat + final 1x1 (exact; module is linear) --
    Wf = wf.reshape(COUT, 3 * C).astype(f32)
    Ps = [p.reshape(C, C).astype(f32) for p in (p3, p5, p7)]
    dbs = [b.astype(f32) for b in (b3, b5, b7)]
    pbs = [b.astype(f32) for b in (pb3, pb5, pb7)]
    wc_parts = []
    beff = bff.astype(f32)
    for g, P in enumerate(Ps):
        Wg = Wf[:, g * C:(g + 1) * C]
        wc_parts.append(Wg @ P)                               # (COUT, C)
        beff = beff + Wg @ (P @ dbs[g] + pbs[g])
    wc = jnp.concatenate(wc_parts, axis=1)                    # (COUT, 3C)
    beff = beff.reshape(COUT, 1)

    # ---- per-tap depthwise weight slabs with the W-boundary mask folded in ---
    # WM[t, c, y*W + x] = w_ks[c, dy, dx] * [0 <= x + dx - ks//2 < W]
    # (row/H boundary is handled by the zero padding inside xflat)
    xs = np.arange(W)
    rows = []
    for ks, w in zip(KSIZES, (w3, w5, w7)):
        half = ks // 2
        wk = w.reshape(C, ks, ks).astype(f32)
        for dy in range(ks):
            for dx in range(ks):
                valid = jnp.asarray(((xs + dx - half >= 0) &
                                     (xs + dx - half < W)).astype(np.float32))
                slab = wk[:, dy, dx][:, None] * valid[None, :]      # (C, W)
                rows.append(jnp.tile(slab, (1, H)))                 # (C, HW)
    wm = jnp.stack(rows, axis=0)                                    # (NTAPS, C, HW)

    # ---- single bf16 input stream: NCHW flattened + symmetric zero pad -------
    xflat = jnp.pad(x_nchw.reshape(B, C, HW).astype(jnp.bfloat16),
                    ((0, 0), (0, 0), (OFF, L - OFF - HW)))

    kernel = functools.partial(_lfem_kernel, H=H, W=W, C=C, OFF=OFF)

    def _full(shape):
        return pl.BlockSpec(shape, lambda b: (0,) * len(shape))

    flops = 2 * B * HW * (NTAPS * C + 3 * C * COUT)
    bytes_accessed = (B * (C * L * 2 + COUT * HW * 4)
                      + NTAPS * C * HW * 4 + COUT * 3 * C * 4 + COUT * 4)

    out_flat = pl.pallas_call(
        kernel,
        grid_spec=pltpu.PrefetchScalarGridSpec(
            num_scalar_prefetch=0,
            grid=(B,),
            in_specs=[
                pl.BlockSpec((1, C, L), lambda b: (b, 0, 0)),       # activations
                _full((NTAPS, C, HW)),                              # tap slabs
                _full((COUT, 3 * C)),                               # fused matmul W
                _full((COUT, 1)),                                   # fused bias
            ],
            out_specs=pl.BlockSpec((1, COUT, HW), lambda b: (b, 0, 0)),
            scratch_shapes=[pltpu.VMEM((3 * C, HW), f32)],
        ),
        out_shape=jax.ShapeDtypeStruct((B, COUT, HW), jnp.float32),
        compiler_params=pltpu.CompilerParams(
            dimension_semantics=("parallel",),
            vmem_limit_bytes=32 * 1024 * 1024),
        cost_estimate=pl.CostEstimate(flops=flops, transcendentals=0,
                                      bytes_accessed=bytes_accessed),
    )(xflat, wm, wc, beff)

    # contiguous reshape only (no transpose pass): kernel already emits NCHW
    return out_flat.reshape(B, COUT, H, W)


def _reference(x, params):
    """Pure-JAX faithful reference of LocalFeatureExtractionModule2D.forward."""
    (w3, b3, w5, b5, w7, b7,
     p3, pb3, p5, pb5, p7, pb7, wf, bff) = params
    dn = ('NCHW', 'OIHW', 'NCHW')
    C = x.shape[1]

    def conv(t, w, b, pad, groups=1):
        y = lax.conv_general_dilated(t, w, (1, 1), ((pad, pad), (pad, pad)),
                                     dimension_numbers=dn,
                                     feature_group_count=groups)
        return y + b[None, :, None, None]

    x3 = conv(conv(x, w3, b3, 1, C), p3, pb3, 0)
    x5 = conv(conv(x, w5, b5, 2, C), p5, pb5, 0)
    x7 = conv(conv(x, w7, b7, 3, C), p7, pb7, 0)
    xf = jnp.concatenate([x3, x5, x7], axis=1)
    return conv(xf, wf, bff, 0)


if __name__ == "__main__":
    key = jax.random.PRNGKey(0)
    B, C, H, W = 2, 8, 16, 16
    COUT = 8

    ks_ = jax.random.split(key, 15)
    x = jax.random.normal(ks_[0], (B, C, H, W), jnp.float32)

    # depthwise convs (groups=C): weight (C, 1, k, k), bias (C,)
    w3 = 0.15 * jax.random.normal(ks_[1], (C, 1, 3, 3), jnp.float32)
    b3 = 0.10 * jax.random.normal(ks_[2], (C,), jnp.float32)
    w5 = 0.08 * jax.random.normal(ks_[3], (C, 1, 5, 5), jnp.float32)
    b5 = 0.10 * jax.random.normal(ks_[4], (C,), jnp.float32)
    w7 = 0.06 * jax.random.normal(ks_[5], (C, 1, 7, 7), jnp.float32)
    b7 = 0.10 * jax.random.normal(ks_[6], (C,), jnp.float32)

    # pointwise 1x1 convs: weight (C, C, 1, 1), bias (C,)
    p3 = 0.20 * jax.random.normal(ks_[7], (C, C, 1, 1), jnp.float32)
    pb3 = 0.10 * jax.random.normal(ks_[8], (C,), jnp.float32)
    p5 = 0.20 * jax.random.normal(ks_[9], (C, C, 1, 1), jnp.float32)
    pb5 = 0.10 * jax.random.normal(ks_[10], (C,), jnp.float32)
    p7 = 0.20 * jax.random.normal(ks_[11], (C, C, 1, 1), jnp.float32)
    pb7 = 0.10 * jax.random.normal(ks_[12], (C,), jnp.float32)

    # final 1x1: weight (COUT, 3C, 1, 1), bias (COUT,)
    wf = 0.15 * jax.random.normal(ks_[13], (COUT, 3 * C, 1, 1), jnp.float32)
    bff = 0.10 * jax.random.normal(ks_[14], (COUT,), jnp.float32)

    params = (w3, b3, w5, b5, w7, b7,
              p3, pb3, p5, pb5, p7, pb7, wf, bff)

    out = jax.jit(local_feature_extraction_2d)(x, params)
    out = jax.block_until_ready(out)

    ref = _reference(x, params)
    assert out.shape == ref.shape == (B, COUT, H, W)
    err = float(jnp.max(jnp.abs(out - ref)))
    if not err < 2e-2:
        raise AssertionError(f"max abs error too large: {err}")
    print("KERNEL_OK")
</pallas_src>

<mosaic_0001>
module attributes {stable_mosaic.version = 11 : i64} {
  func.func @_lfem_kernel(%arg0: i32, %arg1: memref<1x8x384xbf16, #tpu.memory_space<vmem>>, %arg2: memref<83x8x256xf32, #tpu.memory_space<vmem>>, %arg3: memref<8x24xf32, #tpu.memory_space<vmem>>, %arg4: memref<8x1xf32, #tpu.memory_space<vmem>>, %arg5: memref<1x8x256xf32, #tpu.memory_space<vmem>>, %arg6: memref<24x256xf32, #tpu.memory_space<vmem>>) attributes {dimension_semantics = [#tpu.dimension_semantics<parallel>], iteration_bounds = array<i64: 2>, scalar_prefetch = 0 : i64, scratch_operands = 1 : i64, tpu.core_type = #tpu.core_type<tc>, window_params = [{transform_indices = @transform_0, window_bounds = array<i64: 1, 8, 384>}, {pipeline_mode = #tpu.pipeline_mode<synchronous>, transform_indices = @transform_1, window_bounds = array<i64: 83, 8, 256>}, {pipeline_mode = #tpu.pipeline_mode<synchronous>, transform_indices = @transform_2, window_bounds = array<i64: 8, 24>}, {pipeline_mode = #tpu.pipeline_mode<synchronous>, transform_indices = @transform_3, window_bounds = array<i64: 8, 1>}, {transform_indices = @transform_4, window_bounds = array<i64: 1, 8, 256>}]} {
    %c0 = arith.constant 0 : index
    %c0_0 = arith.constant 0 : index
    %c34 = arith.constant 34 : index
    %0 = vector.load %arg1[%c0, %c0_0, %c34] : memref<1x8x384xbf16, #tpu.memory_space<vmem>>, vector<1x8x256xbf16>
    %1 = vector.shape_cast %0 : vector<1x8x256xbf16> to vector<8x256xbf16>
    %2 = arith.extf %1 : vector<8x256xbf16> to vector<8x256xf32>
    %c0_1 = arith.constant 0 : index
    %c0_2 = arith.constant 0 : index
    %c0_3 = arith.constant 0 : index
    %3 = vector.load %arg2[%c0_1, %c0_2, %c0_3] : memref<83x8x256xf32, #tpu.memory_space<vmem>>, vector<1x8x256xf32>
    %4 = vector.shape_cast %3 : vector<1x8x256xf32> to vector<8x256xf32>
    %5 = arith.mulf %2, %4 : vector<8x256xf32>
    %c0_4 = arith.constant 0 : index
    %c0_5 = arith.constant 0 : index
    %c35 = arith.constant 35 : index
    %6 = vector.load %arg1[%c0_4, %c0_5, %c35] : memref<1x8x384xbf16, #tpu.memory_space<vmem>>, vector<1x8x256xbf16>
    %7 = vector.shape_cast %6 : vector<1x8x256xbf16> to vector<8x256xbf16>
    %8 = arith.extf %7 : vector<8x256xbf16> to vector<8x256xf32>
    %c1 = arith.constant 1 : index
    %c0_6 = arith.constant 0 : index
    %c0_7 = arith.constant 0 : index
    %9 = vector.load %arg2[%c1, %c0_6, %c0_7] : memref<83x8x256xf32, #tpu.memory_space<vmem>>, vector<1x8x256xf32>
    %10 = vector.shape_cast %9 : vector<1x8x256xf32> to vector<8x256xf32>
    %11 = arith.mulf %8, %10 : vector<8x256xf32>
    %12 = arith.addf %5, %11 : vector<8x256xf32>
    %c0_8 = arith.constant 0 : index
    %c0_9 = arith.constant 0 : index
    %c36 = arith.constant 36 : index
    %13 = vector.load %arg1[%c0_8, %c0_9, %c36] : memref<1x8x384xbf16, #tpu.memory_space<vmem>>, vector<1x8x256xbf16>
    %14 = vector.shape_cast %13 : vector<1x8x256xbf16> to vector<8x256xbf16>
    %15 = arith.extf %14 : vector<8x256xbf16> to vector<8x256xf32>
    %c2 = arith.constant 2 : index
    %c0_10 = arith.constant 0 : index
    %c0_11 = arith.constant 0 : index
    %16 = vector.load %arg2[%c2, %c0_10, %c0_11] : memref<83x8x256xf32, #tpu.memory_space<vmem>>, vector<1x8x256xf32>
    %17 = vector.shape_cast %16 : vector<1x8x256xf32> to vector<8x256xf32>
    %18 = arith.mulf %15, %17 : vector<8x256xf32>
    %19 = arith.addf %12, %18 : vector<8x256xf32>
    %c0_12 = arith.constant 0 : index
    %c0_13 = arith.constant 0 : index
    %c50 = arith.constant 50 : index
    %20 = vector.load %arg1[%c0_12, %c0_13, %c50] : memref<1x8x384xbf16, #tpu.memory_space<vmem>>, vector<1x8x256xbf16>
    %21 = vector.shape_cast %20 : vector<1x8x256xbf16> to vector<8x256xbf16>
    %22 = arith.extf %21 : vector<8x256xbf16> to vector<8x256xf32>
    %c3 = arith.constant 3 : index
    %c0_14 = arith.constant 0 : index
    %c0_15 = arith.constant 0 : index
    %23 = vector.load %arg2[%c3, %c0_14, %c0_15] : memref<83x8x256xf32, #tpu.memory_space<vmem>>, vector<1x8x256xf32>
    %24 = vector.shape_cast %23 : vector<1x8x256xf32> to vector<8x256xf32>
    %25 = arith.mulf %22, %24 : vector<8x256xf32>
    %26 = arith.addf %19, %25 : vector<8x256xf32>
    %c0_16 = arith.constant 0 : index
    %c0_17 = arith.constant 0 : index
    %c51 = arith.constant 51 : index
    %27 = vector.load %arg1[%c0_16, %c0_17, %c51] : memref<1x8x384xbf16, #tpu.memory_space<vmem>>, vector<1x8x256xbf16>
    %28 = vector.shape_cast %27 : vector<1x8x256xbf16> to vector<8x256xbf16>
    %29 = arith.extf %28 : vector<8x256xbf16> to vector<8x256xf32>
    %c4 = arith.constant 4 : index
    %c0_18 = arith.constant 0 : index
    %c0_19 = arith.constant 0 : index
    %30 = vector.load %arg2[%c4, %c0_18, %c0_19] : memref<83x8x256xf32, #tpu.memory_space<vmem>>, vector<1x8x256xf32>
    %31 = vector.shape_cast %30 : vector<1x8x256xf32> to vector<8x256xf32>
    %32 = arith.mulf %29, %31 : vector<8x256xf32>
    %33 = arith.addf %26, %32 : vector<8x256xf32>
    %c0_20 = arith.constant 0 : index
    %c0_21 = arith.constant 0 : index
    %c52 = arith.constant 52 : index
    %34 = vector.load %arg1[%c0_20, %c0_21, %c52] : memref<1x8x384xbf16, #tpu.memory_space<vmem>>, vector<1x8x256xbf16>
    %35 = vector.shape_cast %34 : vector<1x8x256xbf16> to vector<8x256xbf16>
    %36 = arith.extf %35 : vector<8x256xbf16> to vector<8x256xf32>
    %c5 = arith.constant 5 : index
    %c0_22 = arith.constant 0 : index
    %c0_23 = arith.constant 0 : index
    %37 = vector.load %arg2[%c5, %c0_22, %c0_23] : memref<83x8x256xf32, #tpu.memory_space<vmem>>, vector<1x8x256xf32>
    %38 = vector.shape_cast %37 : vector<1x8x256xf32> to vector<8x256xf32>
    %39 = arith.mulf %36, %38 : vector<8x256xf32>
    %40 = arith.addf %33, %39 : vector<8x256xf32>
    %c0_24 = arith.constant 0 : index
    %c0_25 = arith.constant 0 : index
    %c66 = arith.constant 66 : index
    %41 = vector.load %arg1[%c0_24, %c0_25, %c66] : memref<1x8x384xbf16, #tpu.memory_space<vmem>>, vector<1x8x256xbf16>
    %42 = vector.shape_cast %41 : vector<1x8x256xbf16> to vector<8x256xbf16>
    %43 = arith.extf %42 : vector<8x256xbf16> to vector<8x256xf32>
    %c6 = arith.constant 6 : index
    %c0_26 = arith.constant 0 : index
    %c0_27 = arith.constant 0 : index
    %44 = vector.load %arg2[%c6, %c0_26, %c0_27] : memref<83x8x256xf32, #tpu.memory_space<vmem>>, vector<1x8x256xf32>
    %45 = vector.shape_cast %44 : vector<1x8x256xf32> to vector<8x256xf32>
    %46 = arith.mulf %43, %45 : vector<8x256xf32>
    %47 = arith.addf %40, %46 : vector<8x256xf32>
    %c0_28 = arith.constant 0 : index
    %c0_29 = arith.constant 0 : index
    %c67 = arith.constant 67 : index
    %48 = vector.load %arg1[%c0_28, %c0_29, %c67] : memref<1x8x384xbf16, #tpu.memory_space<vmem>>, vector<1x8x256xbf16>
    %49 = vector.shape_cast %48 : vector<1x8x256xbf16> to vector<8x256xbf16>
    %50 = arith.extf %49 : vector<8x256xbf16> to vector<8x256xf32>
    %c7 = arith.constant 7 : index
    %c0_30 = arith.constant 0 : index
    %c0_31 = arith.constant 0 : index
    %51 = vector.load %arg2[%c7, %c0_30, %c0_31] : memref<83x8x256xf32, #tpu.memory_space<vmem>>, vector<1x8x256xf32>
    %52 = vector.shape_cast %51 : vector<1x8x256xf32> to vector<8x256xf32>
    %53 = arith.mulf %50, %52 : vector<8x256xf32>
    %54 = arith.addf %47, %53 : vector<8x256xf32>
    %c0_32 = arith.constant 0 : index
    %c0_33 = arith.constant 0 : index
    %c68 = arith.constant 68 : index
    %55 = vector.load %arg1[%c0_32, %c0_33, %c68] : memref<1x8x384xbf16, #tpu.memory_space<vmem>>, vector<1x8x256xbf16>
    %56 = vector.shape_cast %55 : vector<1x8x256xbf16> to vector<8x256xbf16>
    %57 = arith.extf %56 : vector<8x256xbf16> to vector<8x256xf32>
    %c8 = arith.constant 8 : index
    %c0_34 = arith.constant 0 : index
    %c0_35 = arith.constant 0 : index
    %58 = vector.load %arg2[%c8, %c0_34, %c0_35] : memref<83x8x256xf32, #tpu.memory_space<vmem>>, vector<1x8x256xf32>
    %59 = vector.shape_cast %58 : vector<1x8x256xf32> to vector<8x256xf32>
    %60 = arith.mulf %57, %59 : vector<8x256xf32>
    %61 = arith.addf %54, %60 : vector<8x256xf32>
    %c0_36 = arith.constant 0 : index
    %c0_37 = arith.constant 0 : index
    %62 = vector.load %arg6[%c0_36, %c0_37] : memref<24x256xf32, #tpu.memory_space<vmem>>, vector<8x256xf32>
    tpu.vector_store %arg6[%c0_36, %c0_37], %61 {strides = array<i32>} : memref<24x256xf32, #tpu.memory_space<vmem>>, vector<8x256xf32>,
    %c0_38 = arith.constant 0 : index
    %c0_39 = arith.constant 0 : index
    %c17 = arith.constant 17 : index
    %63 = vector.load %arg1[%c0_38, %c0_39, %c17] : memref<1x8x384xbf16, #tpu.memory_space<vmem>>, vector<1x8x256xbf16>
    %64 = vector.shape_cast %63 : vector<1x8x256xbf16> to vector<8x256xbf16>
    %65 = arith.extf %64 : vector<8x256xbf16> to vector<8x256xf32>
    %c9 = arith.constant 9 : index
    %c0_40 = arith.constant 0 : index
    %c0_41 = arith.constant 0 : index
    %66 = vector.load %arg2[%c9, %c0_40, %c0_41] : memref<83x8x256xf32, #tpu.memory_space<vmem>>, vector<1x8x256xf32>
    %67 = vector.shape_cast %66 : vector<1x8x256xf32> to vector<8x256xf32>
    %68 = arith.mulf %65, %67 : vector<8x256xf32>
    %c0_42 = arith.constant 0 : index
    %c0_43 = arith.constant 0 : index
    %c18 = arith.constant 18 : index
    %69 = vector.load %arg1[%c0_42, %c0_43, %c18] : memref<1x8x384xbf16, #tpu.memory_space<vmem>>, vector<1x8x256xbf16>
    %70 = vector.shape_cast %69 : vector<1x8x256xbf16> to vector<8x256xbf16>
    %71 = arith.extf %70 : vector<8x256xbf16> to vector<8x256xf32>
    %c10 = arith.constant 10 : index
    %c0_44 = arith.constant 0 : index
    %c0_45 = arith.constant 0 : index
    %72 = vector.load %arg2[%c10, %c0_44, %c0_45] : memref<83x8x256xf32, #tpu.memory_space<vmem>>, vector<1x8x256xf32>
    %73 = vector.shape_cast %72 : vector<1x8x256xf32> to vector<8x256xf32>
    %74 = arith.mulf %71, %73 : vector<8x256xf32>
    %75 = arith.addf %68, %74 : vector<8x256xf32>
    %c0_46 = arith.constant 0 : index
    %c0_47 = arith.constant 0 : index
    %c19 = arith.constant 19 : index
    %76 = vector.load %arg1[%c0_46, %c0_47, %c19] : memref<1x8x384xbf16, #tpu.memory_space<vmem>>, vector<1x8x256xbf16>
    %77 = vector.shape_cast %76 : vector<1x8x256xbf16> to vector<8x256xbf16>
    %78 = arith.extf %77 : vector<8x256xbf16> to vector<8x256xf32>
    %c11 = arith.constant 11 : index
    %c0_48 = arith.constant 0 : index
    %c0_49 = arith.constant 0 : index
    %79 = vector.load %arg2[%c11, %c0_48, %c0_49] : memref<83x8x256xf32, #tpu.memory_space<vmem>>, vector<1x8x256xf32>
    %80 = vector.shape_cast %79 : vector<1x8x256xf32> to vector<8x256xf32>
    %81 = arith.mulf %78, %80 : vector<8x256xf32>
    %82 = arith.addf %75, %81 : vector<8x256xf32>
    %c0_50 = arith.constant 0 : index
    %c0_51 = arith.constant 0 : index
    %c20 = arith.constant 20 : index
    %83 = vector.load %arg1[%c0_50, %c0_51, %c20] : memref<1x8x384xbf16, #tpu.memory_space<vmem>>, vector<1x8x256xbf16>
    %84 = vector.shape_cast %83 : vector<1x8x256xbf16> to vector<8x256xbf16>
    %85 = arith.extf %84 : vector<8x256xbf16> to vector<8x256xf32>
    %c12 = arith.constant 12 : index
    %c0_52 = arith.constant 0 : index
    %c0_53 = arith.constant 0 : index
    %86 = vector.load %arg2[%c12, %c0_52, %c0_53] : memref<83x8x256xf32, #tpu.memory_space<vmem>>, vector<1x8x256xf32>
    %87 = vector.shape_cast %86 : vector<1x8x256xf32> to vector<8x256xf32>
    %88 = arith.mulf %85, %87 : vector<8x256xf32>
    %89 = arith.addf %82, %88 : vector<8x256xf32>
    %c0_54 = arith.constant 0 : index
    %c0_55 = arith.constant 0 : index
    %c21 = arith.constant 21 : index
    %90 = vector.load %arg1[%c0_54, %c0_55, %c21] : memref<1x8x384xbf16, #tpu.memory_space<vmem>>, vector<1x8x256xbf16>
    %91 = vector.shape_cast %90 : vector<1x8x256xbf16> to vector<8x256xbf16>
    %92 = arith.extf %91 : vector<8x256xbf16> to vector<8x256xf32>
    %c13 = arith.constant 13 : index
    %c0_56 = arith.constant 0 : index
    %c0_57 = arith.constant 0 : index
    %93 = vector.load %arg2[%c13, %c0_56, %c0_57] : memref<83x8x256xf32, #tpu.memory_space<vmem>>, vector<1x8x256xf32>
    %94 = vector.shape_cast %93 : vector<1x8x256xf32> to vector<8x256xf32>
    %95 = arith.mulf %92, %94 : vector<8x256xf32>
    %96 = arith.addf %89, %95 : vector<8x256xf32>
    %c0_58 = arith.constant 0 : index
    %c0_59 = arith.constant 0 : index
    %c33 = arith.constant 33 : index
    %97 = vector.load %arg1[%c0_58, %c0_59, %c33] : memref<1x8x384xbf16, #tpu.memory_space<vmem>>, vector<1x8x256xbf16>
    %98 = vector.shape_cast %97 : vector<1x8x256xbf16> to vector<8x256xbf16>
    %99 = arith.extf %98 : vector<8x256xbf16> to vector<8x256xf32>
    %c14 = arith.constant 14 : index
    %c0_60 = arith.constant 0 : index
    %c0_61 = arith.constant 0 : index
    %100 = vector.load %arg2[%c14, %c0_60, %c0_61] : memref<83x8x256xf32, #tpu.memory_space<vmem>>, vector<1x8x256xf32>
    %101 = vector.shape_cast %100 : vector<1x8x256xf32> to vector<8x256xf32>
    %102 = arith.mulf %99, %101 : vector<8x256xf32>
    %103 = arith.addf %96, %102 : vector<8x256xf32>
    %c0_62 = arith.constant 0 : index
    %c0_63 = arith.constant 0 : index
    %c34_64 = arith.constant 34 : index
    %104 = vector.load %arg1[%c0_62, %c0_63, %c34_64] : memref<1x8x384xbf16, #tpu.memory_space<vmem>>, vector<1x8x256xbf16>
    %105 = vector.shape_cast %104 : vector<1x8x256xbf16> to vector<8x256xbf16>
    %106 = arith.extf %105 : vector<8x256xbf16> to vector<8x256xf32>
    %c15 = arith.constant 15 : index
    %c0_65 = arith.constant 0 : index
    %c0_66 = arith.constant 0 : index
    %107 = vector.load %arg2[%c15, %c0_65, %c0_66] : memref<83x8x256xf32, #tpu.memory_space<vmem>>, vector<1x8x256xf32>
    %108 = vector.shape_cast %107 : vector<1x8x256xf32> to vector<8x256xf32>
    %109 = arith.mulf %106, %108 : vector<8x256xf32>
    %110 = arith.addf %103, %109 : vector<8x256xf32>
    %c0_67 = arith.constant 0 : index
    %c0_68 = arith.constant 0 : index
    %c35_69 = arith.constant 35 : index
    %111 = vector.load %arg1[%c0_67, %c0_68, %c35_69] : memref<1x8x384xbf16, #tpu.memory_space<vmem>>, vector<1x8x256xbf16>
    %112 = vector.shape_cast %111 : vector<1x8x256xbf16> to vector<8x256xbf16>
    %113 = arith.extf %112 : vector<8x256xbf16> to vector<8x256xf32>
    %c16 = arith.constant 16 : index
    %c0_70 = arith.constant 0 : index
    %c0_71 = arith.constant 0 : index
    %114 = vector.load %arg2[%c16, %c0_70, %c0_71] : memref<83x8x256xf32, #tpu.memory_space<vmem>>, vector<1x8x256xf32>
    %115 = vector.shape_cast %114 : vector<1x8x256xf32> to vector<8x256xf32>
    %116 = arith.mulf %113, %115 : vector<8x256xf32>
    %117 = arith.addf %110, %116 : vector<8x256xf32>
    %c0_72 = arith.constant 0 : index
    %c0_73 = arith.constant 0 : index
    %c36_74 = arith.constant 36 : index
    %118 = vector.load %arg1[%c0_72, %c0_73, %c36_74] : memref<1x8x384xbf16, #tpu.memory_space<vmem>>, vector<1x8x256xbf16>
    %119 = vector.shape_cast %118 : vector<1x8x256xbf16> to vector<8x256xbf16>
    %120 = arith.extf %119 : vector<8x256xbf16> to vector<8x256xf32>
    %c17_75 = arith.constant 17 : index
    %c0_76 = arith.constant 0 : index
    %c0_77 = arith.constant 0 : index
    %121 = vector.load %arg2[%c17_75, %c0_76, %c0_77] : memref<83x8x256xf32, #tpu.memory_space<vmem>>, vector<1x8x256xf32>
    %122 = vector.shape_cast %121 : vector<1x8x256xf32> to vector<8x256xf32>
    %123 = arith.mulf %120, %122 : vector<8x256xf32>
    %124 = arith.addf %117, %123 : vector<8x256xf32>
    %c0_78 = arith.constant 0 : index
    %c0_79 = arith.constant 0 : index
    %c37 = arith.constant 37 : index
    %125 = vector.load %arg1[%c0_78, %c0_79, %c37] : memref<1x8x384xbf16, #tpu.memory_space<vmem>>, vector<1x8x256xbf16>
    %126 = vector.shape_cast %125 : vector<1x8x256xbf16> to vector<8x256xbf16>
    %127 = arith.extf %126 : vector<8x256xbf16> to vector<8x256xf32>
    %c18_80 = arith.constant 18 : index
    %c0_81 = arith.constant 0 : index
    %c0_82 = arith.constant 0 : index
    %128 = vector.load %arg2[%c18_80, %c0_81, %c0_82] : memref<83x8x256xf32, #tpu.memory_space<vmem>>, vector<1x8x256xf32>
    %129 = vector.shape_cast %128 : vector<1x8x256xf32> to vector<8x256xf32>
    %130 = arith.mulf %127, %129 : vector<8x256xf32>
    %131 = arith.addf %124, %130 : vector<8x256xf32>
    %c0_83 = arith.constant 0 : index
    %c0_84 = arith.constant 0 : index
    %c49 = arith.constant 49 : index
    %132 = vector.load %arg1[%c0_83, %c0_84, %c49] : memref<1x8x384xbf16, #tpu.memory_space<vmem>>, vector<1x8x256xbf16>
    %133 = vector.shape_cast %132 : vector<1x8x256xbf16> to vector<8x256xbf16>
    %134 = arith.extf %133 : vector<8x256xbf16> to vector<8x256xf32>
    %c19_85 = arith.constant 19 : index
    %c0_86 = arith.constant 0 : index
    %c0_87 = arith.constant 0 : index
    %135 = vector.load %arg2[%c19_85, %c0_86, %c0_87] : memref<83x8x256xf32, #tpu.memory_space<vmem>>, vector<1x8x256xf32>
    %136 = vector.shape_cast %135 : vector<1x8x256xf32> to vector<8x256xf32>
    %137 = arith.mulf %134, %136 : vector<8x256xf32>
    %138 = arith.addf %131, %137 : vector<8x256xf32>
    %c0_88 = arith.constant 0 : index
    %c0_89 = arith.constant 0 : index
    %c50_90 = arith.constant 50 : index
    %139 = vector.load %arg1[%c0_88, %c0_89, %c50_90] : memref<1x8x384xbf16, #tpu.memory_space<vmem>>, vector<1x8x256xbf16>
    %140 = vector.shape_cast %139 : vector<1x8x256xbf16> to vector<8x256xbf16>
    %141 = arith.extf %140 : vector<8x256xbf16> to vector<8x256xf32>
    %c20_91 = arith.constant 20 : index
    %c0_92 = arith.constant 0 : index
    %c0_93 = arith.constant 0 : index
    %142 = vector.load %arg2[%c20_91, %c0_92, %c0_93] : memref<83x8x256xf32, #tpu.memory_space<vmem>>, vector<1x8x256xf32>
    %143 = vector.shape_cast %142 : vector<1x8x256xf32> to vector<8x256xf32>
    %144 = arith.mulf %141, %143 : vector<8x256xf32>
    %145 = arith.addf %138, %144 : vector<8x256xf32>
    %c0_94 = arith.constant 0 : index
    %c0_95 = arith.constant 0 : index
    %c51_96 = arith.constant 51 : index
    %146 = vector.load %arg1[%c0_94, %c0_95, %c51_96] : memref<1x8x384xbf16, #tpu.memory_space<vmem>>, vector<1x8x256xbf16>
    %147 = vector.shape_cast %146 : vector<1x8x256xbf16> to vector<8x256xbf16>
    %148 = arith.extf %147 : vector<8x256xbf16> to vector<8x256xf32>
    %c21_97 = arith.constant 21 : index
    %c0_98 = arith.constant 0 : index
    %c0_99 = arith.constant 0 : index
    %149 = vector.load %arg2[%c21_97, %c0_98, %c0_99] : memref<83x8x256xf32, #tpu.memory_space<vmem>>, vector<1x8x256xf32>
    %150 = vector.shape_cast %149 : vector<1x8x256xf32> to vector<8x256xf32>
    %151 = arith.mulf %148, %150 : vector<8x256xf32>
    %152 = arith.addf %145, %151 : vector<8x256xf32>
    %c0_100 = arith.constant 0 : index
    %c0_101 = arith.constant 0 : index
    %c52_102 = arith.constant 52 : index
    %153 = vector.load %arg1[%c0_100, %c0_101, %c52_102] : memref<1x8x384xbf16, #tpu.memory_space<vmem>>, vector<1x8x256xbf16>
    %154 = vector.shape_cast %153 : vector<1x8x256xbf16> to vector<8x256xbf16>
    %155 = arith.extf %154 : vector<8x256xbf16> to vector<8x256xf32>
    %c22 = arith.constant 22 : index
    %c0_103 = arith.constant 0 : index
    %c0_104 = arith.constant 0 : index
    %156 = vector.load %arg2[%c22, %c0_103, %c0_104] : memref<83x8x256xf32, #tpu.memory_space<vmem>>, vector<1x8x256xf32>
    %157 = vector.shape_cast %156 : vector<1x8x256xf32> to vector<8x256xf32>
    %158 = arith.mulf %155, %157 : vector<8x256xf32>
    %159 = arith.addf %152, %158 : vector<8x256xf32>
    %c0_105 = arith.constant 0 : index
    %c0_106 = arith.constant 0 : index
    %c53 = arith.constant 53 : index
    %160 = vector.load %arg1[%c0_105, %c0_106, %c53] : memref<1x8x384xbf16, #tpu.memory_space<vmem>>, vector<1x8x256xbf16>
    %161 = vector.shape_cast %160 : vector<1x8x256xbf16> to vector<8x256xbf16>
    %162 = arith.extf %161 : vector<8x256xbf16> to vector<8x256xf32>
    %c23 = arith.constant 23 : index
    %c0_107 = arith.constant 0 : index
    %c0_108 = arith.constant 0 : index
    %163 = vector.load %arg2[%c23, %c0_107, %c0_108] : memref<83x8x256xf32, #tpu.memory_space<vmem>>, vector<1x8x256xf32>
    %164 = vector.shape_cast %163 : vector<1x8x256xf32> to vector<8x256xf32>
    %165 = arith.mulf %162, %164 : vector<8x256xf32>
    %166 = arith.addf %159, %165 : vector<8x256xf32>
    %c0_109 = arith.constant 0 : index
    %c0_110 = arith.constant 0 : index
    %c65 = arith.constant 65 : index
    %167 = vector.load %arg1[%c0_109, %c0_110, %c65] : memref<1x8x384xbf16, #tpu.memory_space<vmem>>, vector<1x8x256xbf16>
    %168 = vector.shape_cast %167 : vector<1x8x256xbf16> to vector<8x256xbf16>
    %169 = arith.extf %168 : vector<8x256xbf16> to vector<8x256xf32>
    %c24 = arith.constant 24 : index
    %c0_111 = arith.constant 0 : index
    %c0_112 = arith.constant 0 : index
    %170 = vector.load %arg2[%c24, %c0_111, %c0_112] : memref<83x8x256xf32, #tpu.memory_space<vmem>>, vector<1x8x256xf32>
    %171 = vector.shape_cast %170 : vector<1x8x256xf32> to vector<8x256xf32>
    %172 = arith.mulf %169, %171 : vector<8x256xf32>
    %173 = arith.addf %166, %172 : vector<8x256xf32>
    %c0_113 = arith.constant 0 : index
    %c0_114 = arith.constant 0 : index
    %c66_115 = arith.constant 66 : index
    %174 = vector.load %arg1[%c0_113, %c0_114, %c66_115] : memref<1x8x384xbf16, #tpu.memory_space<vmem>>, vector<1x8x256xbf16>
    %175 = vector.shape_cast %174 : vector<1x8x256xbf16> to vector<8x256xbf16>
    %176 = arith.extf %175 : vector<8x256xbf16> to vector<8x256xf32>
    %c25 = arith.constant 25 : index
    %c0_116 = arith.constant 0 : index
    %c0_117 = arith.constant 0 : index
    %177 = vector.load %arg2[%c25, %c0_116, %c0_117] : memref<83x8x256xf32, #tpu.memory_space<vmem>>, vector<1x8x256xf32>
    %178 = vector.shape_cast %177 : vector<1x8x256xf32> to vector<8x256xf32>
    %179 = arith.mulf %176, %178 : vector<8x256xf32>
    %180 = arith.addf %173, %179 : vector<8x256xf32>
    %c0_118 = arith.constant 0 : index
    %c0_119 = arith.constant 0 : index
    %c67_120 = arith.constant 67 : index
    %181 = vector.load %arg1[%c0_118, %c0_119, %c67_120] : memref<1x8x384xbf16, #tpu.memory_space<vmem>>, vector<1x8x256xbf16>
    %182 = vector.shape_cast %181 : vector<1x8x256xbf16> to vector<8x256xbf16>
    %183 = arith.extf %182 : vector<8x256xbf16> to vector<8x256xf32>
    %c26 = arith.constant 26 : index
    %c0_121 = arith.constant 0 : index
    %c0_122 = arith.constant 0 : index
    %184 = vector.load %arg2[%c26, %c0_121, %c0_122] : memref<83x8x256xf32, #tpu.memory_space<vmem>>, vector<1x8x256xf32>
    %185 = vector.shape_cast %184 : vector<1x8x256xf32> to vector<8x256xf32>
    %186 = arith.mulf %183, %185 : vector<8x256xf32>
    %187 = arith.addf %180, %186 : vector<8x256xf32>
    %c0_123 = arith.constant 0 : index
    %c0_124 = arith.constant 0 : index
    %c68_125 = arith.constant 68 : index
    %188 = vector.load %arg1[%c0_123, %c0_124, %c68_125] : memref<1x8x384xbf16, #tpu.memory_space<vmem>>, vector<1x8x256xbf16>
    %189 = vector.shape_cast %188 : vector<1x8x256xbf16> to vector<8x256xbf16>
    %190 = arith.extf %189 : vector<8x256xbf16> to vector<8x256xf32>
    %c27 = arith.constant 27 : index
    %c0_126 = arith.constant 0 : index
    %c0_127 = arith.constant 0 : index
    %191 = vector.load %arg2[%c27, %c0_126, %c0_127] : memref<83x8x256xf32, #tpu.memory_space<vmem>>, vector<1x8x256xf32>
    %192 = vector.shape_cast %191 : vector<1x8x256xf32> to vector<8x256xf32>
    %193 = arith.mulf %190, %192 : vector<8x256xf32>
    %194 = arith.addf %187, %193 : vector<8x256xf32>
    %c0_128 = arith.constant 0 : index
    %c0_129 = arith.constant 0 : index
    %c69 = arith.constant 69 : index
    %195 = vector.load %arg1[%c0_128, %c0_129, %c69] : memref<1x8x384xbf16, #tpu.memory_space<vmem>>, vector<1x8x256xbf16>
    %196 = vector.shape_cast %195 : vector<1x8x256xbf16> to vector<8x256xbf16>
    %197 = arith.extf %196 : vector<8x256xbf16> to vector<8x256xf32>
    %c28 = arith.constant 28 : index
    %c0_130 = arith.constant 0 : index
    %c0_131 = arith.constant 0 : index
    %198 = vector.load %arg2[%c28, %c0_130, %c0_131] : memref<83x8x256xf32, #tpu.memory_space<vmem>>, vector<1x8x256xf32>
    %199 = vector.shape_cast %198 : vector<1x8x256xf32> to vector<8x256xf32>
    %200 = arith.mulf %197, %199 : vector<8x256xf32>
    %201 = arith.addf %194, %200 : vector<8x256xf32>
    %c0_132 = arith.constant 0 : index
    %c0_133 = arith.constant 0 : index
    %c81 = arith.constant 81 : index
    %202 = vector.load %arg1[%c0_132, %c0_133, %c81] : memref<1x8x384xbf16, #tpu.memory_space<vmem>>, vector<1x8x256xbf16>
    %203 = vector.shape_cast %202 : vector<1x8x256xbf16> to vector<8x256xbf16>
    %204 = arith.extf %203 : vector<8x256xbf16> to vector<8x256xf32>
    %c29 = arith.constant 29 : index
    %c0_134 = arith.constant 0 : index
    %c0_135 = arith.constant 0 : index
    %205 = vector.load %arg2[%c29, %c0_134, %c0_135] : memref<83x8x256xf32, #tpu.memory_space<vmem>>, vector<1x8x256xf32>
    %206 = vector.shape_cast %205 : vector<1x8x256xf32> to vector<8x256xf32>
    %207 = arith.mulf %204, %206 : vector<8x256xf32>
    %208 = arith.addf %201, %207 : vector<8x256xf32>
    %c0_136 = arith.constant 0 : index
    %c0_137 = arith.constant 0 : index
    %c82 = arith.constant 82 : index
    %209 = vector.load %arg1[%c0_136, %c0_137, %c82] : memref<1x8x384xbf16, #tpu.memory_space<vmem>>, vector<1x8x256xbf16>
    %210 = vector.shape_cast %209 : vector<1x8x256xbf16> to vector<8x256xbf16>
    %211 = arith.extf %210 : vector<8x256xbf16> to vector<8x256xf32>
    %c30 = arith.constant 30 : index
    %c0_138 = arith.constant 0 : index
    %c0_139 = arith.constant 0 : index
    %212 = vector.load %arg2[%c30, %c0_138, %c0_139] : memref<83x8x256xf32, #tpu.memory_space<vmem>>, vector<1x8x256xf32>
    %213 = vector.shape_cast %212 : vector<1x8x256xf32> to vector<8x256xf32>
    %214 = arith.mulf %211, %213 : vector<8x256xf32>
    %215 = arith.addf %208, %214 : vector<8x256xf32>
    %c0_140 = arith.constant 0 : index
    %c0_141 = arith.constant 0 : index
    %c83 = arith.constant 83 : index
    %216 = vector.load %arg1[%c0_140, %c0_141, %c83] : memref<1x8x384xbf16, #tpu.memory_space<vmem>>, vector<1x8x256xbf16>
    %217 = vector.shape_cast %216 : vector<1x8x256xbf16> to vector<8x256xbf16>
    %218 = arith.extf %217 : vector<8x256xbf16> to vector<8x256xf32>
    %c31 = arith.constant 31 : index
    %c0_142 = arith.constant 0 : index
    %c0_143 = arith.constant 0 : index
    %219 = vector.load %arg2[%c31, %c0_142, %c0_143] : memref<83x8x256xf32, #tpu.memory_space<vmem>>, vector<1x8x256xf32>
    %220 = vector.shape_cast %219 : vector<1x8x256xf32> to vector<8x256xf32>
    %221 = arith.mulf %218, %220 : vector<8x256xf32>
    %222 = arith.addf %215, %221 : vector<8x256xf32>
    %c0_144 = arith.constant 0 : index
    %c0_145 = arith.constant 0 : index
    %c84 = arith.constant 84 : index
    %223 = vector.load %arg1[%c0_144, %c0_145, %c84] : memref<1x8x384xbf16, #tpu.memory_space<vmem>>, vector<1x8x256xbf16>
    %224 = vector.shape_cast %223 : vector<1x8x256xbf16> to vector<8x256xbf16>
    %225 = arith.extf %224 : vector<8x256xbf16> to vector<8x256xf32>
    %c32 = arith.constant 32 : index
    %c0_146 = arith.constant 0 : index
    %c0_147 = arith.constant 0 : index
    %226 = vector.load %arg2[%c32, %c0_146, %c0_147] : memref<83x8x256xf32, #tpu.memory_space<vmem>>, vector<1x8x256xf32>
    %227 = vector.shape_cast %226 : vector<1x8x256xf32> to vector<8x256xf32>
    %228 = arith.mulf %225, %227 : vector<8x256xf32>
    %229 = arith.addf %222, %228 : vector<8x256xf32>
    %c0_148 = arith.constant 0 : index
    %c0_149 = arith.constant 0 : index
    %c85 = arith.constant 85 : index
    %230 = vector.load %arg1[%c0_148, %c0_149, %c85] : memref<1x8x384xbf16, #tpu.memory_space<vmem>>, vector<1x8x256xbf16>
    %231 = vector.shape_cast %230 : vector<1x8x256xbf16> to vector<8x256xbf16>
    %232 = arith.extf %231 : vector<8x256xbf16> to vector<8x256xf32>
    %c33_150 = arith.constant 33 : index
    %c0_151 = arith.constant 0 : index
    %c0_152 = arith.constant 0 : index
    %233 = vector.load %arg2[%c33_150, %c0_151, %c0_152] : memref<83x8x256xf32, #tpu.memory_space<vmem>>, vector<1x8x256xf32>
    %234 = vector.shape_cast %233 : vector<1x8x256xf32> to vector<8x256xf32>
    %235 = arith.mulf %232, %234 : vector<8x256xf32>
    %236 = arith.addf %229, %235 : vector<8x256xf32>
    %c8_153 = arith.constant 8 : index
    %c0_154 = arith.constant 0 : index
    %237 = vector.load %arg6[%c8_153, %c0_154] : memref<24x256xf32, #tpu.memory_space<vmem>>, vector<8x256xf32>
    tpu.vector_store %arg6[%c8_153, %c0_154], %236 {strides = array<i32>} : memref<24x256xf32, #tpu.memory_space<vmem>>, vector<8x256xf32>,
    %c0_155 = arith.constant 0 : index
    %c0_156 = arith.constant 0 : index
    %c0_157 = arith.constant 0 : index
    %238 = vector.load %arg1[%c0_155, %c0_156, %c0_157] : memref<1x8x384xbf16, #tpu.memory_space<vmem>>, vector<1x8x256xbf16>
    %239 = vector.shape_cast %238 : vector<1x8x256xbf16> to vector<8x256xbf16>
    %240 = arith.extf %239 : vector<8x256xbf16> to vector<8x256xf32>
    %c34_158 = arith.constant 34 : index
    %c0_159 = arith.constant 0 : index
    %c0_160 = arith.constant 0 : index
    %241 = vector.load %arg2[%c34_158, %c0_159, %c0_160] : memref<83x8x256xf32, #tpu.memory_space<vmem>>, vector<1x8x256xf32>
    %242 = vector.shape_cast %241 : vector<1x8x256xf32> to vector<8x256xf32>
    %243 = arith.mulf %240, %242 : vector<8x256xf32>
    %c0_161 = arith.constant 0 : index
    %c0_162 = arith.constant 0 : index
    %c1_163 = arith.constant 1 : index
    %244 = vector.load %arg1[%c0_161, %c0_162, %c1_163] : memref<1x8x384xbf16, #tpu.memory_space<vmem>>, vector<1x8x256xbf16>
    %245 = vector.shape_cast %244 : vector<1x8x256xbf16> to vector<8x256xbf16>
    %246 = arith.extf %245 : vector<8x256xbf16> to vector<8x256xf32>
    %c35_164 = arith.constant 35 : index
    %c0_165 = arith.constant 0 : index
    %c0_166 = arith.constant 0 : index
    %247 = vector.load %arg2[%c35_164, %c0_165, %c0_166] : memref<83x8x256xf32, #tpu.memory_space<vmem>>, vector<1x8x256xf32>
    %248 = vector.shape_cast %247 : vector<1x8x256xf32> to vector<8x256xf32>
    %249 = arith.mulf %246, %248 : vector<8x256xf32>
    %250 = arith.addf %243, %249 : vector<8x256xf32>
    %c0_167 = arith.constant 0 : index
    %c0_168 = arith.constant 0 : index
    %c2_169 = arith.constant 2 : index
    %251 = vector.load %arg1[%c0_167, %c0_168, %c2_169] : memref<1x8x384xbf16, #tpu.memory_space<vmem>>, vector<1x8x256xbf16>
    %252 = vector.shape_cast %251 : vector<1x8x256xbf16> to vector<8x256xbf16>
    %253 = arith.extf %252 : vector<8x256xbf16> to vector<8x256xf32>
    %c36_170 = arith.constant 36 : index
    %c0_171 = arith.constant 0 : index
    %c0_172 = arith.constant 0 : index
    %254 = vector.load %arg2[%c36_170, %c0_171, %c0_172] : memref<83x8x256xf32, #tpu.memory_space<vmem>>, vector<1x8x256xf32>
    %255 = vector.shape_cast %254 : vector<1x8x256xf32> to vector<8x256xf32>
    %256 = arith.mulf %253, %255 : vector<8x256xf32>
    %257 = arith.addf %250, %256 : vector<8x256xf32>
    %c0_173 = arith.constant 0 : index
    %c0_174 = arith.constant 0 : index
    %c3_175 = arith.constant 3 : index
    %258 = vector.load %arg1[%c0_173, %c0_174, %c3_175] : memref<1x8x384xbf16, #tpu.memory_space<vmem>>, vector<1x8x256xbf16>
    %259 = vector.shape_cast %258 : vector<1x8x256xbf16> to vector<8x256xbf16>
    %260 = arith.extf %259 : vector<8x256xbf16> to vector<8x256xf32>
    %c37_176 = arith.constant 37 : index
    %c0_177 = arith.constant 0 : index
    %c0_178 = arith.constant 0 : index
    %261 = vector.load %arg2[%c37_176, %c0_177, %c0_178] : memref<83x8x256xf32, #tpu.memory_space<vmem>>, vector<1x8x256xf32>
    %262 = vector.shape_cast %261 : vector<1x8x256xf32> to vector<8x256xf32>
    %263 = arith.mulf %260, %262 : vector<8x256xf32>
    %264 = arith.addf %257, %263 : vector<8x256xf32>
    %c0_179 = arith.constant 0 : index
    %c0_180 = arith.constant 0 : index
    %c4_181 = arith.constant 4 : index
    %265 = vector.load %arg1[%c0_179, %c0_180, %c4_181] : memref<1x8x384xbf16, #tpu.memory_space<vmem>>, vector<1x8x256xbf16>
    %266 = vector.shape_cast %265 : vector<1x8x256xbf16> to vector<8x256xbf16>
    %267 = arith.extf %266 : vector<8x256xbf16> to vector<8x256xf32>
    %c38 = arith.constant 38 : index
    %c0_182 = arith.constant 0 : index
    %c0_183 = arith.constant 0 : index
    %268 = vector.load %arg2[%c38, %c0_182, %c0_183] : memref<83x8x256xf32, #tpu.memory_space<vmem>>, vector<1x8x256xf32>
    %269 = vector.shape_cast %268 : vector<1x8x256xf32> to vector<8x256xf32>
    %270 = arith.mulf %267, %269 : vector<8x256xf32>
    %271 = arith.addf %264, %270 : vector<8x256xf32>
    %c0_184 = arith.constant 0 : index
    %c0_185 = arith.constant 0 : index
    %c5_186 = arith.constant 5 : index
    %272 = vector.load %arg1[%c0_184, %c0_185, %c5_186] : memref<1x8x384xbf16, #tpu.memory_space<vmem>>, vector<1x8x256xbf16>
    %273 = vector.shape_cast %272 : vector<1x8x256xbf16> to vector<8x256xbf16>
    %274 = arith.extf %273 : vector<8x256xbf16> to vector<8x256xf32>
    %c39 = arith.constant 39 : index
    %c0_187 = arith.constant 0 : index
    %c0_188 = arith.constant 0 : index
    %275 = vector.load %arg2[%c39, %c0_187, %c0_188] : memref<83x8x256xf32, #tpu.memory_space<vmem>>, vector<1x8x256xf32>
    %276 = vector.shape_cast %275 : vector<1x8x256xf32> to vector<8x256xf32>
    %277 = arith.mulf %274, %276 : vector<8x256xf32>
    %278 = arith.addf %271, %277 : vector<8x256xf32>
    %c0_189 = arith.constant 0 : index
    %c0_190 = arith.constant 0 : index
    %c6_191 = arith.constant 6 : index
    %279 = vector.load %arg1[%c0_189, %c0_190, %c6_191] : memref<1x8x384xbf16, #tpu.memory_space<vmem>>, vector<1x8x256xbf16>
    %280 = vector.shape_cast %279 : vector<1x8x256xbf16> to vector<8x256xbf16>
    %281 = arith.extf %280 : vector<8x256xbf16> to vector<8x256xf32>
    %c40 = arith.constant 40 : index
    %c0_192 = arith.constant 0 : index
    %c0_193 = arith.constant 0 : index
    %282 = vector.load %arg2[%c40, %c0_192, %c0_193] : memref<83x8x256xf32, #tpu.memory_space<vmem>>, vector<1x8x256xf32>
    %283 = vector.shape_cast %282 : vector<1x8x256xf32> to vector<8x256xf32>
    %284 = arith.mulf %281, %283 : vector<8x256xf32>
    %285 = arith.addf %278, %284 : vector<8x256xf32>
    %c0_194 = arith.constant 0 : index
    %c0_195 = arith.constant 0 : index
    %c16_196 = arith.constant 16 : index
    %286 = vector.load %arg1[%c0_194, %c0_195, %c16_196] : memref<1x8x384xbf16, #tpu.memory_space<vmem>>, vector<1x8x256xbf16>
    %287 = vector.shape_cast %286 : vector<1x8x256xbf16> to vector<8x256xbf16>
    %288 = arith.extf %287 : vector<8x256xbf16> to vector<8x256xf32>
    %c41 = arith.constant 41 : index
    %c0_197 = arith.constant 0 : index
    %c0_198 = arith.constant 0 : index
    %289 = vector.load %arg2[%c41, %c0_197, %c0_198] : memref<83x8x256xf32, #tpu.memory_space<vmem>>, vector<1x8x256xf32>
    %290 = vector.shape_cast %289 : vector<1x8x256xf32> to vector<8x256xf32>
    %291 = arith.mulf %288, %290 : vector<8x256xf32>
    %292 = arith.addf %285, %291 : vector<8x256xf32>
    %c0_199 = arith.constant 0 : index
    %c0_200 = arith.constant 0 : index
    %c17_201 = arith.constant 17 : index
    %293 = vector.load %arg1[%c0_199, %c0_200, %c17_201] : memref<1x8x384xbf16, #tpu.memory_space<vmem>>, vector<1x8x256xbf16>
    %294 = vector.shape_cast %293 : vector<1x8x256xbf16> to vector<8x256xbf16>
    %295 = arith.extf %294 : vector<8x256xbf16> to vector<8x256xf32>
    %c42 = arith.constant 42 : index
    %c0_202 = arith.constant 0 : index
    %c0_203 = arith.constant 0 : index
    %296 = vector.load %arg2[%c42, %c0_202, %c0_203] : memref<83x8x256xf32, #tpu.memory_space<vmem>>, vector<1x8x256xf32>
    %297 = vector.shape_cast %296 : vector<1x8x256xf32> to vector<8x256xf32>
    %298 = arith.mulf %295, %297 : vector<8x256xf32>
    %299 = arith.addf %292, %298 : vector<8x256xf32>
    %c0_204 = arith.constant 0 : index
    %c0_205 = arith.constant 0 : index
    %c18_206 = arith.constant 18 : index
    %300 = vector.load %arg1[%c0_204, %c0_205, %c18_206] : memref<1x8x384xbf16, #tpu.memory_space<vmem>>, vector<1x8x256xbf16>
    %301 = vector.shape_cast %300 : vector<1x8x256xbf16> to vector<8x256xbf16>
    %302 = arith.extf %301 : vector<8x256xbf16> to vector<8x256xf32>
    %c43 = arith.constant 43 : index
    %c0_207 = arith.constant 0 : index
    %c0_208 = arith.constant 0 : index
    %303 = vector.load %arg2[%c43, %c0_207, %c0_208] : memref<83x8x256xf32, #tpu.memory_space<vmem>>, vector<1x8x256xf32>
    %304 = vector.shape_cast %303 : vector<1x8x256xf32> to vector<8x256xf32>
    %305 = arith.mulf %302, %304 : vector<8x256xf32>
    %306 = arith.addf %299, %305 : vector<8x256xf32>
    %c0_209 = arith.constant 0 : index
    %c0_210 = arith.constant 0 : index
    %c19_211 = arith.constant 19 : index
    %307 = vector.load %arg1[%c0_209, %c0_210, %c19_211] : memref<1x8x384xbf16, #tpu.memory_space<vmem>>, vector<1x8x256xbf16>
    %308 = vector.shape_cast %307 : vector<1x8x256xbf16> to vector<8x256xbf16>
    %309 = arith.extf %308 : vector<8x256xbf16> to vector<8x256xf32>
    %c44 = arith.constant 44 : index
    %c0_212 = arith.constant 0 : index
    %c0_213 = arith.constant 0 : index
    %310 = vector.load %arg2[%c44, %c0_212, %c0_213] : memref<83x8x256xf32, #tpu.memory_space<vmem>>, vector<1x8x256xf32>
    %311 = vector.shape_cast %310 : vector<1x8x256xf32> to vector<8x256xf32>
    %312 = arith.mulf %309, %311 : vector<8x256xf32>
    %313 = arith.addf %306, %312 : vector<8x256xf32>
    %c0_214 = arith.constant 0 : index
    %c0_215 = arith.constant 0 : index
    %c20_216 = arith.constant 20 : index
    %314 = vector.load %arg1[%c0_214, %c0_215, %c20_216] : memref<1x8x384xbf16, #tpu.memory_space<vmem>>, vector<1x8x256xbf16>
    %315 = vector.shape_cast %314 : vector<1x8x256xbf16> to vector<8x256xbf16>
    %316 = arith.extf %315 : vector<8x256xbf16> to vector<8x256xf32>
    %c45 = arith.constant 45 : index
    %c0_217 = arith.constant 0 : index
    %c0_218 = arith.constant 0 : index
    %317 = vector.load %arg2[%c45, %c0_217, %c0_218] : memref<83x8x256xf32, #tpu.memory_space<vmem>>, vector<1x8x256xf32>
    %318 = vector.shape_cast %317 : vector<1x8x256xf32> to vector<8x256xf32>
    %319 = arith.mulf %316, %318 : vector<8x256xf32>
    %320 = arith.addf %313, %319 : vector<8x256xf32>
    %c0_219 = arith.constant 0 : index
    %c0_220 = arith.constant 0 : index
    %c21_221 = arith.constant 21 : index
    %321 = vector.load %arg1[%c0_219, %c0_220, %c21_221] : memref<1x8x384xbf16, #tpu.memory_space<vmem>>, vector<1x8x256xbf16>
    %322 = vector.shape_cast %321 : vector<1x8x256xbf16> to vector<8x256xbf16>
    %323 = arith.extf %322 : vector<8x256xbf16> to vector<8x256xf32>
    %c46 = arith.constant 46 : index
    %c0_222 = arith.constant 0 : index
    %c0_223 = arith.constant 0 : index
    %324 = vector.load %arg2[%c46, %c0_222, %c0_223] : memref<83x8x256xf32, #tpu.memory_space<vmem>>, vector<1x8x256xf32>
    %325 = vector.shape_cast %324 : vector<1x8x256xf32> to vector<8x256xf32>
    %326 = arith.mulf %323, %325 : vector<8x256xf32>
    %327 = arith.addf %320, %326 : vector<8x256xf32>
    %c0_224 = arith.constant 0 : index
    %c0_225 = arith.constant 0 : index
    %c22_226 = arith.constant 22 : index
    %328 = vector.load %arg1[%c0_224, %c0_225, %c22_226] : memref<1x8x384xbf16, #tpu.memory_space<vmem>>, vector<1x8x256xbf16>
    %329 = vector.shape_cast %328 : vector<1x8x256xbf16> to vector<8x256xbf16>
    %330 = arith.extf %329 : vector<8x256xbf16> to vector<8x256xf32>
    %c47 = arith.constant 47 : index
    %c0_227 = arith.constant 0 : index
    %c0_228 = arith.constant 0 : index
    %331 = vector.load %arg2[%c47, %c0_227, %c0_228] : memref<83x8x256xf32, #tpu.memory_space<vmem>>, vector<1x8x256xf32>
    %332 = vector.shape_cast %331 : vector<1x8x256xf32> to vector<8x256xf32>
    %333 = arith.mulf %330, %332 : vector<8x256xf32>
    %334 = arith.addf %327, %333 : vector<8x256xf32>
    %c0_229 = arith.constant 0 : index
    %c0_230 = arith.constant 0 : index
    %c32_231 = arith.constant 32 : index
    %335 = vector.load %arg1[%c0_229, %c0_230, %c32_231] : memref<1x8x384xbf16, #tpu.memory_space<vmem>>, vector<1x8x256xbf16>
    %336 = vector.shape_cast %335 : vector<1x8x256xbf16> to vector<8x256xbf16>
    %337 = arith.extf %336 : vector<8x256xbf16> to vector<8x256xf32>
    %c48 = arith.constant 48 : index
    %c0_232 = arith.constant 0 : index
    %c0_233 = arith.constant 0 : index
    %338 = vector.load %arg2[%c48, %c0_232, %c0_233] : memref<83x8x256xf32, #tpu.memory_space<vmem>>, vector<1x8x256xf32>
    %339 = vector.shape_cast %338 : vector<1x8x256xf32> to vector<8x256xf32>
    %340 = arith.mulf %337, %339 : vector<8x256xf32>
    %341 = arith.addf %334, %340 : vector<8x256xf32>
    %c0_234 = arith.constant 0 : index
    %c0_235 = arith.constant 0 : index
    %c33_236 = arith.constant 33 : index
    %342 = vector.load %arg1[%c0_234, %c0_235, %c33_236] : memref<1x8x384xbf16, #tpu.memory_space<vmem>>, vector<1x8x256xbf16>
    %343 = vector.shape_cast %342 : vector<1x8x256xbf16> to vector<8x256xbf16>
    %344 = arith.extf %343 : vector<8x256xbf16> to vector<8x256xf32>
    %c49_237 = arith.constant 49 : index
    %c0_238 = arith.constant 0 : index
    %c0_239 = arith.constant 0 : index
    %345 = vector.load %arg2[%c49_237, %c0_238, %c0_239] : memref<83x8x256xf32, #tpu.memory_space<vmem>>, vector<1x8x256xf32>
    %346 = vector.shape_cast %345 : vector<1x8x256xf32> to vector<8x256xf32>
    %347 = arith.mulf %344, %346 : vector<8x256xf32>
    %348 = arith.addf %341, %347 : vector<8x256xf32>
    %c0_240 = arith.constant 0 : index
    %c0_241 = arith.constant 0 : index
    %c34_242 = arith.constant 34 : index
    %349 = vector.load %arg1[%c0_240, %c0_241, %c34_242] : memref<1x8x384xbf16, #tpu.memory_space<vmem>>, vector<1x8x256xbf16>
    %350 = vector.shape_cast %349 : vector<1x8x256xbf16> to vector<8x256xbf16>
    %351 = arith.extf %350 : vector<8x256xbf16> to vector<8x256xf32>
    %c50_243 = arith.constant 50 : index
    %c0_244 = arith.constant 0 : index
    %c0_245 = arith.constant 0 : index
    %352 = vector.load %arg2[%c50_243, %c0_244, %c0_245] : memref<83x8x256xf32, #tpu.memory_space<vmem>>, vector<1x8x256xf32>
    %353 = vector.shape_cast %352 : vector<1x8x256xf32> to vector<8x256xf32>
    %354 = arith.mulf %351, %353 : vector<8x256xf32>
    %355 = arith.addf %348, %354 : vector<8x256xf32>
    %c0_246 = arith.constant 0 : index
    %c0_247 = arith.constant 0 : index
    %c35_248 = arith.constant 35 : index
    %356 = vector.load %arg1[%c0_246, %c0_247, %c35_248] : memref<1x8x384xbf16, #tpu.memory_space<vmem>>, vector<1x8x256xbf16>
    %357 = vector.shape_cast %356 : vector<1x8x256xbf16> to vector<8x256xbf16>
    %358 = arith.extf %357 : vector<8x256xbf16> to vector<8x256xf32>
    %c51_249 = arith.constant 51 : index
    %c0_250 = arith.constant 0 : index
    %c0_251 = arith.constant 0 : index
    %359 = vector.load %arg2[%c51_249, %c0_250, %c0_251] : memref<83x8x256xf32, #tpu.memory_space<vmem>>, vector<1x8x256xf32>
    %360 = vector.shape_cast %359 : vector<1x8x256xf32> to vector<8x256xf32>
    %361 = arith.mulf %358, %360 : vector<8x256xf32>
    %362 = arith.addf %355, %361 : vector<8x256xf32>
    %c0_252 = arith.constant 0 : index
    %c0_253 = arith.constant 0 : index
    %c36_254 = arith.constant 36 : index
    %363 = vector.load %arg1[%c0_252, %c0_253, %c36_254] : memref<1x8x384xbf16, #tpu.memory_space<vmem>>, vector<1x8x256xbf16>
    %364 = vector.shape_cast %363 : vector<1x8x256xbf16> to vector<8x256xbf16>
    %365 = arith.extf %364 : vector<8x256xbf16> to vector<8x256xf32>
    %c52_255 = arith.constant 52 : index
    %c0_256 = arith.constant 0 : index
    %c0_257 = arith.constant 0 : index
    %366 = vector.load %arg2[%c52_255, %c0_256, %c0_257] : memref<83x8x256xf32, #tpu.memory_space<vmem>>, vector<1x8x256xf32>
    %367 = vector.shape_cast %366 : vector<1x8x256xf32> to vector<8x256xf32>
    %368 = arith.mulf %365, %367 : vector<8x256xf32>
    %369 = arith.addf %362, %368 : vector<8x256xf32>
    %c0_258 = arith.constant 0 : index
    %c0_259 = arith.constant 0 : index
    %c37_260 = arith.constant 37 : index
    %370 = vector.load %arg1[%c0_258, %c0_259, %c37_260] : memref<1x8x384xbf16, #tpu.memory_space<vmem>>, vector<1x8x256xbf16>
    %371 = vector.shape_cast %370 : vector<1x8x256xbf16> to vector<8x256xbf16>
    %372 = arith.extf %371 : vector<8x256xbf16> to vector<8x256xf32>
    %c53_261 = arith.constant 53 : index
    %c0_262 = arith.constant 0 : index
    %c0_263 = arith.constant 0 : index
    %373 = vector.load %arg2[%c53_261, %c0_262, %c0_263] : memref<83x8x256xf32, #tpu.memory_space<vmem>>, vector<1x8x256xf32>
    %374 = vector.shape_cast %373 : vector<1x8x256xf32> to vector<8x256xf32>
    %375 = arith.mulf %372, %374 : vector<8x256xf32>
    %376 = arith.addf %369, %375 : vector<8x256xf32>
    %c0_264 = arith.constant 0 : index
    %c0_265 = arith.constant 0 : index
    %c38_266 = arith.constant 38 : index
    %377 = vector.load %arg1[%c0_264, %c0_265, %c38_266] : memref<1x8x384xbf16, #tpu.memory_space<vmem>>, vector<1x8x256xbf16>
    %378 = vector.shape_cast %377 : vector<1x8x256xbf16> to vector<8x256xbf16>
    %379 = arith.extf %378 : vector<8x256xbf16> to vector<8x256xf32>
    %c54 = arith.constant 54 : index
    %c0_267 = arith.constant 0 : index
    %c0_268 = arith.constant 0 : index
    %380 = vector.load %arg2[%c54, %c0_267, %c0_268] : memref<83x8x256xf32, #tpu.memory_space<vmem>>, vector<1x8x256xf32>
    %381 = vector.shape_cast %380 : vector<1x8x256xf32> to vector<8x256xf32>
    %382 = arith.mulf %379, %381 : vector<8x256xf32>
    %383 = arith.addf %376, %382 : vector<8x256xf32>
    %c0_269 = arith.constant 0 : index
    %c0_270 = arith.constant 0 : index
    %c48_271 = arith.constant 48 : index
    %384 = vector.load %arg1[%c0_269, %c0_270, %c48_271] : memref<1x8x384xbf16, #tpu.memory_space<vmem>>, vector<1x8x256xbf16>
    %385 = vector.shape_cast %384 : vector<1x8x256xbf16> to vector<8x256xbf16>
    %386 = arith.extf %385 : vector<8x256xbf16> to vector<8x256xf32>
    %c55 = arith.constant 55 : index
    %c0_272 = arith.constant 0 : index
    %c0_273 = arith.constant 0 : index
    %387 = vector.load %arg2[%c55, %c0_272, %c0_273] : memref<83x8x256xf32, #tpu.memory_space<vmem>>, vector<1x8x256xf32>
    %388 = vector.shape_cast %387 : vector<1x8x256xf32> to vector<8x256xf32>
    %389 = arith.mulf %386, %388 : vector<8x256xf32>
    %390 = arith.addf %383, %389 : vector<8x256xf32>
    %c0_274 = arith.constant 0 : index
    %c0_275 = arith.constant 0 : index
    %c49_276 = arith.constant 49 : index
    %391 = vector.load %arg1[%c0_274, %c0_275, %c49_276] : memref<1x8x384xbf16, #tpu.memory_space<vmem>>, vector<1x8x256xbf16>
    %392 = vector.shape_cast %391 : vector<1x8x256xbf16> to vector<8x256xbf16>
    %393 = arith.extf %392 : vector<8x256xbf16> to vector<8x256xf32>
    %c56 = arith.constant 56 : index
    %c0_277 = arith.constant 0 : index
    %c0_278 = arith.constant 0 : index
    %394 = vector.load %arg2[%c56, %c0_277, %c0_278] : memref<83x8x256xf32, #tpu.memory_space<vmem>>, vector<1x8x256xf32>
    %395 = vector.shape_cast %394 : vector<1x8x256xf32> to vector<8x256xf32>
    %396 = arith.mulf %393, %395 : vector<8x256xf32>
    %397 = arith.addf %390, %396 : vector<8x256xf32>
    %c0_279 = arith.constant 0 : index
    %c0_280 = arith.constant 0 : index
    %c50_281 = arith.constant 50 : index
    %398 = vector.load %arg1[%c0_279, %c0_280, %c50_281] : memref<1x8x384xbf16, #tpu.memory_space<vmem>>, vector<1x8x256xbf16>
    %399 = vector.shape_cast %398 : vector<1x8x256xbf16> to vector<8x256xbf16>
    %400 = arith.extf %399 : vector<8x256xbf16> to vector<8x256xf32>
    %c57 = arith.constant 57 : index
    %c0_282 = arith.constant 0 : index
    %c0_283 = arith.constant 0 : index
    %401 = vector.load %arg2[%c57, %c0_282, %c0_283] : memref<83x8x256xf32, #tpu.memory_space<vmem>>, vector<1x8x256xf32>
    %402 = vector.shape_cast %401 : vector<1x8x256xf32> to vector<8x256xf32>
    %403 = arith.mulf %400, %402 : vector<8x256xf32>
    %404 = arith.addf %397, %403 : vector<8x256xf32>
    %c0_284 = arith.constant 0 : index
    %c0_285 = arith.constant 0 : index
    %c51_286 = arith.constant 51 : index
    %405 = vector.load %arg1[%c0_284, %c0_285, %c51_286] : memref<1x8x384xbf16, #tpu.memory_space<vmem>>, vector<1x8x256xbf16>
    %406 = vector.shape_cast %405 : vector<1x8x256xbf16> to vector<8x256xbf16>
    %407 = arith.extf %406 : vector<8x256xbf16> to vector<8x256xf32>
    %c58 = arith.constant 58 : index
    %c0_287 = arith.constant 0 : index
    %c0_288 = arith.constant 0 : index
    %408 = vector.load %arg2[%c58, %c0_287, %c0_288] : memref<83x8x256xf32, #tpu.memory_space<vmem>>, vector<1x8x256xf32>
    %409 = vector.shape_cast %408 : vector<1x8x256xf32> to vector<8x256xf32>
    %410 = arith.mulf %407, %409 : vector<8x256xf32>
    %411 = arith.addf %404, %410 : vector<8x256xf32>
    %c0_289 = arith.constant 0 : index
    %c0_290 = arith.constant 0 : index
    %c52_291 = arith.constant 52 : index
    %412 = vector.load %arg1[%c0_289, %c0_290, %c52_291] : memref<1x8x384xbf16, #tpu.memory_space<vmem>>, vector<1x8x256xbf16>
    %413 = vector.shape_cast %412 : vector<1x8x256xbf16> to vector<8x256xbf16>
    %414 = arith.extf %413 : vector<8x256xbf16> to vector<8x256xf32>
    %c59 = arith.constant 59 : index
    %c0_292 = arith.constant 0 : index
    %c0_293 = arith.constant 0 : index
    %415 = vector.load %arg2[%c59, %c0_292, %c0_293] : memref<83x8x256xf32, #tpu.memory_space<vmem>>, vector<1x8x256xf32>
    %416 = vector.shape_cast %415 : vector<1x8x256xf32> to vector<8x256xf32>
    %417 = arith.mulf %414, %416 : vector<8x256xf32>
    %418 = arith.addf %411, %417 : vector<8x256xf32>
    %c0_294 = arith.constant 0 : index
    %c0_295 = arith.constant 0 : index
    %c53_296 = arith.constant 53 : index
    %419 = vector.load %arg1[%c0_294, %c0_295, %c53_296] : memref<1x8x384xbf16, #tpu.memory_space<vmem>>, vector<1x8x256xbf16>
    %420 = vector.shape_cast %419 : vector<1x8x256xbf16> to vector<8x256xbf16>
    %421 = arith.extf %420 : vector<8x256xbf16> to vector<8x256xf32>
    %c60 = arith.constant 60 : index
    %c0_297 = arith.constant 0 : index
    %c0_298 = arith.constant 0 : index
    %422 = vector.load %arg2[%c60, %c0_297, %c0_298] : memref<83x8x256xf32, #tpu.memory_space<vmem>>, vector<1x8x256xf32>
    %423 = vector.shape_cast %422 : vector<1x8x256xf32> to vector<8x256xf32>
    %424 = arith.mulf %421, %423 : vector<8x256xf32>
    %425 = arith.addf %418, %424 : vector<8x256xf32>
    %c0_299 = arith.constant 0 : index
    %c0_300 = arith.constant 0 : index
    %c54_301 = arith.constant 54 : index
    %426 = vector.load %arg1[%c0_299, %c0_300, %c54_301] : memref<1x8x384xbf16, #tpu.memory_space<vmem>>, vector<1x8x256xbf16>
    %427 = vector.shape_cast %426 : vector<1x8x256xbf16> to vector<8x256xbf16>
    %428 = arith.extf %427 : vector<8x256xbf16> to vector<8x256xf32>
    %c61 = arith.constant 61 : index
    %c0_302 = arith.constant 0 : index
    %c0_303 = arith.constant 0 : index
    %429 = vector.load %arg2[%c61, %c0_302, %c0_303] : memref<83x8x256xf32, #tpu.memory_space<vmem>>, vector<1x8x256xf32>
    %430 = vector.shape_cast %429 : vector<1x8x256xf32> to vector<8x256xf32>
    %431 = arith.mulf %428, %430 : vector<8x256xf32>
    %432 = arith.addf %425, %431 : vector<8x256xf32>
    %c0_304 = arith.constant 0 : index
    %c0_305 = arith.constant 0 : index
    %c64 = arith.constant 64 : index
    %433 = vector.load %arg1[%c0_304, %c0_305, %c64] : memref<1x8x384xbf16, #tpu.memory_space<vmem>>, vector<1x8x256xbf16>
    %434 = vector.shape_cast %433 : vector<1x8x256xbf16> to vector<8x256xbf16>
    %435 = arith.extf %434 : vector<8x256xbf16> to vector<8x256xf32>
    %c62 = arith.constant 62 : index
    %c0_306 = arith.constant 0 : index
    %c0_307 = arith.constant 0 : index
    %436 = vector.load %arg2[%c62, %c0_306, %c0_307] : memref<83x8x256xf32, #tpu.memory_space<vmem>>, vector<1x8x256xf32>
    %437 = vector.shape_cast %436 : vector<1x8x256xf32> to vector<8x256xf32>
    %438 = arith.mulf %435, %437 : vector<8x256xf32>
    %439 = arith.addf %432, %438 : vector<8x256xf32>
    %c0_308 = arith.constant 0 : index
    %c0_309 = arith.constant 0 : index
    %c65_310 = arith.constant 65 : index
    %440 = vector.load %arg1[%c0_308, %c0_309, %c65_310] : memref<1x8x384xbf16, #tpu.memory_space<vmem>>, vector<1x8x256xbf16>
    %441 = vector.shape_cast %440 : vector<1x8x256xbf16> to vector<8x256xbf16>
    %442 = arith.extf %441 : vector<8x256xbf16> to vector<8x256xf32>
    %c63 = arith.constant 63 : index
    %c0_311 = arith.constant 0 : index
    %c0_312 = arith.constant 0 : index
    %443 = vector.load %arg2[%c63, %c0_311, %c0_312] : memref<83x8x256xf32, #tpu.memory_space<vmem>>, vector<1x8x256xf32>
    %444 = vector.shape_cast %443 : vector<1x8x256xf32> to vector<8x256xf32>
    %445 = arith.mulf %442, %444 : vector<8x256xf32>
    %446 = arith.addf %439, %445 : vector<8x256xf32>
    %c0_313 = arith.constant 0 : index
    %c0_314 = arith.constant 0 : index
    %c66_315 = arith.constant 66 : index
    %447 = vector.load %arg1[%c0_313, %c0_314, %c66_315] : memref<1x8x384xbf16, #tpu.memory_space<vmem>>, vector<1x8x256xbf16>
    %448 = vector.shape_cast %447 : vector<1x8x256xbf16> to vector<8x256xbf16>
    %449 = arith.extf %448 : vector<8x256xbf16> to vector<8x256xf32>
    %c64_316 = arith.constant 64 : index
    %c0_317 = arith.constant 0 : index
    %c0_318 = arith.constant 0 : index
    %450 = vector.load %arg2[%c64_316, %c0_317, %c0_318] : memref<83x8x256xf32, #tpu.memory_space<vmem>>, vector<1x8x256xf32>
    %451 = vector.shape_cast %450 : vector<1x8x256xf32> to vector<8x256xf32>
    %452 = arith.mulf %449, %451 : vector<8x256xf32>
    %453 = arith.addf %446, %452 : vector<8x256xf32>
    %c0_319 = arith.constant 0 : index
    %c0_320 = arith.constant 0 : index
    %c67_321 = arith.constant 67 : index
    %454 = vector.load %arg1[%c0_319, %c0_320, %c67_321] : memref<1x8x384xbf16, #tpu.memory_space<vmem>>, vector<1x8x256xbf16>
    %455 = vector.shape_cast %454 : vector<1x8x256xbf16> to vector<8x256xbf16>
    %456 = arith.extf %455 : vector<8x256xbf16> to vector<8x256xf32>
    %c65_322 = arith.constant 65 : index
    %c0_323 = arith.constant 0 : index
    %c0_324 = arith.constant 0 : index
    %457 = vector.load %arg2[%c65_322, %c0_323, %c0_324] : memref<83x8x256xf32, #tpu.memory_space<vmem>>, vector<1x8x256xf32>
    %458 = vector.shape_cast %457 : vector<1x8x256xf32> to vector<8x256xf32>
    %459 = arith.mulf %456, %458 : vector<8x256xf32>
    %460 = arith.addf %453, %459 : vector<8x256xf32>
    %c0_325 = arith.constant 0 : index
    %c0_326 = arith.constant 0 : index
    %c68_327 = arith.constant 68 : index
    %461 = vector.load %arg1[%c0_325, %c0_326, %c68_327] : memref<1x8x384xbf16, #tpu.memory_space<vmem>>, vector<1x8x256xbf16>
    %462 = vector.shape_cast %461 : vector<1x8x256xbf16> to vector<8x256xbf16>
    %463 = arith.extf %462 : vector<8x256xbf16> to vector<8x256xf32>
    %c66_328 = arith.constant 66 : index
    %c0_329 = arith.constant 0 : index
    %c0_330 = arith.constant 0 : index
    %464 = vector.load %arg2[%c66_328, %c0_329, %c0_330] : memref<83x8x256xf32, #tpu.memory_space<vmem>>, vector<1x8x256xf32>
    %465 = vector.shape_cast %464 : vector<1x8x256xf32> to vector<8x256xf32>
    %466 = arith.mulf %463, %465 : vector<8x256xf32>
    %467 = arith.addf %460, %466 : vector<8x256xf32>
    %c0_331 = arith.constant 0 : index
    %c0_332 = arith.constant 0 : index
    %c69_333 = arith.constant 69 : index
    %468 = vector.load %arg1[%c0_331, %c0_332, %c69_333] : memref<1x8x384xbf16, #tpu.memory_space<vmem>>, vector<1x8x256xbf16>
    %469 = vector.shape_cast %468 : vector<1x8x256xbf16> to vector<8x256xbf16>
    %470 = arith.extf %469 : vector<8x256xbf16> to vector<8x256xf32>
    %c67_334 = arith.constant 67 : index
    %c0_335 = arith.constant 0 : index
    %c0_336 = arith.constant 0 : index
    %471 = vector.load %arg2[%c67_334, %c0_335, %c0_336] : memref<83x8x256xf32, #tpu.memory_space<vmem>>, vector<1x8x256xf32>
    %472 = vector.shape_cast %471 : vector<1x8x256xf32> to vector<8x256xf32>
    %473 = arith.mulf %470, %472 : vector<8x256xf32>
    %474 = arith.addf %467, %473 : vector<8x256xf32>
    %c0_337 = arith.constant 0 : index
    %c0_338 = arith.constant 0 : index
    %c70 = arith.constant 70 : index
    %475 = vector.load %arg1[%c0_337, %c0_338, %c70] : memref<1x8x384xbf16, #tpu.memory_space<vmem>>, vector<1x8x256xbf16>
    %476 = vector.shape_cast %475 : vector<1x8x256xbf16> to vector<8x256xbf16>
    %477 = arith.extf %476 : vector<8x256xbf16> to vector<8x256xf32>
    %c68_339 = arith.constant 68 : index
    %c0_340 = arith.constant 0 : index
    %c0_341 = arith.constant 0 : index
    %478 = vector.load %arg2[%c68_339, %c0_340, %c0_341] : memref<83x8x256xf32, #tpu.memory_space<vmem>>, vector<1x8x256xf32>
    %479 = vector.shape_cast %478 : vector<1x8x256xf32> to vector<8x256xf32>
    %480 = arith.mulf %477, %479 : vector<8x256xf32>
    %481 = arith.addf %474, %480 : vector<8x256xf32>
    %c0_342 = arith.constant 0 : index
    %c0_343 = arith.constant 0 : index
    %c80 = arith.constant 80 : index
    %482 = vector.load %arg1[%c0_342, %c0_343, %c80] : memref<1x8x384xbf16, #tpu.memory_space<vmem>>, vector<1x8x256xbf16>
    %483 = vector.shape_cast %482 : vector<1x8x256xbf16> to vector<8x256xbf16>
    %484 = arith.extf %483 : vector<8x256xbf16> to vector<8x256xf32>
    %c69_344 = arith.constant 69 : index
    %c0_345 = arith.constant 0 : index
    %c0_346 = arith.constant 0 : index
    %485 = vector.load %arg2[%c69_344, %c0_345, %c0_346] : memref<83x8x256xf32, #tpu.memory_space<vmem>>, vector<1x8x256xf32>
    %486 = vector.shape_cast %485 : vector<1x8x256xf32> to vector<8x256xf32>
    %487 = arith.mulf %484, %486 : vector<8x256xf32>
    %488 = arith.addf %481, %487 : vector<8x256xf32>
    %c0_347 = arith.constant 0 : index
    %c0_348 = arith.constant 0 : index
    %c81_349 = arith.constant 81 : index
    %489 = vector.load %arg1[%c0_347, %c0_348, %c81_349] : memref<1x8x384xbf16, #tpu.memory_space<vmem>>, vector<1x8x256xbf16>
    %490 = vector.shape_cast %489 : vector<1x8x256xbf16> to vector<8x256xbf16>
    %491 = arith.extf %490 : vector<8x256xbf16> to vector<8x256xf32>
    %c70_350 = arith.constant 70 : index
    %c0_351 = arith.constant 0 : index
    %c0_352 = arith.constant 0 : index
    %492 = vector.load %arg2[%c70_350, %c0_351, %c0_352] : memref<83x8x256xf32, #tpu.memory_space<vmem>>, vector<1x8x256xf32>
    %493 = vector.shape_cast %492 : vector<1x8x256xf32> to vector<8x256xf32>
    %494 = arith.mulf %491, %493 : vector<8x256xf32>
    %495 = arith.addf %488, %494 : vector<8x256xf32>
    %c0_353 = arith.constant 0 : index
    %c0_354 = arith.constant 0 : index
    %c82_355 = arith.constant 82 : index
    %496 = vector.load %arg1[%c0_353, %c0_354, %c82_355] : memref<1x8x384xbf16, #tpu.memory_space<vmem>>, vector<1x8x256xbf16>
    %497 = vector.shape_cast %496 : vector<1x8x256xbf16> to vector<8x256xbf16>
    %498 = arith.extf %497 : vector<8x256xbf16> to vector<8x256xf32>
    %c71 = arith.constant 71 : index
    %c0_356 = arith.constant 0 : index
    %c0_357 = arith.constant 0 : index
    %499 = vector.load %arg2[%c71, %c0_356, %c0_357] : memref<83x8x256xf32, #tpu.memory_space<vmem>>, vector<1x8x256xf32>
    %500 = vector.shape_cast %499 : vector<1x8x256xf32> to vector<8x256xf32>
    %501 = arith.mulf %498, %500 : vector<8x256xf32>
    %502 = arith.addf %495, %501 : vector<8x256xf32>
    %c0_358 = arith.constant 0 : index
    %c0_359 = arith.constant 0 : index
    %c83_360 = arith.constant 83 : index
    %503 = vector.load %arg1[%c0_358, %c0_359, %c83_360] : memref<1x8x384xbf16, #tpu.memory_space<vmem>>, vector<1x8x256xbf16>
    %504 = vector.shape_cast %503 : vector<1x8x256xbf16> to vector<8x256xbf16>
    %505 = arith.extf %504 : vector<8x256xbf16> to vector<8x256xf32>
    %c72 = arith.constant 72 : index
    %c0_361 = arith.constant 0 : index
    %c0_362 = arith.constant 0 : index
    %506 = vector.load %arg2[%c72, %c0_361, %c0_362] : memref<83x8x256xf32, #tpu.memory_space<vmem>>, vector<1x8x256xf32>
    %507 = vector.shape_cast %506 : vector<1x8x256xf32> to vector<8x256xf32>
    %508 = arith.mulf %505, %507 : vector<8x256xf32>
    %509 = arith.addf %502, %508 : vector<8x256xf32>
    %c0_363 = arith.constant 0 : index
    %c0_364 = arith.constant 0 : index
    %c84_365 = arith.constant 84 : index
    %510 = vector.load %arg1[%c0_363, %c0_364, %c84_365] : memref<1x8x384xbf16, #tpu.memory_space<vmem>>, vector<1x8x256xbf16>
    %511 = vector.shape_cast %510 : vector<1x8x256xbf16> to vector<8x256xbf16>
    %512 = arith.extf %511 : vector<8x256xbf16> to vector<8x256xf32>
    %c73 = arith.constant 73 : index
    %c0_366 = arith.constant 0 : index
    %c0_367 = arith.constant 0 : index
    %513 = vector.load %arg2[%c73, %c0_366, %c0_367] : memref<83x8x256xf32, #tpu.memory_space<vmem>>, vector<1x8x256xf32>
    %514 = vector.shape_cast %513 : vector<1x8x256xf32> to vector<8x256xf32>
    %515 = arith.mulf %512, %514 : vector<8x256xf32>
    %516 = arith.addf %509, %515 : vector<8x256xf32>
    %c0_368 = arith.constant 0 : index
    %c0_369 = arith.constant 0 : index
    %c85_370 = arith.constant 85 : index
    %517 = vector.load %arg1[%c0_368, %c0_369, %c85_370] : memref<1x8x384xbf16, #tpu.memory_space<vmem>>, vector<1x8x256xbf16>
    %518 = vector.shape_cast %517 : vector<1x8x256xbf16> to vector<8x256xbf16>
    %519 = arith.extf %518 : vector<8x256xbf16> to vector<8x256xf32>
    %c74 = arith.constant 74 : index
    %c0_371 = arith.constant 0 : index
    %c0_372 = arith.constant 0 : index
    %520 = vector.load %arg2[%c74, %c0_371, %c0_372] : memref<83x8x256xf32, #tpu.memory_space<vmem>>, vector<1x8x256xf32>
    %521 = vector.shape_cast %520 : vector<1x8x256xf32> to vector<8x256xf32>
    %522 = arith.mulf %519, %521 : vector<8x256xf32>
    %523 = arith.addf %516, %522 : vector<8x256xf32>
    %c0_373 = arith.constant 0 : index
    %c0_374 = arith.constant 0 : index
    %c86 = arith.constant 86 : index
    %524 = vector.load %arg1[%c0_373, %c0_374, %c86] : memref<1x8x384xbf16, #tpu.memory_space<vmem>>, vector<1x8x256xbf16>
    %525 = vector.shape_cast %524 : vector<1x8x256xbf16> to vector<8x256xbf16>
    %526 = arith.extf %525 : vector<8x256xbf16> to vector<8x256xf32>
    %c75 = arith.constant 75 : index
    %c0_375 = arith.constant 0 : index
    %c0_376 = arith.constant 0 : index
    %527 = vector.load %arg2[%c75, %c0_375, %c0_376] : memref<83x8x256xf32, #tpu.memory_space<vmem>>, vector<1x8x256xf32>
    %528 = vector.shape_cast %527 : vector<1x8x256xf32> to vector<8x256xf32>
    %529 = arith.mulf %526, %528 : vector<8x256xf32>
    %530 = arith.addf %523, %529 : vector<8x256xf32>
    %c0_377 = arith.constant 0 : index
    %c0_378 = arith.constant 0 : index
    %c96 = arith.constant 96 : index
    %531 = vector.load %arg1[%c0_377, %c0_378, %c96] : memref<1x8x384xbf16, #tpu.memory_space<vmem>>, vector<1x8x256xbf16>
    %532 = vector.shape_cast %531 : vector<1x8x256xbf16> to vector<8x256xbf16>
    %533 = arith.extf %532 : vector<8x256xbf16> to vector<8x256xf32>
    %c76 = arith.constant 76 : index
    %c0_379 = arith.constant 0 : index
    %c0_380 = arith.constant 0 : index
    %534 = vector.load %arg2[%c76, %c0_379, %c0_380] : memref<83x8x256xf32, #tpu.memory_space<vmem>>, vector<1x8x256xf32>
    %535 = vector.shape_cast %534 : vector<1x8x256xf32> to vector<8x256xf32>
    %536 = arith.mulf %533, %535 : vector<8x256xf32>
    %537 = arith.addf %530, %536 : vector<8x256xf32>
    %c0_381 = arith.constant 0 : index
    %c0_382 = arith.constant 0 : index
    %c97 = arith.constant 97 : index
    %538 = vector.load %arg1[%c0_381, %c0_382, %c97] : memref<1x8x384xbf16, #tpu.memory_space<vmem>>, vector<1x8x256xbf16>
    %539 = vector.shape_cast %538 : vector<1x8x256xbf16> to vector<8x256xbf16>
    %540 = arith.extf %539 : vector<8x256xbf16> to vector<8x256xf32>
    %c77 = arith.constant 77 : index
    %c0_383 = arith.constant 0 : index
    %c0_384 = arith.constant 0 : index
    %541 = vector.load %arg2[%c77, %c0_383, %c0_384] : memref<83x8x256xf32, #tpu.memory_space<vmem>>, vector<1x8x256xf32>
    %542 = vector.shape_cast %541 : vector<1x8x256xf32> to vector<8x256xf32>
    %543 = arith.mulf %540, %542 : vector<8x256xf32>
    %544 = arith.addf %537, %543 : vector<8x256xf32>
    %c0_385 = arith.constant 0 : index
    %c0_386 = arith.constant 0 : index
    %c98 = arith.constant 98 : index
    %545 = vector.load %arg1[%c0_385, %c0_386, %c98] : memref<1x8x384xbf16, #tpu.memory_space<vmem>>, vector<1x8x256xbf16>
    %546 = vector.shape_cast %545 : vector<1x8x256xbf16> to vector<8x256xbf16>
    %547 = arith.extf %546 : vector<8x256xbf16> to vector<8x256xf32>
    %c78 = arith.constant 78 : index
    %c0_387 = arith.constant 0 : index
    %c0_388 = arith.constant 0 : index
    %548 = vector.load %arg2[%c78, %c0_387, %c0_388] : memref<83x8x256xf32, #tpu.memory_space<vmem>>, vector<1x8x256xf32>
    %549 = vector.shape_cast %548 : vector<1x8x256xf32> to vector<8x256xf32>
    %550 = arith.mulf %547, %549 : vector<8x256xf32>
    %551 = arith.addf %544, %550 : vector<8x256xf32>
    %c0_389 = arith.constant 0 : index
    %c0_390 = arith.constant 0 : index
    %c99 = arith.constant 99 : index
    %552 = vector.load %arg1[%c0_389, %c0_390, %c99] : memref<1x8x384xbf16, #tpu.memory_space<vmem>>, vector<1x8x256xbf16>
    %553 = vector.shape_cast %552 : vector<1x8x256xbf16> to vector<8x256xbf16>
    %554 = arith.extf %553 : vector<8x256xbf16> to vector<8x256xf32>
    %c79 = arith.constant 79 : index
    %c0_391 = arith.constant 0 : index
    %c0_392 = arith.constant 0 : index
    %555 = vector.load %arg2[%c79, %c0_391, %c0_392] : memref<83x8x256xf32, #tpu.memory_space<vmem>>, vector<1x8x256xf32>
    %556 = vector.shape_cast %555 : vector<1x8x256xf32> to vector<8x256xf32>
    %557 = arith.mulf %554, %556 : vector<8x256xf32>
    %558 = arith.addf %551, %557 : vector<8x256xf32>
    %c0_393 = arith.constant 0 : index
    %c0_394 = arith.constant 0 : index
    %c100 = arith.constant 100 : index
    %559 = vector.load %arg1[%c0_393, %c0_394, %c100] : memref<1x8x384xbf16, #tpu.memory_space<vmem>>, vector<1x8x256xbf16>
    %560 = vector.shape_cast %559 : vector<1x8x256xbf16> to vector<8x256xbf16>
    %561 = arith.extf %560 : vector<8x256xbf16> to vector<8x256xf32>
    %c80_395 = arith.constant 80 : index
    %c0_396 = arith.constant 0 : index
    %c0_397 = arith.constant 0 : index
    %562 = vector.load %arg2[%c80_395, %c0_396, %c0_397] : memref<83x8x256xf32, #tpu.memory_space<vmem>>, vector<1x8x256xf32>
    %563 = vector.shape_cast %562 : vector<1x8x256xf32> to vector<8x256xf32>
    %564 = arith.mulf %561, %563 : vector<8x256xf32>
    %565 = arith.addf %558, %564 : vector<8x256xf32>
    %c0_398 = arith.constant 0 : index
    %c0_399 = arith.constant 0 : index
    %c101 = arith.constant 101 : index
    %566 = vector.load %arg1[%c0_398, %c0_399, %c101] : memref<1x8x384xbf16, #tpu.memory_space<vmem>>, vector<1x8x256xbf16>
    %567 = vector.shape_cast %566 : vector<1x8x256xbf16> to vector<8x256xbf16>
    %568 = arith.extf %567 : vector<8x256xbf16> to vector<8x256xf32>
    %c81_400 = arith.constant 81 : index
    %c0_401 = arith.constant 0 : index
    %c0_402 = arith.constant 0 : index
    %569 = vector.load %arg2[%c81_400, %c0_401, %c0_402] : memref<83x8x256xf32, #tpu.memory_space<vmem>>, vector<1x8x256xf32>
    %570 = vector.shape_cast %569 : vector<1x8x256xf32> to vector<8x256xf32>
    %571 = arith.mulf %568, %570 : vector<8x256xf32>
    %572 = arith.addf %565, %571 : vector<8x256xf32>
    %c0_403 = arith.constant 0 : index
    %c0_404 = arith.constant 0 : index
    %c102 = arith.constant 102 : index
    %573 = vector.load %arg1[%c0_403, %c0_404, %c102] : memref<1x8x384xbf16, #tpu.memory_space<vmem>>, vector<1x8x256xbf16>
    %574 = vector.shape_cast %573 : vector<1x8x256xbf16> to vector<8x256xbf16>
    %575 = arith.extf %574 : vector<8x256xbf16> to vector<8x256xf32>
    %c82_405 = arith.constant 82 : index
    %c0_406 = arith.constant 0 : index
    %c0_407 = arith.constant 0 : index
    %576 = vector.load %arg2[%c82_405, %c0_406, %c0_407] : memref<83x8x256xf32, #tpu.memory_space<vmem>>, vector<1x8x256xf32>
    %577 = vector.shape_cast %576 : vector<1x8x256xf32> to vector<8x256xf32>
    %578 = arith.mulf %575, %577 : vector<8x256xf32>
    %579 = arith.addf %572, %578 : vector<8x256xf32>
    %c16_408 = arith.constant 16 : index
    %c0_409 = arith.constant 0 : index
    %580 = vector.load %arg6[%c16_408, %c0_409] : memref<24x256xf32, #tpu.memory_space<vmem>>, vector<8x256xf32>
    tpu.vector_store %arg6[%c16_408, %c0_409], %579 {strides = array<i32>} : memref<24x256xf32, #tpu.memory_space<vmem>>, vector<8x256xf32>,
    %c0_410 = arith.constant 0 : index
    %c0_411 = arith.constant 0 : index
    %581 = vector.load %arg3[%c0_410, %c0_411] : memref<8x24xf32, #tpu.memory_space<vmem>>, vector<8x24xf32>
    %c0_412 = arith.constant 0 : index
    %c0_413 = arith.constant 0 : index
    %582 = vector.load %arg6[%c0_412, %c0_413] : memref<24x256xf32, #tpu.memory_space<vmem>>, vector<24x256xf32>
    %cst = arith.constant dense<0.000000e+00> : vector<8x256xf32>
    %583 = tpu.matmul %581, %582, %cst {dimension_numbers = #tpu.dot_dimension_numbers<[1], [0], [0], [1], [0, 0, 1, 1], [], []>} : vector<8x24xf32>, vector<24x256xf32>, vector<8x256xf32> -> vector<8x256xf32>
    %c0_414 = arith.constant 0 : index
    %c0_415 = arith.constant 0 : index
    %584 = vector.load %arg4[%c0_414, %c0_415] : memref<8x1xf32, #tpu.memory_space<vmem>>, vector<8x1xf32>
    %585 = vector.broadcast %584 : vector<8x1xf32> to vector<8x256xf32>
    %586 = arith.addf %583, %585 : vector<8x256xf32>
    %c0_416 = arith.constant 0 : index
    %c0_417 = arith.constant 0 : index
    %c0_418 = arith.constant 0 : index
    %587 = vector.load %arg5[%c0_416, %c0_417, %c0_418] : memref<1x8x256xf32, #tpu.memory_space<vmem>>, vector<1x8x256xf32>
    %588 = vector.shape_cast %587 : vector<1x8x256xf32> to vector<8x256xf32>
    %589 = vector.shape_cast %586 : vector<8x256xf32> to vector<1x8x256xf32>
    tpu.vector_store %arg5[%c0_416, %c0_417, %c0_418], %589 {strides = array<i32>} : memref<1x8x256xf32, #tpu.memory_space<vmem>>, vector<1x8x256xf32>,
    return
  }
  func.func @transform_0(%arg0: i32) -> (i32, i32, i32) {
    %c0_i32 = arith.constant 0 : i32
    %c0_i32_0 = arith.constant 0 : i32
    %c0_i32_1 = arith.constant 0 : i32
    return %arg0, %c0_i32, %c0_i32_0 : i32, i32, i32
  }
  func.func @transform_1(%arg0: i32) -> (i32, i32, i32) {
    %c0_i32 = arith.constant 0 : i32
    %c0_i32_0 = arith.constant 0 : i32
    %c0_i32_1 = arith.constant 0 : i32
    %c0_i32_2 = arith.constant 0 : i32
    return %c0_i32, %c0_i32_0, %c0_i32_1 : i32, i32, i32
  }
  func.func @transform_2(%arg0: i32) -> (i32, i32) {
    %c0_i32 = arith.constant 0 : i32
    %c0_i32_0 = arith.constant 0 : i32
    %c0_i32_1 = arith.constant 0 : i32
    return %c0_i32, %c0_i32_0 : i32, i32
  }
  func.func @transform_3(%arg0: i32) -> (i32, i32) {
    %c0_i32 = arith.constant 0 : i32
    %c0_i32_0 = arith.constant 0 : i32
    %c0_i32_1 = arith.constant 0 : i32
    return %c0_i32, %c0_i32_0 : i32, i32
  }
  func.func @transform_4(%arg0: i32) -> (i32, i32, i32) {
    %c0_i32 = arith.constant 0 : i32
    %c0_i32_0 = arith.constant 0 : i32
    %c0_i32_1 = arith.constant 0 : i32
    return %arg0, %c0_i32, %c0_i32_0 : i32, i32, i32
  }
}

</mosaic_0001>

<bundles_post_ra>
// kernel: local_feature_extraction_2d.1
= control target key start
LH: loop header
LB: loop body
LE: loop exit
PB: predicated region body
PF: predicated region fallthrough
CT: control target
= control target key end

     0   :  { %s3483_s15 = smov 0   ;;  %s5688_s0 = inlined_call_operand.vmem [shape: bf16[2,8,384], index: 0, kind: input, shape index: {}]   ;;  %s5689_s1 = inlined_call_operand.vmem [shape: f32[83,8,256], index: 1, kind: input, shape index: {}]   ;;  %s5690_s2 = inlined_call_operand.vmem [shape: f32[8,24], index: 2, kind: input, shape index: {}]   ;;  %s5691_s3 = inlined_call_operand.vmem [shape: f32[8,1], index: 3, kind: input, shape index: {}]   ;;  %s5692_s4 = inlined_call_operand.vmem [shape: f32[2,8,256], index: 4, kind: output, shape index: {}]  }
   0x1   :  { %5852 = sst [smem:[#allocation26_spill]] %s5688_s0 }
   0x2 LB: > { %5853 = sst [smem:[#allocation3_spill]] %s3363_s15  ;;  %s3064_s16 = sadd.s32 4294967295, %s3363_s15   ;;  %s3363_s15 = sphi %s3483_s15, %s14_s15  }
   0x3   : > { %p3068_p0 = scmp.ge.s32.totalorder %s3363_s15, 1  ;;  %p162_p1 = scmp.lt.s32.totalorder %s3363_s15, 3 }
   0x5   : > { %p163_p2 = pnand %p3068_p0, %p162_p1 }
   0x7   : > { %166 = sbr.rel (%p163_p2) target bundleno = 4530 (0x11b2), region = 36 }
   0xe   : > { %v3072_v0 = vld [vmem:[%s5689_s1 + $0x10] sm:$0xff]  ;;  %v203_v1 = vld [vmem:[%s5689_s1] sm:$0xff]  ;;  %s5818_s21 = smov 35   ;;  %s5817_s22 = smov 34   ;;  %v3073_v2 = vld [vmem:[%s5689_s1 + $0x18] sm:$0xff]  ;;  %vm5744_vm0 = vcmask 285696  }
   0xf   : > { %224 = vrot.lane.b32.xlu1 %v3072_v0, %s5818_s21  ;;  %207 = vrot.lane.b32.xlu0 %v203_v1, %s5817_s22  ;;  %v204_v3 = vld [vmem:[%s5689_s1 + $0x8] sm:$0xff]  ;;  %v3074_v4 = vld [vmem:[%s5689_s1 + $0x20] sm:$0xff]  ;;  %s5819_s5 = smov 36   ;;  %s5820_s10 = smov 50   ;;  %vm5743_vm1 = vcmask 293888   ;;  %vm5737_vm2 = vcmask 408576  }
  0x10   : > { %v3075_v5 = vld [vmem:[%s5689_s1 + $0x28] sm:$0xff]  ;;  %v3077_v6 = vld [vmem:[%s5689_s1 + $0x38] sm:$0xff]  ;;  %v3076_v7 = vld [vmem:[%s5689_s1 + $0x30] sm:$0xff]  ;;  %s5821_s17 = smov 51   ;;  %s5822_s24 = smov 52   ;;  %vm5739_vm3 = vcmask 416768  }
  0x11   : > { %v3078_v8 = vld [vmem:[%s5689_s1 + $0x40] sm:$0xff]  ;;  %v3079_v9 = vld [vmem:[%s5689_s1 + $0x48] sm:$0xff]  ;;  %v3081_v10 = vld [vmem:[%s5689_s1 + $0x58] sm:$0xff]  ;;  %s5809_s29 = smov 66   ;;  %s5807_s9 = smov 67   ;;  %vm5725_vm4 = vcmask 424960  }
  0x12   : > { %v3080_v11 = vld [vmem:[%s5689_s1 + $0x50] sm:$0xff]  ;;  %v3082_v12 = vld [vmem:[%s5689_s1 + $0x60] sm:$0xff]  ;;  %v3083_v13 = vld [vmem:[%s5689_s1 + $0x68] sm:$0xff]  ;;  %s5767_s18 = smov 68   ;;  %s5701_s26 = smov 17   ;;  %vm403_vm5 = vcmask 539648  }
  0x13   : > { %226 = vrot.lane.b32.xlu1 %v3073_v2, %s5818_s21  ;;  %209 = vrot.lane.b32.xlu0 %v204_v3, %s5817_s22  ;;  %v3085_v14 = vld [vmem:[%s5689_s1 + $0x78] sm:$0xff]  ;;  %v3084_v15 = vld [vmem:[%s5689_s1 + $0x70] sm:$0xff]  ;;  %s5697_s7 = smov 18   ;;  %s5695_s14 = smov 19   ;;  %vm5754_vm6 = vcmask 547840   ;;  %vm5780_vm7 = vcmask 556032  }
  0x14   : > { %v3086_v16 = vld [vmem:[%s5689_s1 + $0x80] sm:$0xff]  ;;  %v3087_v17 = vld [vmem:[%s5689_s1 + $0x88] sm:$0xff]  ;;  %v3089_v18 = vld [vmem:[%s5689_s1 + $0x98] sm:$0xff]  ;;  %s5693_s27 = smov 20   ;;  %s5699_s6 = smov 21   ;;  %vm545_vm8 = vcmask 146432  }
  0x15   : > { %v3088_v19 = vld [vmem:[%s5689_s1 + $0x90] sm:$0xff]  ;;  %v3091_v20 = vld [vmem:[%s5689_s1 + $0xa8] sm:$0xff]  ;;  %v3090_v21 = vld [vmem:[%s5689_s1 + $0xa0] sm:$0xff]  ;;  %p188_p3 = scmp.lt.s32.totalorder %s3064_s16, 1  ;;  %s5854_s0 = sld [smem:[#allocation26_spill]]  ;;  %vm579_vm9 = vcmask 154624  }
  0x16   : > { %v3092_v22 = vld [vmem:[%s5689_s1 + $0xb0] sm:$0xff]  ;;  %v3093_v23 = vld [vmem:[%s5689_s1 + $0xb8] sm:$0xff]  ;;  %v3095_v24 = vld [vmem:[%s5689_s1 + $0xc8] sm:$0xff]  ;;  %s3379_s19 = smov 127   ;;  %s3380_s20 = smov 126   ;;  %vm613_vm10 = vcmask 162816  }
  0x17   : > { %259 = vrot.lane.b32.xlu1 %v3074_v4, %s5819_s5  ;;  %261 = vrot.lane.b32.xlu0 %v3075_v5, %s5819_s5  ;;  %v3094_v25 = vld [vmem:[%s5689_s1 + $0xc0] sm:$0xff]  ;;  %v3096_v26 = vld [vmem:[%s5689_s1 + $0xd0] sm:$0xff]  ;;  %s6043_s16 = smov (!%p188_p3, %s3064_s16), 1  ;;  %s5707_s23 = smov 112   ;;  %vm648_vm11 = vcmask 171008   ;;  %vm683_vm12 = vcmask 269312  }
  0x18   : > { %s3244_s8 = smul.u32 12, %s6043_s16  ;;  %s5805_s25 = smov 111   ;;  %vm5745_vm13 = vcmask 277504   ;;  %vm5742_vm14 = vcmask 302080   ;;  %vm5741_vm15 = vcmask 400384  }
  0x19   : > { %s5705_s28 = smov 110   ;;  %s5722_s30 = smov 96  }
  0x1a   : > { %s5752_s11 = smov 94   ;;  %s5703_s12 = smov 125  }
  0x1b   : > { %296 = vrot.lane.b32.xlu1 %v3077_v6, %s5820_s10  ;;  %294 = vrot.lane.b32.xlu0 %v3076_v7, %s5820_s10  ;;  %s3609_s13 = scalar_lea.vmem %s5854_s0, %s3244_s8  ;;  %s5720_s8 = smov 95  }
  0x1c   : > { %v3612_v27 = vld [vmem:[%s3609_s13] sm:$0xff]  ;;  %v199_v29 = vld [vmem:[%s3609_s13 + $0x8] sm:$0xf]  ;;  %s5918_s0 = smov 83   ;;  %s5920_s15 = smov 32  }
  0x1d   : > { %v3615_v28 = vunpack.c.l.bf16 %v3612_v27  ;;  %v3624_v33 = vunpack.c.l.bf16 %v199_v29  ;;  %v515_v3 = vld [vmem:[%s3609_s13 + $0x8] sm:$0xf] }
  0x1e   : > { %v3697_v6 = vunpack.c.l.bf16 %v515_v3 }
  0x1f   : > { %329 = vrot.lane.b32.xlu1 %v3078_v8, %s5821_s17  ;;  %331 = vrot.lane.b32.xlu0 %v3079_v9, %s5821_s17 }
  0x23   : > { %366 = vrot.lane.b32.xlu1 %v3081_v10, %s5822_s24  ;;  %364 = vrot.lane.b32.xlu0 %v3080_v11, %s5822_s24 }
  0x27   : > { %399 = vrot.lane.b32.xlu1 %v3082_v12, %s5809_s29  ;;  %401 = vrot.lane.b32.xlu0 %v3083_v13, %s5809_s29  ;;  %v3706_v13 = vunpack.c.h.bf16 %v3612_v27 }
  0x2b   : > { %436 = vrot.lane.b32.xlu1 %v3085_v14, %s5807_s9  ;;  %434 = vrot.lane.b32.xlu0 %v3084_v15, %s5807_s9 }
  0x2f   : > { %469 = vrot.lane.b32.xlu1 %v3086_v16, %s5767_s18  ;;  %471 = vrot.lane.b32.xlu0 %v3087_v17, %s5767_s18 }
  0x33   : > { %526 = vrot.lane.b32.xlu1 %v3089_v18, %s5701_s26  ;;  %524 = vrot.lane.b32.xlu0 %v3088_v19, %s5701_s26  ;;  %s5709_s26 = smov 109  }
  0x37   : > { %543 = vrot.lane.b32.xlu1 %v3091_v20, %s5697_s7  ;;  %541 = vrot.lane.b32.xlu0 %v3090_v21, %s5697_s7  ;;  %s3388_s7 = smov 124  }
  0x3b   : > { %575 = vrot.lane.b32.xlu1 %v3092_v22, %s5695_s14  ;;  %577 = vrot.lane.b32.xlu0 %v3093_v23, %s5695_s14  ;;  %s5815_s14 = smov 53  }
  0x3f   : > { %611 = vrot.lane.b32.xlu1 %v3095_v24, %s5693_s27  ;;  %609 = vrot.lane.b32.xlu0 %v3094_v25, %s5693_s27  ;;  %s5823_s27 = smov 49  }
  0x43   : > { %644 = vrot.lane.b32.xlu1 %v3096_v26, %s5699_s6 }
  0x81   : > { %v3618_v30 = vpop.permute.xlu1 %224  ;;  %v3620_v31 = vpop.permute.xlu0 %207 }
  0x82   : > { %v233_v32 = vmul.f32 %v3618_v30, %v3615_v28 }
  0x84   : > { %239 = vrot.lane.b32.xlu0 %v233_v32, %s3379_s19 }
  0x85   : > { %v3627_v34 = vpop.permute.xlu1 %226  ;;  %v3629_v35 = vpop.permute.xlu0 %209 }
  0x86   : > { %v235_v36 = vmul.f32 %v3627_v34, %v3624_v33  ;;  %v229_v16 = vsel %vm5744_vm0, %v3618_v30, %v3627_v34 }
  0x87   : > { %v234_v19 = vmul.f32 %v3706_v13, %v229_v16 }
  0x88   : > { %243 = vrot.lane.b32.xlu0 %v235_v36, %s3379_s19 }
  0x89   : > { %v3634_v37 = vpop.permute.xlu1 %259  ;;  %v3636_v38 = vpop.permute.xlu0 %261 }
  0x8a   : > { %v268_v39 = vmul.f32 %v3634_v37, %v3615_v28  ;;  %v270_v42 = vmul.f32 %v3636_v38, %v3624_v33  ;;  %v264_v20 = vsel %vm5743_vm1, %v3634_v37, %v3636_v38 }
  0x8b   : > { %v269_v23 = vmul.f32 %v3706_v13, %v264_v20 }
  0x8c   : > { %274 = vrot.lane.b32.xlu1 %v268_v39, %s3380_s20 }
  0x8d   : > { %v3641_v40 = vpop.permute.xlu1 %296  ;;  %v3643_v41 = vpop.permute.xlu0 %294 }
  0x8e   : > { %v303_v43 = vmul.f32 %v3643_v41, %v3615_v28  ;;  %v305_v44 = vmul.f32 %v3641_v40, %v3624_v33  ;;  %v299_v21 = vsel %vm5737_vm2, %v3643_v41, %v3641_v40 }
  0x8f   : > { %v304_v22 = vmul.f32 %v3706_v13, %v299_v21 }
  0x90   : > { %278 = vrot.lane.b32.xlu1 %v270_v42, %s3380_s20  ;;  %309 = vrot.lane.b32.xlu0 %v303_v43, %s5707_s23 }
  0x91   : > { %v3653_v45 = vpop.permute.xlu1 %329  ;;  %v3655_v46 = vpop.permute.xlu0 %331 }
  0x92   : > { %v338_v47 = vmul.f32 %v3653_v45, %v3615_v28  ;;  %v340_v50 = vmul.f32 %v3655_v46, %v3624_v33  ;;  %v334_v24 = vsel %vm5739_vm3, %v3653_v45, %v3655_v46  ;;  %v3097_v46 = vld [vmem:[%s5689_s1 + $0xd8] sm:$0xff] }
  0x93   : > { %v339_v27 = vmul.f32 %v3706_v13, %v334_v24 }
  0x94   : > { %344 = vrot.lane.b32.xlu1 %v338_v47, %s5805_s25  ;;  %313 = vrot.lane.b32.xlu0 %v305_v44, %s5707_s23 }
  0x95   : > { %v3661_v48 = vpop.permute.xlu1 %366  ;;  %v3663_v49 = vpop.permute.xlu0 %364 }
  0x96   : > { %v373_v51 = vmul.f32 %v3663_v49, %v3615_v28  ;;  %v375_v52 = vmul.f32 %v3661_v48, %v3624_v33  ;;  %v369_v25 = vsel %vm5725_vm4, %v3663_v49, %v3661_v48 }
  0x97   : > { %v374_v26 = vmul.f32 %v3706_v13, %v369_v25 }
  0x98   : > { %348 = vrot.lane.b32.xlu1 %v340_v50, %s5805_s25  ;;  %379 = vrot.lane.b32.xlu0 %v373_v51, %s5705_s28 }
  0x99   : > { %v3673_v53 = vpop.permute.xlu1 %399  ;;  %v3675_v54 = vpop.permute.xlu0 %401 }
  0x9a   : > { %v408_v55 = vmul.f32 %v3673_v53, %v3615_v28  ;;  %v410_v58 = vmul.f32 %v3675_v54, %v3624_v33  ;;  %v404_v29 = vsel %vm403_vm5, %v3673_v53, %v3675_v54 }
  0x9b   : > { %v409_v34 = vmul.f32 %v3706_v13, %v404_v29 }
  0x9c   : > { %414 = vrot.lane.b32.xlu1 %v408_v55, %s5722_s30  ;;  %383 = vrot.lane.b32.xlu0 %v375_v52, %s5705_s28 }
  0x9d   : > { %v437_v56 = vpop.permute.xlu1 %436  ;;  %v435_v57 = vpop.permute.xlu0 %434 }
  0x9e   : > { %v443_v59 = vmul.f32 %v435_v57, %v3615_v28  ;;  %v445_v60 = vmul.f32 %v437_v56, %v3624_v33  ;;  %v439_v30 = vsel %vm5754_vm6, %v435_v57, %v437_v56 }
  0x9f   : > { %v444_v32 = vmul.f32 %v3706_v13, %v439_v30 }
  0xa0   : > { %418 = vrot.lane.b32.xlu1 %v410_v58, %s5722_s30  ;;  %449 = vrot.lane.b32.xlu0 %v443_v59, %s5720_s8 }
  0xa1   : > { %v470_v61 = vpop.permute.xlu1 %469  ;;  %v472_v62 = vpop.permute.xlu0 %471 }
  0xa2   : > { %v478_v63 = vmul.f32 %v470_v61, %v3615_v28  ;;  %v480_v2 = vmul.f32 %v472_v62, %v3624_v33  ;;  %v474_v36 = vsel %vm5780_vm7, %v470_v61, %v472_v62 }
  0xa3   : > { %v479_v39 = vmul.f32 %v3706_v13, %v474_v36 }
  0xa4   : > { %484 = vrot.lane.b32.xlu1 %v478_v63, %s5752_s11  ;;  %453 = vrot.lane.b32.xlu0 %v445_v60, %s5720_s8 }
  0xa5   : > { %v3690_v0 = vpop.permute.xlu1 %526  ;;  %v3692_v1 = vpop.permute.xlu0 %524 }
  0xa8   : > { %488 = vrot.lane.b32.xlu1 %v480_v2, %s5752_s11 }
  0xa9   : > { %v544_v4 = vpop.permute.xlu1 %543  ;;  %v542_v5 = vpop.permute.xlu0 %541 }
  0xaa   : > { %v550_v7 = vmul.f32 %v542_v5, %v3615_v28  ;;  %v552_v8 = vmul.f32 %v544_v4, %v3697_v6  ;;  %v546_v37 = vsel %vm545_vm8, %v542_v5, %v544_v4 }
  0xab   : > { %v551_v38 = vmul.f32 %v546_v37, %v3706_v13 }
  0xac   : > { %556 = vrot.lane.b32.xlu0 %v550_v7, %s3379_s19  ;;  %v3099_v7 = vld [vmem:[%s5689_s1 + $0xe8] sm:$0xff] }
  0xad   : > { %v576_v9 = vpop.permute.xlu1 %575  ;;  %v578_v10 = vpop.permute.xlu0 %577 }
  0xae   : > { %v584_v11 = vmul.f32 %v576_v9, %v3615_v28  ;;  %v586_v14 = vmul.f32 %v578_v10, %v3697_v6  ;;  %v580_v40 = vsel %vm579_vm9, %v576_v9, %v578_v10 }
  0xaf   : > { %v585_v43 = vmul.f32 %v580_v40, %v3706_v13  ;;  %v3101_v40 = vld [vmem:[%s5689_s1 + $0xf8] sm:$0xff] }
  0xb0   : > { %590 = vrot.lane.b32.xlu1 %v584_v11, %s3380_s20  ;;  %560 = vrot.lane.b32.xlu0 %v552_v8, %s3379_s19  ;;  %v3098_v8 = vld [vmem:[%s5689_s1 + $0xe0] sm:$0xff] }
  0xb1   : > { %v610_v12 = vpop.permute.xlu0 %609  ;;  %v612_v17 = vpop.permute.xlu1 %611 }
  0xb2   : > { %v618_v15 = vmul.f32 %v610_v12, %v3615_v28  ;;  %v620_v18 = vmul.f32 %v612_v17, %v3697_v6  ;;  %v614_v41 = vsel %vm613_vm10, %v610_v12, %v612_v17 }
  0xb3   : > { %v619_v42 = vmul.f32 %v614_v41, %v3706_v13 }
  0xb4   : > { %594 = vrot.lane.b32.xlu1 %v586_v14, %s3380_s20  ;;  %624 = vrot.lane.b32.xlu0 %v618_v15, %s5703_s12 }
  0xb5   : > { %v645_v44 = vpop.permute.xlu1 %644 }
  0xb6   : > { %v653_v45 = vmul.f32 %v645_v44, %v3615_v28 }
  0xb8   : > { %241 = vrot.lane.b32.xlu1 %v234_v19, %s3379_s19  ;;  %628 = vrot.lane.b32.xlu0 %v620_v18, %s5703_s12 }
  0xbc   : > { %311 = vrot.lane.b32.xlu1 %v304_v22, %s5707_s23  ;;  %276 = vrot.lane.b32.xlu0 %v269_v23, %s3380_s20 }
  0xc0   : > { %381 = vrot.lane.b32.xlu1 %v374_v26, %s5705_s28  ;;  %346 = vrot.lane.b32.xlu0 %v339_v27, %s5805_s25 }
  0xc4   : > { %451 = vrot.lane.b32.xlu1 %v444_v32, %s5720_s8  ;;  %416 = vrot.lane.b32.xlu0 %v409_v34, %s5722_s30 }
  0xc8   : > { %558 = vrot.lane.b32.xlu1 %v551_v38, %s3379_s19  ;;  %486 = vrot.lane.b32.xlu0 %v479_v39, %s5752_s11  ;;  %v3100_v39 = vld [vmem:[%s5689_s1 + $0xf0] sm:$0xff] }
  0xcc   : > { %626 = vrot.lane.b32.xlu1 %v619_v42, %s5703_s12  ;;  %592 = vrot.lane.b32.xlu0 %v585_v43, %s3380_s20  ;;  %s5828_s12 = smov 33  }
  0xd0   : > { %646 = vrot.lane.b32.xlu0 %v3097_v46, %s5699_s6  ;;  %659 = vrot.lane.b32.xlu1 %v653_v45, %s3388_s7  ;;  %s5762_s6 = smov 81  }
  0xf6   : > { %v3765_v47 = vpop.permute.xlu0 %239 }
  0xfa   : > { %v3767_v48 = vpop.permute.xlu0 %243 }
  0xfe   : > { %v3812_v9 = vpop.permute.xlu1 %274 }
 0x102   : > { %v3769_v49 = vpop.permute.xlu0 %309  ;;  %v3814_v10 = vpop.permute.xlu1 %278 }
 0x106   : > { %v3771_v50 = vpop.permute.xlu0 %313  ;;  %v3816_v11 = vpop.permute.xlu1 %344 }
 0x10a   : > { %v3773_v51 = vpop.permute.xlu0 %379  ;;  %v3818_v12 = vpop.permute.xlu1 %348 }
 0x10e   : > { %v3775_v52 = vpop.permute.xlu0 %383  ;;  %v3820_v14 = vpop.permute.xlu1 %414 }
 0x112   : > { %v3777_v53 = vpop.permute.xlu0 %449  ;;  %v3822_v15 = vpop.permute.xlu1 %418 }
 0x116   : > { %v3779_v54 = vpop.permute.xlu0 %453  ;;  %v3824_v16 = vpop.permute.xlu1 %484 }
 0x11a   : > { %v3826_v17 = vpop.permute.xlu1 %488 }
 0x11e   : > { %v3781_v55 = vpop.permute.xlu0 %556 }
 0x122   : > { %v3783_v56 = vpop.permute.xlu0 %560  ;;  %v3828_v18 = vpop.permute.xlu1 %590 }
 0x126   : > { %v3785_v57 = vpop.permute.xlu0 %624  ;;  %v3830_v19 = vpop.permute.xlu1 %594 }
 0x12a   : > { %v3787_v58 = vpop.permute.xlu0 %628  ;;  %v3832_v20 = vpop.permute.xlu1 %241 }
 0x12e   : > { %v3789_v59 = vpop.permute.xlu0 %276  ;;  %v3834_v21 = vpop.permute.xlu1 %311 }
 0x132   : > { %v3791_v60 = vpop.permute.xlu0 %346  ;;  %v3836_v22 = vpop.permute.xlu1 %381 }
 0x136   : > { %v3793_v61 = vpop.permute.xlu0 %416  ;;  %v3838_v23 = vpop.permute.xlu1 %451 }
 0x13a   : > { %v3795_v62 = vpop.permute.xlu0 %486  ;;  %v3840_v24 = vpop.permute.xlu1 %558 }
 0x13e   : > { %v3797_v63 = vpop.permute.xlu0 %592  ;;  %v3842_v25 = vpop.permute.xlu1 %626 }
 0x142   : > { %v647_v2 = vpop.permute.xlu0 %646  ;;  %v3844_v26 = vpop.permute.xlu1 %659 }
 0x143   : > { %v649_v3 = vsel %vm648_vm11, %v645_v44, %v647_v2  ;;  %v655_v4 = vmul.f32 %v647_v2, %v3697_v6 }
 0x144   : > { %v654_v5 = vmul.f32 %v649_v3, %v3706_v13 }
 0x145   : > { %663 = vrot.lane.b32.xlu1 %v655_v4, %s3388_s7 }
 0x146   : > { %661 = vrot.lane.b32.xlu0 %v654_v5, %s3388_s7  ;;  %v3103_v5 = vld [vmem:[%s5689_s1 + $0x108] sm:$0xff] }
 0x149   : > { %681 = vrot.lane.b32.xlu1 %v3099_v7, %s5828_s12  ;;  %v3102_v7 = vld [vmem:[%s5689_s1 + $0x100] sm:$0xff] }
 0x14a   : > { %679 = vrot.lane.b32.xlu0 %v3098_v8, %s5828_s12 }
 0x1b7   : > { %v3846_v27 = vpop.permute.xlu1 %663 }
 0x1b8   : > { %v3848_v29 = vpop.permute.xlu0 %661 }
 0x1bb   : > { %v682_v30 = vpop.permute.xlu1 %681 }
 0x1bc   : > { %v680_v32 = vpop.permute.xlu0 %679  ;;  %v690_v38 = vmul.f32 %v682_v30, %v3697_v6 }
 0x1bd   : > { %v684_v34 = vsel %vm683_vm12, %v680_v32, %v682_v30  ;;  %v688_v36 = vmul.f32 %v680_v32, %v3615_v28 }
 0x1be   : > { %v689_v37 = vmul.f32 %v684_v34, %v3706_v13 }
 0x1bf   : > { %694 = vrot.lane.b32.xlu0 %v688_v36, %s5707_s23 }
 0x1c0   : > { %696 = vrot.lane.b32.xlu1 %v689_v37, %s5707_s23 }
 0x1c3   : > { %698 = vrot.lane.b32.xlu0 %v690_v38, %s5707_s23  ;;  %s5711_s23 = smov 37  }
 0x1c4   : > { %713 = vrot.lane.b32.xlu1 %v3100_v39, %s5817_s22 }
 0x1c7   : > { %715 = vrot.lane.b32.xlu0 %v3101_v40, %s5817_s22 }
 0x231   : > { %v3865_v41 = vpop.permute.xlu0 %694 }
 0x232   : > { %v3867_v42 = vpop.permute.xlu1 %696 }
 0x235   : > { %v3869_v43 = vpop.permute.xlu0 %698 }
 0x236   : > { %v714_v44 = vpop.permute.xlu1 %713 }
 0x237   : > { %v721_v45 = vmul.f32 %v714_v44, %v3615_v28 }
 0x239   : > { %v716_v46 = vpop.permute.xlu0 %715  ;;  %727 = vrot.lane.b32.xlu1 %v721_v45, %s5805_s25  ;;  %v3105_v45 = vld [vmem:[%s5689_s1 + $0x118] sm:$0xff] }
 0x23a   : > { %v717_v2 = vsel %vm5745_vm13, %v714_v44, %v716_v46  ;;  %v723_v3 = vmul.f32 %v716_v46, %v3697_v6  ;;  %v3104_v44 = vld [vmem:[%s5689_s1 + $0x110] sm:$0xff] }
 0x23b   : > { %v722_v4 = vmul.f32 %v717_v2, %v3706_v13 }
 0x23d   : > { %731 = vrot.lane.b32.xlu1 %v723_v3, %s5805_s25  ;;  %729 = vrot.lane.b32.xlu0 %v722_v4, %s5805_s25 }
 0x241   : > { %748 = vrot.lane.b32.xlu1 %v3103_v5, %s5818_s21  ;;  %746 = vrot.lane.b32.xlu0 %v3102_v7, %s5818_s21 }
 0x2ab   : > { %v3886_v8 = vpop.permute.xlu1 %727 }
 0x2af   : > { %v3888_v30 = vpop.permute.xlu1 %731  ;;  %v3890_v32 = vpop.permute.xlu0 %729 }
 0x2b3   : > { %v749_v34 = vpop.permute.xlu1 %748  ;;  %v747_v36 = vpop.permute.xlu0 %746 }
 0x2b4   : > { %v750_v37 = vsel %vm5744_vm0, %v747_v36, %v749_v34  ;;  %v754_v38 = vmul.f32 %v747_v36, %v3615_v28  ;;  %v756_v40 = vmul.f32 %v749_v34, %v3697_v6  ;;  %vm5788_vm0 = vcmask 777216  }
 0x2b5   : > { %v755_v39 = vmul.f32 %v750_v37, %v3706_v13 }
 0x2b6   : > { %760 = vrot.lane.b32.xlu0 %v754_v38, %s5705_s28  ;;  %v3107_v38 = vld [vmem:[%s5689_s1 + $0x128] sm:$0xff] }
 0x2b7   : > { %762 = vrot.lane.b32.xlu1 %v755_v39, %s5705_s28  ;;  %v3106_v39 = vld [vmem:[%s5689_s1 + $0x120] sm:$0xff] }
 0x2ba   : > { %764 = vrot.lane.b32.xlu0 %v756_v40, %s5705_s28  ;;  %s5729_s28 = smov 108  }
 0x2bb   : > { %779 = vrot.lane.b32.xlu1 %v3104_v44, %s5819_s5 }
 0x2be   : > { %781 = vrot.lane.b32.xlu0 %v3105_v45, %s5819_s5 }
 0x328   : > { %v3907_v46 = vpop.permute.xlu0 %760 }
 0x329   : > { %v3909_v2 = vpop.permute.xlu1 %762 }
 0x32c   : > { %v3911_v3 = vpop.permute.xlu0 %764 }
 0x32d   : > { %v780_v4 = vpop.permute.xlu1 %779 }
 0x32e   : > { %v787_v5 = vmul.f32 %v780_v4, %v3615_v28 }
 0x330   : > { %v782_v7 = vpop.permute.xlu0 %781  ;;  %793 = vrot.lane.b32.xlu1 %v787_v5, %s5709_s26 }
 0x331   : > { %v783_v34 = vsel %vm5743_vm1, %v780_v4, %v782_v7  ;;  %v789_v36 = vmul.f32 %v782_v7, %v3697_v6  ;;  %vm5787_vm1 = vcmask 785408  }
 0x332   : > { %v788_v37 = vmul.f32 %v783_v34, %v3706_v13 }
 0x334   : > { %797 = vrot.lane.b32.xlu1 %v789_v36, %s5709_s26  ;;  %795 = vrot.lane.b32.xlu0 %v788_v37, %s5709_s26  ;;  %s5734_s26 = smov 92  }
 0x338   : > { %815 = vrot.lane.b32.xlu1 %v3107_v38, %s5711_s23  ;;  %813 = vrot.lane.b32.xlu0 %v3106_v39, %s5711_s23  ;;  %v3108_v38 = vld [vmem:[%s5689_s1 + $0x130] sm:$0xff]  ;;  %v3109_v39 = vld [vmem:[%s5689_s1 + $0x138] sm:$0xff]  ;;  %s5727_s23 = smov 93  }
 0x3a2   : > { %v3928_v40 = vpop.permute.xlu1 %793 }
 0x3a3   : > { %5855 = vst [vmem:[#allocation4_spill] sm:$0xff] %v3928_v40 }
 0x3a6   : > { %v3930_v44 = vpop.permute.xlu1 %797  ;;  %v3932_v45 = vpop.permute.xlu0 %795 }
 0x3a7   : > { %5856 = vst [vmem:[#allocation5_spill] sm:$0xff] %v3930_v44 }
 0x3aa   : > { %v816_v4 = vpop.permute.xlu1 %815  ;;  %v814_v5 = vpop.permute.xlu0 %813 }
 0x3ab   : > { %v818_v7 = vsel %vm5742_vm14, %v814_v5, %v816_v4  ;;  %v822_v34 = vmul.f32 %v814_v5, %v3615_v28  ;;  %v824_v37 = vmul.f32 %v816_v4, %v3697_v6  ;;  %vm385_vm14 = vcmask 900096  }
 0x3ac   : > { %v823_v36 = vmul.f32 %v818_v7, %v3706_v13 }
 0x3ad   : > { %828 = vrot.lane.b32.xlu0 %v822_v34, %s5729_s28 }
 0x3ae   : > { %830 = vrot.lane.b32.xlu1 %v823_v36, %s5729_s28 }
 0x3b1   : > { %832 = vrot.lane.b32.xlu0 %v824_v37, %s5729_s28  ;;  %s5811_s28 = smov 65  }
 0x3b2   : > { %848 = vrot.lane.b32.xlu1 %v3108_v38, %s5823_s27 }
 0x3b5   : > { %850 = vrot.lane.b32.xlu0 %v3109_v39, %s5823_s27  ;;  %v3111_v39 = vld [vmem:[%s5689_s1 + $0x148] sm:$0xff] }
 0x41f   : > { %v3949_v5 = vpop.permute.xlu0 %828 }
 0x420   : > { %5857 = vst [vmem:[#allocation6_spill] sm:$0xff] %v3949_v5  ;;  %v3951_v7 = vpop.permute.xlu1 %830 }
 0x421   : > { %5858 = vst [vmem:[#allocation7_spill] sm:$0xff] %v3951_v7 }
 0x423   : > { %v3953_v4 = vpop.permute.xlu0 %832 }
 0x424   : > { %5859 = vst [vmem:[#allocation8_spill] sm:$0xff] %v3953_v4  ;;  %v849_v34 = vpop.permute.xlu1 %848  ;;  %v3110_v4 = vld [vmem:[%s5689_s1 + $0x140] sm:$0xff] }
 0x425   : > { %v857_v36 = vmul.f32 %v849_v34, %v3615_v28 }
 0x427   : > { %v851_v37 = vpop.permute.xlu0 %850  ;;  %863 = vrot.lane.b32.xlu1 %v857_v36, %s5722_s30 }
 0x428   : > { %v853_v38 = vsel %vm5741_vm15, %v849_v34, %v851_v37  ;;  %v859_v44 = vmul.f32 %v851_v37, %v3697_v6  ;;  %vm350_vm15 = vcmask 908288  }
 0x429   : > { %v858_v40 = vmul.f32 %v853_v38, %v3706_v13 }
 0x42b   : > { %867 = vrot.lane.b32.xlu1 %v859_v44, %s5722_s30  ;;  %865 = vrot.lane.b32.xlu0 %v858_v40, %s5722_s30  ;;  %s5755_s30 = smov 77  }
 0x42f   : > { %884 = vrot.lane.b32.xlu1 %v3111_v39, %s5820_s10  ;;  %882 = vrot.lane.b32.xlu0 %v3110_v4, %s5820_s10  ;;  %v3112_v39 = vld [vmem:[%s5689_s1 + $0x150] sm:$0xff] }
 0x499   : > { %v3970_v34 = vpop.permute.xlu1 %863 }
 0x49a   : > { %5860 = vst [vmem:[#allocation9_spill] sm:$0xff] %v3970_v34 }
 0x49d   : > { %v3972_v36 = vpop.permute.xlu1 %867  ;;  %v3974_v37 = vpop.permute.xlu0 %865 }
 0x49e   : > { %5861 = vst [vmem:[#allocation10_spill] sm:$0xff] %v3972_v36  ;;  %5862 = vst [vmem:[#allocation11_spill] sm:$0xff] %v3974_v37 }
 0x4a1   : > { %v885_v44 = vpop.permute.xlu1 %884  ;;  %v883_v40 = vpop.permute.xlu0 %882 }
 0x4a2   : > { %v886_v38 = vsel %vm5737_vm2, %v883_v40, %v885_v44  ;;  %v890_v5 = vmul.f32 %v883_v40, %v3615_v28  ;;  %v892_v4 = vmul.f32 %v885_v44, %v3697_v6  ;;  %v3113_v40 = vld [vmem:[%s5689_s1 + $0x158] sm:$0xff]  ;;  %vm280_vm2 = vcmask 1031168  }
 0x4a3   : > { %v891_v7 = vmul.f32 %v886_v38, %v3706_v13 }
 0x4a4   : > { %896 = vrot.lane.b32.xlu0 %v890_v5, %s5720_s8 }
 0x4a5   : > { %898 = vrot.lane.b32.xlu1 %v891_v7, %s5720_s8 }
 0x4a8   : > { %900 = vrot.lane.b32.xlu0 %v892_v4, %s5720_s8  ;;  %s5772_s8 = smov 83  }
 0x4a9   : > { %915 = vrot.lane.b32.xlu1 %v3112_v39, %s5821_s17 }
 0x4ac   : > { %917 = vrot.lane.b32.xlu0 %v3113_v40, %s5821_s17  ;;  %v3115_v40 = vld [vmem:[%s5689_s1 + $0x168] sm:$0xff] }
 0x516   : > { %v3991_v38 = vpop.permute.xlu0 %896 }
 0x517   : > { %5863 = vst [vmem:[#allocation12_spill] sm:$0xff] %v3991_v38  ;;  %v3993_v5 = vpop.permute.xlu1 %898 }
 0x518   : > { %5864 = vst [vmem:[#allocation13_spill] sm:$0xff] %v3993_v5 }
 0x51a   : > { %v3995_v7 = vpop.permute.xlu0 %900 }
 0x51b   : > { %5865 = vst [vmem:[#allocation14_spill] sm:$0xff] %v3995_v7  ;;  %v916_v44 = vpop.permute.xlu1 %915  ;;  %v3114_v7 = vld [vmem:[%s5689_s1 + $0x160] sm:$0xff] }
 0x51c   : > { %v923_v36 = vmul.f32 %v916_v44, %v3615_v28 }
 0x51e   : > { %v918_v34 = vpop.permute.xlu0 %917  ;;  %929 = vrot.lane.b32.xlu1 %v923_v36, %s5752_s11 }
 0x51f   : > { %v919_v4 = vsel %vm5739_vm3, %v916_v44, %v918_v34  ;;  %v925_v39 = vmul.f32 %v918_v34, %v3697_v6  ;;  %vm5785_vm3 = vcmask 916480  }
 0x520   : > { %v924_v37 = vmul.f32 %v919_v4, %v3706_v13 }
 0x522   : > { %933 = vrot.lane.b32.xlu1 %v925_v39, %s5752_s11  ;;  %931 = vrot.lane.b32.xlu0 %v924_v37, %s5752_s11 }
 0x526   : > { %950 = vrot.lane.b32.xlu1 %v3115_v40, %s5822_s24  ;;  %948 = vrot.lane.b32.xlu0 %v3114_v7, %s5822_s24  ;;  %v3116_v40 = vld [vmem:[%s5689_s1 + $0x170] sm:$0xff] }
 0x590   : > { %v4012_v36 = vpop.permute.xlu1 %929 }
 0x591   : > { %5866 = vst [vmem:[#allocation15_spill] sm:$0xff] %v4012_v36 }
 0x594   : > { %v4014_v34 = vpop.permute.xlu1 %933  ;;  %v4016_v44 = vpop.permute.xlu0 %931 }
 0x595   : > { %5867 = vst [vmem:[#allocation16_spill] sm:$0xff] %v4014_v34  ;;  %5868 = vst [vmem:[#allocation17_spill] sm:$0xff] %v4016_v44 }
 0x598   : > { %v951_v4 = vpop.permute.xlu1 %950  ;;  %v949_v37 = vpop.permute.xlu0 %948 }
 0x599   : > { %v952_v39 = vsel %vm5725_vm4, %v949_v37, %v951_v4  ;;  %v956_v38 = vmul.f32 %v949_v37, %v3615_v28  ;;  %v958_v7 = vmul.f32 %v951_v4, %v3697_v6  ;;  %v3117_v37 = vld [vmem:[%s5689_s1 + $0x178] sm:$0xff]  ;;  %vm5731_vm4 = vcmask 433152  }
 0x59a   : > { %v957_v5 = vmul.f32 %v952_v39, %v3706_v13 }
 0x59b   : > { %962 = vrot.lane.b32.xlu0 %v956_v38, %s5727_s23 }
 0x59c   : > { %964 = vrot.lane.b32.xlu1 %v957_v5, %s5727_s23 }
 0x59f   : > { %966 = vrot.lane.b32.xlu0 %v958_v7, %s5727_s23  ;;  %s5746_s23 = smov 80  }
 0x5a0   : > { %982 = vrot.lane.b32.xlu1 %v3116_v40, %s5815_s14 }
 0x5a3   : > { %984 = vrot.lane.b32.xlu0 %v3117_v37, %s5815_s14  ;;  %s5906_s14 = smov 53  }
 0x60d   : > { %v4033_v38 = vpop.permute.xlu0 %962 }
 0x60e   : > { %5869 = vst [vmem:[#allocation18_spill] sm:$0xff] %v4033_v38  ;;  %v4035_v5 = vpop.permute.xlu1 %964  ;;  %v3118_v38 = vld [vmem:[%s5689_s1 + $0x180] sm:$0xff] }
 0x60f   : > { %5870 = vst [vmem:[#allocation19_spill] sm:$0xff] %v4035_v5 }
 0x611   : > { %v4037_v4 = vpop.permute.xlu0 %966 }
 0x612   : > { %5871 = vst [vmem:[#allocation20_spill] sm:$0xff] %v4037_v4  ;;  %v983_v39 = vpop.permute.xlu1 %982  ;;  %v3119_v4 = vld [vmem:[%s5689_s1 + $0x188] sm:$0xff] }
 0x613   : > { %v991_v34 = vmul.f32 %v983_v39, %v3615_v28 }
 0x615   : > { %v985_v7 = vpop.permute.xlu0 %984  ;;  %997 = vrot.lane.b32.xlu1 %v991_v34, %s5734_s26 }
 0x616   : > { %v987_v40 = vsel %vm5731_vm4, %v983_v39, %v985_v7  ;;  %v993_v36 = vmul.f32 %v985_v7, %v3697_v6  ;;  %vm5736_vm4 = vcmask 531456  }
 0x617   : > { %v992_v37 = vmul.f32 %v987_v40, %v3706_v13 }
 0x619   : > { %1001 = vrot.lane.b32.xlu1 %v993_v36, %s5734_s26  ;;  %999 = vrot.lane.b32.xlu0 %v992_v37, %s5734_s26  ;;  %s5748_s26 = smov 79  }
 0x61d   : > { %1019 = vrot.lane.b32.xlu1 %v3119_v4, %s5811_s28  ;;  %1017 = vrot.lane.b32.xlu0 %v3118_v38, %s5811_s28  ;;  %v3120_v4 = vld [vmem:[%s5689_s1 + $0x190] sm:$0xff]  ;;  %s5827_s28 = smov 38  }
 0x687   : > { %v4054_v34 = vpop.permute.xlu1 %997 }
 0x688   : > { %5872 = vst [vmem:[#allocation21_spill] sm:$0xff] %v4054_v34 }
 0x68b   : > { %v4056_v39 = vpop.permute.xlu1 %1001  ;;  %v4058_v36 = vpop.permute.xlu0 %999 }
 0x68c   : > { %5873 = vst [vmem:[#allocation22_spill] sm:$0xff] %v4056_v39  ;;  %5874 = vst [vmem:[#allocation23_spill] sm:$0xff] %v4058_v36 }
 0x68f   : > { %v1020_v7 = vpop.permute.xlu1 %1019  ;;  %v1018_v40 = vpop.permute.xlu0 %1017 }
 0x690   : > { %v1022_v37 = vsel %vm5736_vm4, %v1018_v40, %v1020_v7  ;;  %v1026_v5 = vmul.f32 %v1018_v40, %v3615_v28  ;;  %v1028_v38 = vmul.f32 %v1020_v7, %v3697_v6  ;;  %v3121_v40 = vld [vmem:[%s5689_s1 + $0x198] sm:$0xff]  ;;  %vm5783_vm4 = vcmask 1039360  }
 0x691   : > { %v1027_v44 = vmul.f32 %v1022_v37, %v3706_v13  ;;  %v247_v7 = vsel %vm5783_vm4, %v3832_v20, %v3767_v48  ;;  %v216_v37 = vmul.f32 %v3620_v31, %v3615_v28 }
 0x692   : > { %1032 = vrot.lane.b32.xlu0 %v1026_v5, %s5746_s23  ;;  %v246_v5 = vsel %vm5783_vm4, %v3765_v47, %v3832_v20  ;;  %v317_v20 = vsel %vm5785_vm3, %v3834_v21, %v3771_v50 }
 0x693   : > { %1034 = vrot.lane.b32.xlu1 %v1027_v44, %s5746_s23  ;;  %v212_v44 = vsel %vm5745_vm13, %v3620_v31, %v3629_v35  ;;  %v251_v39 = vadd.f32 %v246_v5, %v216_v37  ;;  %v316_v31 = vsel %vm5785_vm3, %v3769_v49, %v3834_v21  ;;  %v386_v49 = vsel %vm385_vm14, %v3773_v51, %v3836_v22 }
 0x694   : > { %v387_v21 = vsel %vm385_vm14, %v3836_v22, %v3775_v52  ;;  %v422_v37 = vsel %vm5787_vm1, %v3793_v61, %v3822_v15  ;;  %vm490_vm13 = vcmask 769024  }
 0x696   : > { %1036 = vrot.lane.b32.xlu0 %v1028_v38, %s5746_s23  ;;  %v217_v38 = vmul.f32 %v3706_v13, %v212_v44  ;;  %s5750_s23 = smov 78  }
 0x697   : > { %1052 = vrot.lane.b32.xlu1 %v3120_v4, %s5809_s29  ;;  %v281_v4 = vsel %vm280_vm2, %v3812_v9, %v3789_v59 }
 0x698   : > { %v252_v34 = vadd.f32 %v247_v7, %v217_v38  ;;  %v286_v47 = vadd.f32 %v281_v4, %v251_v39  ;;  %v352_v39 = vsel %vm350_vm15, %v3791_v60, %v3818_v12 }
 0x69a   : > { %1054 = vrot.lane.b32.xlu0 %v3121_v40, %s5809_s29  ;;  %v282_v40 = vsel %vm280_vm2, %v3789_v59, %v3814_v10  ;;  %v321_v9 = vadd.f32 %v316_v31, %v286_v47  ;;  %v351_v59 = vsel %vm350_vm15, %v3816_v11, %v3791_v60  ;;  %v421_v60 = vsel %vm5787_vm1, %v3820_v14, %v3793_v61  ;;  %s5905_s29 = smov 37  }
 0x69b   : > { %v287_v36 = vadd.f32 %v282_v40, %v252_v34  ;;  %v456_v61 = vsel %vm5788_vm0, %v3777_v53, %v3838_v23 }
 0x69c   : > { %v356_v34 = vadd.f32 %v351_v59, %v321_v9  ;;  %v492_v9 = vsel %vm490_vm13, %v3795_v62, %v3826_v17 }
 0x69d   : > { %v322_v44 = vadd.f32 %v317_v20, %v287_v36  ;;  %v218_v36 = vmul.f32 %v3629_v35, %v3624_v33 }
 0x69e   : > { %v391_v7 = vadd.f32 %v386_v49, %v356_v34 }
 0x69f   : > { %v357_v5 = vadd.f32 %v352_v39, %v322_v44  ;;  %v253_v38 = vadd.f32 %v3767_v48, %v218_v36  ;;  %v457_v48 = vsel %vm5788_vm0, %v3838_v23, %v3779_v54 }
 0x6a0   : > { %v426_v33 = vadd.f32 %v421_v60, %v391_v7 }
 0x6a1   : > { %v392_v11 = vadd.f32 %v387_v21, %v357_v5  ;;  %v288_v22 = vadd.f32 %v3814_v10, %v253_v38  ;;  %v3122_v21 = vld [vmem:[%s5689_s1 + $0x1a0] sm:$0xff] }
 0x6a2   : > { %v461_v20 = vadd.f32 %v456_v61, %v426_v33  ;;  %v3125_v61 = vld [vmem:[%s5689_s1 + $0x1b8] sm:$0xff] }
 0x6a3   : > { %v427_v35 = vadd.f32 %v422_v37, %v392_v11  ;;  %v323_v40 = vadd.f32 %v3771_v50, %v288_v22  ;;  %v491_v50 = vsel %vm490_vm13, %v3824_v16, %v3795_v62 }
 0x6a4   : > { %v496_v34 = vadd.f32 %v491_v50, %v461_v20 }
 0x6a5   : > { %v358_v31 = vadd.f32 %v3818_v12, %v323_v40  ;;  %v462_v10 = vadd.f32 %v457_v48, %v427_v35  ;;  %v3124_v40 = vld [vmem:[%s5689_s1 + $0x1b0] sm:$0xff] }
 0x6a7   : > { %v393_v53 = vadd.f32 %v3775_v52, %v358_v31  ;;  %v497_v5 = vadd.f32 %v492_v9, %v462_v10 }
 0x6a9   : > { %v428_v39 = vadd.f32 %v3822_v15, %v393_v53  ;;  %v3346_v62 = vpack.i.bf16 %v497_v5, %v496_v34  ;;  %v3123_v15 = vld [vmem:[%s5689_s1 + $0x1a8] sm:$0xff] }
 0x6ab   : > { %v463_v49 = vadd.f32 %v3779_v54, %v428_v39 }
 0x6ad   : > { %v498_v52 = vadd.f32 %v3826_v17, %v463_v49 }
 0x704   : > { %v4120_v51 = vpop.permute.xlu0 %1032 }
 0x705   : > { %v4122_v4 = vpop.permute.xlu1 %1034 }
 0x708   : > { %v4126_v47 = vpop.permute.xlu0 %1036 }
 0x709   : > { %v1053_v14 = vpop.permute.xlu1 %1052 }
 0x70a   : > { %v1060_v44 = vmul.f32 %v1053_v14, %v3615_v28 }
 0x70c   : > { %v1055_v59 = vpop.permute.xlu0 %1054  ;;  %1066 = vrot.lane.b32.xlu1 %v1060_v44, %s5748_s26 }
 0x70d   : > { %v1056_v12 = vsel %vm403_vm5, %v1053_v14, %v1055_v59  ;;  %v1062_v23 = vmul.f32 %v1055_v59, %v3697_v6  ;;  %v3127_v59 = vld [vmem:[%s5689_s1 + $0x1c8] sm:$0xff] }
 0x70e   : > { %v1061_v16 = vmul.f32 %v1056_v12, %v3706_v13  ;;  %v3126_v12 = vld [vmem:[%s5689_s1 + $0x1c0] sm:$0xff] }
 0x710   : > { %1070 = vrot.lane.b32.xlu1 %v1062_v23, %s5748_s26  ;;  %1068 = vrot.lane.b32.xlu0 %v1061_v16, %s5748_s26  ;;  %s5813_s26 = smov 64  }
 0x714   : > { %506 = vrot.lane.b32.xlu1 %v498_v52, %s5752_s11  ;;  %3347 = vrot.lane.b32.xlu0 %v3346_v62, %s5752_s11  ;;  %s5757_s11 = smov 69  }
 0x718   : > { %1088 = vrot.lane.b32.xlu1 %v3123_v15, %s5807_s9  ;;  %1086 = vrot.lane.b32.xlu0 %v3122_v21, %s5807_s9  ;;  %v3128_v21 = vld [vmem:[%s5689_s1 + $0x1d0] sm:$0xff]  ;;  %s5904_s9 = smov 21  }
 0x77e   : > { %v4162_v54 = vpop.permute.xlu1 %1066 }
 0x782   : > { %v4164_v17 = vpop.permute.xlu1 %1070  ;;  %v4166_v36 = vpop.permute.xlu0 %1068 }
 0x786   : > { %v4168_v11 = vpop.permute.xlu1 %506  ;;  %v4170_v7 = vpop.permute.xlu0 %3347 }
 0x787   : > { %5875 = vst [vmem:[#allocation24_spill] sm:$0xff] %v4168_v11  ;;  %5876 = vst [vmem:[#allocation25_spill] sm:$0xff] %v4170_v7 }
 0x78a   : > { %v1089_v60 = vpop.permute.xlu1 %1088  ;;  %v1087_v37 = vpop.permute.xlu0 %1086 }
 0x78b   : > { %v1090_v38 = vsel %vm5754_vm6, %v1087_v37, %v1089_v60  ;;  %v1094_v22 = vmul.f32 %v1087_v37, %v3615_v28  ;;  %v1096_v35 = vmul.f32 %v1089_v60, %v3697_v6  ;;  %vm5759_vm6 = vcmask 564224   ;;  %v3129_v60 = vld [vmem:[%s5689_s1 + $0x1d8] sm:$0xff] }
 0x78c   : > { %v1095_v33 = vmul.f32 %v1090_v38, %v3706_v13 }
 0x78d   : > { %1100 = vrot.lane.b32.xlu0 %v1094_v22, %s5750_s23 }
 0x78e   : > { %1102 = vrot.lane.b32.xlu1 %v1095_v33, %s5750_s23 }
 0x791   : > { %1104 = vrot.lane.b32.xlu0 %v1096_v35, %s5750_s23  ;;  %s5760_s23 = smov 76  }
 0x792   : > { %1120 = vrot.lane.b32.xlu1 %v3124_v40, %s5767_s18 }
 0x795   : > { %1122 = vrot.lane.b32.xlu0 %v3125_v61, %s5767_s18  ;;  %s5798_s18 = smov 60  }
 0x7ff   : > { %v4187_v48 = vpop.permute.xlu0 %1100 }
 0x800   : > { %v4189_v14 = vpop.permute.xlu1 %1102 }
 0x803   : > { %v4191_v31 = vpop.permute.xlu0 %1104 }
 0x804   : > { %v1121_v10 = vpop.permute.xlu1 %1120 }
 0x805   : > { %v1128_v20 = vmul.f32 %v1121_v10, %v3615_v28 }
 0x807   : > { %v1123_v44 = vpop.permute.xlu0 %1122  ;;  %1134 = vrot.lane.b32.xlu1 %v1128_v20, %s5755_s30 }
 0x808   : > { %v1124_v50 = vsel %vm5780_vm7, %v1121_v10, %v1123_v44  ;;  %v1130_v9 = vmul.f32 %v1123_v44, %v3697_v6  ;;  %v3131_v44 = vld [vmem:[%s5689_s1 + $0x1e8] sm:$0xff]  ;;  %vm528_vm7 = vcmask 138240  }
 0x809   : > { %v1129_v53 = vmul.f32 %v1124_v50, %v3706_v13  ;;  %v3130_v50 = vld [vmem:[%s5689_s1 + $0x1e0] sm:$0xff] }
 0x80b   : > { %1138 = vrot.lane.b32.xlu1 %v1130_v9, %s5755_s30  ;;  %1136 = vrot.lane.b32.xlu0 %v1129_v53, %s5755_s30  ;;  %s5803_s30 = smov 85  }
 0x80f   : > { %1156 = vrot.lane.b32.xlu1 %v3127_v59, %s5757_s11  ;;  %1154 = vrot.lane.b32.xlu0 %v3126_v12, %s5757_s11  ;;  %s5775_s11 = smov 62  }
 0x879   : > { %v4208_v23 = vpop.permute.xlu1 %1134 }
 0x87d   : > { %v4210_v39 = vpop.permute.xlu1 %1138  ;;  %v4212_v34 = vpop.permute.xlu0 %1136 }
 0x881   : > { %v1157_v5 = vpop.permute.xlu1 %1156  ;;  %v1155_v16 = vpop.permute.xlu0 %1154 }
 0x882   : > { %v1159_v49 = vsel %vm5759_vm6, %v1155_v16, %v1157_v5  ;;  %v1163_v52 = vmul.f32 %v1155_v16, %v3615_v28  ;;  %v1165_v15 = vmul.f32 %v1157_v5, %v3697_v6  ;;  %vm5764_vm6 = vcmask 662528  }
 0x883   : > { %v1164_v62 = vmul.f32 %v1159_v49, %v3706_v13 }
 0x884   : > { %1169 = vrot.lane.b32.xlu0 %v1163_v52, %s5760_s23 }
 0x885   : > { %1171 = vrot.lane.b32.xlu1 %v1164_v62, %s5760_s23 }
 0x888   : > { %1173 = vrot.lane.b32.xlu0 %v1165_v15, %s5760_s23  ;;  %s5770_s23 = smov 63   ;;  %v3132_v15 = vld [vmem:[%s5689_s1 + $0x1f0] sm:$0xff] }
 0x889   : > { %1189 = vrot.lane.b32.xlu1 %v3128_v21, %s5762_s6  ;;  %v3133_v21 = vld [vmem:[%s5689_s1 + $0x1f8] sm:$0xff] }
 0x88c   : > { %1191 = vrot.lane.b32.xlu0 %v3129_v60, %s5762_s6  ;;  %s5765_s6 = smov 82  }
 0x8f6   : > { %v4229_v37 = vpop.permute.xlu0 %1169 }
 0x8f7   : > { %v4231_v38 = vpop.permute.xlu1 %1171 }
 0x8fa   : > { %v4233_v22 = vpop.permute.xlu0 %1173 }
 0x8fb   : > { %v1190_v33 = vpop.permute.xlu1 %1189 }
 0x8fc   : > { %v1198_v35 = vmul.f32 %v1190_v33, %v3615_v28 }
 0x8fe   : > { %v1192_v40 = vpop.permute.xlu0 %1191  ;;  %1204 = vrot.lane.b32.xlu1 %v1198_v35, %s5813_s26 }
 0x8ff   : > { %v1194_v61 = vsel %vm5764_vm6, %v1190_v33, %v1192_v40  ;;  %v1200_v10 = vmul.f32 %v1192_v40, %v3697_v6  ;;  %vm5769_vm6 = vcmask 670720  }
 0x900   : > { %v1199_v20 = vmul.f32 %v1194_v61, %v3706_v13 }
 0x902   : > { %1208 = vrot.lane.b32.xlu1 %v1200_v10, %s5813_s26  ;;  %1206 = vrot.lane.b32.xlu0 %v1199_v20, %s5813_s26  ;;  %s5825_s26 = smov 48  }
 0x906   : > { %1226 = vrot.lane.b32.xlu1 %v3131_v44, %s5765_s6  ;;  %1224 = vrot.lane.b32.xlu0 %v3130_v50, %s5765_s6  ;;  %s3414_s6 = smov 1  }
 0x970   : > { %v4250_v9 = vpop.permute.xlu1 %1204 }
 0x974   : > { %v4252_v53 = vpop.permute.xlu1 %1208  ;;  %v4254_v59 = vpop.permute.xlu0 %1206 }
 0x978   : > { %v1227_v12 = vpop.permute.xlu1 %1226  ;;  %v1225_v5 = vpop.permute.xlu0 %1224 }
 0x979   : > { %v1229_v16 = vsel %vm5769_vm6, %v1225_v5, %v1227_v12  ;;  %v1233_v49 = vmul.f32 %v1225_v5, %v3615_v28  ;;  %v1235_v62 = vmul.f32 %v1227_v12, %v3697_v6  ;;  %vm5774_vm6 = vcmask 678912   ;;  %v3135_v12 = vld [vmem:[%s5689_s1 + $0x208] sm:$0xff]  ;;  %v3134_v5 = vld [vmem:[%s5689_s1 + $0x200] sm:$0xff] }
 0x97a   : > { %v1234_v52 = vmul.f32 %v1229_v16, %v3706_v13 }
 0x97b   : > { %1239 = vrot.lane.b32.xlu0 %v1233_v49, %s5770_s23 }
 0x97c   : > { %1241 = vrot.lane.b32.xlu1 %v1234_v52, %s5770_s23 }
 0x97f   : > { %1243 = vrot.lane.b32.xlu0 %v1235_v62, %s5770_s23  ;;  %s5800_s23 = smov 61  }
 0x980   : > { %1259 = vrot.lane.b32.xlu1 %v3132_v15, %s5772_s8 }
 0x983   : > { %1261 = vrot.lane.b32.xlu0 %v3133_v21, %s5772_s8  ;;  %s5777_s8 = smov 84  }
 0x9ed   : > { %v4271_v60 = vpop.permute.xlu0 %1239 }
 0x9ee   : > { %v4273_v33 = vpop.permute.xlu1 %1241 }
 0x9f1   : > { %v4275_v35 = vpop.permute.xlu0 %1243 }
 0x9f2   : > { %v1260_v40 = vpop.permute.xlu1 %1259 }
 0x9f3   : > { %v1268_v61 = vmul.f32 %v1260_v40, %v3615_v28 }
 0x9f5   : > { %v1262_v10 = vpop.permute.xlu0 %1261  ;;  %1274 = vrot.lane.b32.xlu1 %v1268_v61, %s5775_s11 }
 0x9f6   : > { %v1264_v20 = vsel %vm5774_vm6, %v1260_v40, %v1262_v10  ;;  %v1270_v44 = vmul.f32 %v1262_v10, %v3697_v6  ;;  %vm5779_vm6 = vcmask 687104  }
 0x9f7   : > { %v1269_v50 = vmul.f32 %v1264_v20, %v3706_v13  ;;  %v3136_v20 = vld [vmem:[%s5689_s1 + $0x210] sm:$0xff] }
 0x9f9   : > { %1278 = vrot.lane.b32.xlu1 %v1270_v44, %s5775_s11  ;;  %1276 = vrot.lane.b32.xlu0 %v1269_v50, %s5775_s11  ;;  %v3137_v44 = vld [vmem:[%s5689_s1 + $0x218] sm:$0xff]  ;;  %s3416_s11 = smov 3  }
 0x9fd   : > { %1296 = vrot.lane.b32.xlu1 %v3135_v12, %s5777_s8  ;;  %1294 = vrot.lane.b32.xlu0 %v3134_v5, %s5777_s8  ;;  %s3415_s8 = smov 2  }
 0xa67   : > { %v4292_v16 = vpop.permute.xlu1 %1274 }
 0xa6b   : > { %v4294_v49 = vpop.permute.xlu1 %1278  ;;  %v4296_v52 = vpop.permute.xlu0 %1276 }
 0xa6f   : > { %v1297_v62 = vpop.permute.xlu1 %1296  ;;  %v1295_v15 = vpop.permute.xlu0 %1294 }
 0xa70   : > { %v1299_v21 = vsel %vm5779_vm6, %v1295_v15, %v1297_v62  ;;  %v1303_v40 = vmul.f32 %v1295_v15, %v3615_v28  ;;  %v1305_v10 = vmul.f32 %v1297_v62, %v3697_v6  ;;  %vm5781_vm6 = vcmask 695296  }
 0xa71   : > { %v1304_v61 = vmul.f32 %v1299_v21, %v3706_v13 }
 0xa72   : > { %1309 = vrot.lane.b32.xlu0 %v1303_v40, %s5800_s23 }
 0xa73   : > { %1311 = vrot.lane.b32.xlu1 %v1304_v61, %s5800_s23 }
 0xa76   : > { %1313 = vrot.lane.b32.xlu0 %v1305_v10, %s5800_s23  ;;  %s3417_s23 = smov 4  }
 0xa77   : > { %1329 = vrot.lane.b32.xlu1 %v3136_v20, %s5803_s30  ;;  %v529_v20 = vsel %vm528_vm7, %v3692_v1, %v3690_v0 }
 0xa7a   : > { %1331 = vrot.lane.b32.xlu0 %v3137_v44, %s5803_s30  ;;  %v562_v44 = vsel %vm5783_vm4, %v3781_v55, %v3840_v24  ;;  %v597_v55 = vsel %vm280_vm2, %v3797_v63, %v3830_v19  ;;  %s5900_s30 = smov 17  }
 0xae4   : > { %v4313_v50 = vpop.permute.xlu0 %1309 }
 0xae5   : > { %v4315_v12 = vpop.permute.xlu1 %1311 }
 0xae8   : > { %v4317_v5 = vpop.permute.xlu0 %1313 }
 0xae9   : > { %v1330_v62 = vpop.permute.xlu1 %1329 }
 0xaea   : > { %v1338_v15 = vmul.f32 %v1330_v62, %v3615_v28 }
 0xaec   : > { %v1332_v21 = vpop.permute.xlu0 %1331  ;;  %1344 = vrot.lane.b32.xlu1 %v1338_v15, %s5798_s18  ;;  %v535_v15 = vmul.f32 %v3690_v0, %v3697_v6 }
 0xaed   : > { %v1334_v40 = vsel %vm5781_vm6, %v1330_v62, %v1332_v21  ;;  %v1340_v61 = vmul.f32 %v1332_v21, %v3697_v6  ;;  %v563_v62 = vsel %vm5783_vm4, %v3840_v24, %v3783_v56  ;;  %v533_v21 = vmul.f32 %v3692_v1, %v3615_v28 }
 0xaee   : > { %v1339_v10 = vmul.f32 %v1334_v40, %v3706_v13  ;;  %v534_v40 = vmul.f32 %v529_v20, %v3706_v13  ;;  %vm630_vm6 = vcmask 1022976   ;;  %vm5784_vm4 = vcmask 1014784  }
 0xaef   : > { %v567_v11 = vadd.f32 %v562_v44, %v533_v21 }
 0xaf0   : > { %1348 = vrot.lane.b32.xlu1 %v1340_v61, %s5798_s18  ;;  %1346 = vrot.lane.b32.xlu0 %v1339_v10, %s5798_s18  ;;  %v596_v61 = vsel %vm280_vm2, %v3828_v18, %v3797_v63  ;;  %v569_v10 = vadd.f32 %v3783_v56, %v535_v15  ;;  %v568_v24 = vadd.f32 %v563_v62, %v534_v40  ;;  %s5902_s18 = smov 19  }
 0xaf1   : > { %v601_v6 = vadd.f32 %v596_v61, %v567_v11  ;;  %v631_v18 = vsel %vm630_vm6, %v3785_v57, %v3842_v25  ;;  %v632_v63 = vsel %vm630_vm6, %v3842_v25, %v3787_v58  ;;  %v666_v56 = vsel %vm5784_vm4, %v3844_v26, %v3848_v29 }
 0xaf2   : > { %v603_v0 = vadd.f32 %v3830_v19, %v569_v10  ;;  %v602_v7 = vadd.f32 %v597_v55, %v568_v24  ;;  %v667_v19 = vsel %vm5784_vm4, %v3848_v29, %v3846_v27  ;;  %v700_v57 = vsel %vm5785_vm3, %v3865_v41, %v3867_v42  ;;  %v5878_v55 = vld [vmem:[#allocation5_spill] sm:$0xff] }
 0xaf3   : > { %v636_v11 = vadd.f32 %v631_v18, %v601_v6  ;;  %v733_v29 = vsel %vm350_vm15, %v3886_v8, %v3890_v32  ;;  %vm5789_vm4 = vcmask 891904   ;;  %v5880_v6 = vld [vmem:[#allocation6_spill] sm:$0xff] }
 0xaf4   : > { %v638_v1 = vadd.f32 %v3787_v58, %v603_v0  ;;  %v637_v20 = vadd.f32 %v632_v63, %v602_v7  ;;  %v701_v58 = vsel %vm5785_vm3, %v3867_v42, %v3869_v43  ;;  %v766_v42 = vsel %vm385_vm14, %v3907_v46, %v3909_v2  ;;  %v5879_v0 = vld [vmem:[#allocation7_spill] sm:$0xff] }
 0xaf5   : > { %v671_v25 = vadd.f32 %v666_v56, %v636_v11  ;;  %vm5786_vm3 = vcmask 883712   ;;  %v5883_v11 = vld [vmem:[#allocation9_spill] sm:$0xff] }
 0xaf6   : > { %v673_v44 = vadd.f32 %v3846_v27, %v638_v1  ;;  %v672_v62 = vadd.f32 %v667_v19, %v637_v20  ;;  %v734_v27 = vsel %vm350_vm15, %v3890_v32, %v3888_v30  ;;  %v5877_v32 = vld [vmem:[#allocation4_spill] sm:$0xff]  ;;  %v5882_v19 = vld [vmem:[#allocation11_spill] sm:$0xff]  ;;  %v5884_v20 = vld [vmem:[#allocation10_spill] sm:$0xff] }
 0xaf7   : > { %v705_v7 = vadd.f32 %v700_v57, %v671_v25  ;;  %v800_v61 = vsel %vm5789_vm4, %v5877_v32, %v3932_v45  ;;  %v5881_v1 = vld [vmem:[#allocation8_spill] sm:$0xff] }
 0xaf8   : > { %v707_v26 = vadd.f32 %v3869_v43, %v673_v44  ;;  %v706_v15 = vadd.f32 %v701_v58, %v672_v62  ;;  %v767_v43 = vsel %vm385_vm14, %v3909_v2, %v3911_v3  ;;  %v835_v2 = vsel %vm5786_vm3, %v5880_v6, %v5879_v0  ;;  %v5885_v62 = vld [vmem:[#allocation13_spill] sm:$0xff] }
 0xaf9   : > { %v738_v21 = vadd.f32 %v733_v29, %v705_v7  ;;  %v870_v44 = vsel %vm5787_vm1, %v5882_v19, %v5884_v20 }
 0xafa   : > { %v740_v41 = vadd.f32 %v3888_v30, %v707_v26  ;;  %v739_v40 = vadd.f32 %v734_v27, %v706_v15  ;;  %v801_v30 = vsel %vm5789_vm4, %v3932_v45, %v5878_v55  ;;  %v869_v45 = vsel %vm5787_vm1, %v5883_v11, %v5882_v19  ;;  %v5886_v26 = vld [vmem:[#allocation12_spill] sm:$0xff]  ;;  %v5887_v27 = vld [vmem:[#allocation14_spill] sm:$0xff] }
 0xafb   : > { %v771_v10 = vadd.f32 %v766_v42, %v738_v21  ;;  %v902_v29 = vsel %vm5788_vm0, %v5886_v26, %v5885_v62  ;;  %v903_v7 = vsel %vm5788_vm0, %v5885_v62, %v5887_v27  ;;  %v5889_v21 = vld [vmem:[#allocation15_spill] sm:$0xff]  ;;  %vm5791_vm1 = vcmask 752640   ;;  %v5896_v19 = vld [vmem:[#allocation22_spill] sm:$0xff] }
 0xafc   : > { %v773_v8 = vadd.f32 %v3911_v3, %v740_v41  ;;  %v772_v24 = vadd.f32 %v767_v43, %v739_v40  ;;  %v836_v3 = vsel %vm5786_vm3, %v5879_v0, %v5881_v1  ;;  %vm5790_vm3 = vcmask 760832   ;;  %v5888_v43 = vld [vmem:[#allocation17_spill] sm:$0xff]  ;;  %v5893_v0 = vld [vmem:[#allocation20_spill] sm:$0xff] }
 0xafd   : > { %v805_v18 = vadd.f32 %v800_v61, %v771_v10  ;;  %v935_v40 = vsel %vm490_vm13, %v5889_v21, %v5888_v43  ;;  %v5891_v10 = vld [vmem:[#allocation19_spill] sm:$0xff]  ;;  %vm5792_vm0 = vcmask 654336   ;;  %vm5793_vm4 = vcmask 646144  }
 0xafe   : > { %v807_v46 = vadd.f32 %v5878_v55, %v773_v8  ;;  %v806_v63 = vadd.f32 %v801_v30, %v772_v24  ;;  %v5890_v8 = vld [vmem:[#allocation16_spill] sm:$0xff]  ;;  %v5892_v24 = vld [vmem:[#allocation18_spill] sm:$0xff]  ;;  %v970_v6 = vsel %vm5790_vm3, %v5891_v10, %v5893_v0 }
 0xaff   : > { %v840_v57 = vadd.f32 %v835_v2, %v805_v18  ;;  %v936_v32 = vsel %vm490_vm13, %v5888_v43, %v5890_v8  ;;  %v5894_v18 = vld [vmem:[#allocation23_spill] sm:$0xff] }
 0xb00   : > { %v842_v56 = vadd.f32 %v5881_v1, %v807_v46  ;;  %v841_v58 = vadd.f32 %v836_v3, %v806_v63  ;;  %v969_v46 = vsel %vm5790_vm3, %v5892_v24, %v5891_v10  ;;  %v5895_v63 = vld [vmem:[#allocation21_spill] sm:$0xff]  ;;  %v1005_v11 = vsel %vm5791_vm1, %v5894_v18, %v5896_v19 }
 0xb01   : > { %v874_v15 = vadd.f32 %v869_v45, %v840_v57  ;;  %v1039_v57 = vsel %vm5792_vm0, %v4120_v51, %v4122_v4  ;;  %vm5794_vm3 = vcmask 637952  }
 0xb02   : > { %v876_v25 = vadd.f32 %v5884_v20, %v842_v56  ;;  %v875_v41 = vadd.f32 %v870_v44, %v841_v58  ;;  %v1004_v56 = vsel %vm5791_vm1, %v5895_v63, %v5894_v18  ;;  %v1040_v58 = vsel %vm5792_vm0, %v4122_v4, %v4126_v47 }
 0xb03   : > { %v907_v61 = vadd.f32 %v902_v29, %v874_v15  ;;  %v1073_v29 = vsel %vm5793_vm4, %v4162_v54, %v4166_v36  ;;  %vm5795_vm1 = vcmask 629760   ;;  %v1107_v4 = vsel %vm5794_vm3, %v4187_v48, %v4189_v14 }
 0xb04   : > { %v909_v42 = vadd.f32 %v5887_v27, %v876_v25  ;;  %v908_v55 = vadd.f32 %v903_v7, %v875_v41  ;;  %v1074_v27 = vsel %vm5793_vm4, %v4166_v36, %v4164_v17  ;;  %vm5796_vm0 = vcmask 621568  }
 0xb05   : > { %v940_v2 = vadd.f32 %v935_v40, %v907_v61  ;;  %v1141_v36 = vsel %vm5795_vm1, %v4208_v23, %v4212_v34  ;;  %vm1210_vm4 = vcmask 523264  }
 0xb06   : > { %v942_v30 = vadd.f32 %v5890_v8, %v909_v42  ;;  %v941_v1 = vadd.f32 %v936_v32, %v908_v55 }
 0xb07   : > { %v974_v45 = vadd.f32 %v969_v46, %v940_v2 }
 0xb08   : > { %v976_v3 = vadd.f32 %v5893_v0, %v942_v30  ;;  %v975_v20 = vadd.f32 %v970_v6, %v941_v1 }
 0xb09   : > { %v1009_v25 = vadd.f32 %v1004_v56, %v974_v45  ;;  %v1383_v45 = vld [vmem:[%s3609_s13 + $0x8] sm:$0xf] }
 0xb0a   : > { %v1011_v44 = vadd.f32 %v5896_v19, %v976_v3  ;;  %v1010_v62 = vadd.f32 %v1005_v11, %v975_v20  ;;  %v3141_v19 = vld [vmem:[%s5689_s1 + $0x238] sm:$0xff]  ;;  %v5897_v20 = vld [vmem:[#allocation25_spill] sm:$0xff] }
 0xb0b   : > { %v1044_v7 = vadd.f32 %v1039_v57, %v1009_v25  ;;  %v3349_v57 = vunpack.i.l.bf16 %v5897_v20 }
 0xb0c   : > { %v1046_v26 = vadd.f32 %v4126_v47, %v1011_v44  ;;  %v1045_v15 = vadd.f32 %v1040_v58, %v1010_v62  ;;  %v1108_v47 = vsel %vm5794_vm3, %v4189_v14, %v4191_v31  ;;  %v1176_v14 = vsel %vm5796_vm0, %v4229_v37, %v4231_v38 }
 0xb0d   : > { %v1078_v41 = vadd.f32 %v1073_v29, %v1044_v7  ;;  %vm5797_vm3 = vcmask 515072   ;;  %v3350_v44 = vunpack.i.h.bf16 %v5897_v20 }
 0xb0e   : > { %v1080_v51 = vadd.f32 %v4164_v17, %v1046_v26  ;;  %v1079_v42 = vadd.f32 %v1074_v27, %v1045_v15  ;;  %v1142_v17 = vsel %vm5795_vm1, %v4212_v34, %v4210_v39  ;;  %v1211_v34 = vsel %vm1210_vm4, %v4250_v9, %v4254_v59  ;;  %v5898_v27 = vld [vmem:[#allocation24_spill] sm:$0xff] }
 0xb0f   : > { %v1112_v43 = vadd.f32 %v1107_v4, %v1078_v41  ;;  %vm1280_vm1 = vcmask 506880   ;;  %v4508_v26 = vunpack.c.l.bf16 %v1383_v45  ;;  %v509_v7 = vsel %vm490_vm13, %v3350_v44, %v5898_v27 }
 0xb10   : > { %v1114_v54 = vadd.f32 %v4191_v31, %v1080_v51  ;;  %v1113_v21 = vadd.f32 %v1108_v47, %v1079_v42  ;;  %v1177_v31 = vsel %vm5796_vm0, %v4231_v38, %v4233_v22  ;;  %v1246_v38 = vsel %vm5797_vm3, %v4271_v60, %v4273_v33 }
 0xb11   : > { %v1146_v40 = vadd.f32 %v1141_v36, %v1112_v43  ;;  %vm1315_vm0 = vcmask 498688   ;;  %v508_v51 = vsel %vm490_vm13, %v3349_v57, %v3350_v44  ;;  %v3150_v57 = vld [vmem:[%s5689_s1 + $0x280] sm:$0xff] }
 0xb12   : > { %v1148_v48 = vadd.f32 %v4210_v39, %v1114_v54  ;;  %v1147_v8 = vadd.f32 %v1142_v17, %v1113_v21  ;;  %v1212_v39 = vsel %vm1210_vm4, %v4254_v59, %v4252_v53  ;;  %v1281_v59 = vsel %vm1280_vm1, %v4292_v16, %v4296_v52  ;;  %v3142_v21 = vld [vmem:[%s5689_s1 + $0x240] sm:$0xff] }
 0xb13   : > { %v1181_v32 = vadd.f32 %v1176_v14, %v1146_v40 }
 0xb14   : > { %v1183_v23 = vadd.f32 %v4233_v22, %v1148_v48  ;;  %v1182_v61 = vadd.f32 %v1177_v31, %v1147_v8  ;;  %v1247_v22 = vsel %vm5797_vm3, %v4273_v33, %v4275_v35  ;;  %v1316_v33 = vsel %vm1315_vm0, %v4313_v50, %v4315_v12  ;;  %v3143_v48 = vld [vmem:[%s5689_s1 + $0x248] sm:$0xff] }
 0xb15   : > { %v1216_v55 = vadd.f32 %v1211_v34, %v1181_v32  ;;  %vm5802_vm3 = vcmask 490496  }
 0xb16   : > { %v1218_v37 = vadd.f32 %v4252_v53, %v1183_v23  ;;  %v1217_v30 = vadd.f32 %v1212_v39, %v1182_v61  ;;  %v1282_v53 = vsel %vm1280_vm1, %v4296_v52, %v4294_v49 }
 0xb17   : > { %v1251_v10 = vadd.f32 %v1246_v38, %v1216_v55  ;;  %v3144_v38 = vld [vmem:[%s5689_s1 + $0x250] sm:$0xff] }
 0xb18   : > { %v1253_v9 = vadd.f32 %v4275_v35, %v1218_v37  ;;  %v1252_v24 = vadd.f32 %v1247_v22, %v1217_v30  ;;  %v1317_v35 = vsel %vm1315_vm0, %v4315_v12, %v4317_v5  ;;  %v3145_v37 = vld [vmem:[%s5689_s1 + $0x258] sm:$0xff] }
 0xb19   : > { %v1286_v0 = vadd.f32 %v1281_v59, %v1251_v10 }
 0xb1a   : > { %v1288_v46 = vadd.f32 %v4294_v49, %v1253_v9  ;;  %v1287_v6 = vadd.f32 %v1282_v53, %v1252_v24 }
 0xb1b   : > { %v1321_v2 = vadd.f32 %v1316_v33, %v1286_v0  ;;  %v3147_v33 = vld [vmem:[%s5689_s1 + $0x268] sm:$0xff] }
 0xb1c   : > { %v1323_v16 = vadd.f32 %v4317_v5, %v1288_v46  ;;  %v1322_v52 = vadd.f32 %v1317_v35, %v1287_v6  ;;  %v3140_v5 = vld [vmem:[%s5689_s1 + $0x230] sm:$0xff]  ;;  %v3146_v46 = vld [vmem:[%s5689_s1 + $0x260] sm:$0xff] }
 0xb5e   : > { %v1345_v60 = vpop.permute.xlu1 %1344 }
 0xb62   : > { %v1349_v1 = vpop.permute.xlu1 %1348  ;;  %v1347_v3 = vpop.permute.xlu0 %1346 }
 0xb63   : > { %v1358_v18 = vadd.f32 %v1349_v1, %v1323_v16  ;;  %v1351_v49 = vsel %vm5802_vm3, %v1345_v60, %v1347_v3  ;;  %v1352_v63 = vsel %vm5802_vm3, %v1347_v3, %v1349_v1  ;;  %vm1396_vm3 = vcmask 7168  }
 0xb64   : > { %v1356_v50 = vadd.f32 %v1351_v49, %v1321_v2  ;;  %v1357_v56 = vadd.f32 %v1352_v63, %v1322_v52  ;;  %v3149_v49 = vld [vmem:[%s5689_s1 + $0x278] sm:$0xff]  ;;  %v3148_v63 = vld [vmem:[%s5689_s1 + $0x270] sm:$0xff] }
 0xb65   : > { %1366 = vrot.lane.b32.xlu1 %v1358_v18, %s5805_s25 }
 0xb66   : > { %v3351_v12 = vpack.i.bf16 %v1357_v56, %v1356_v50 }
 0xb68   : > { %3352 = vrot.lane.b32.xlu0 %v3351_v12, %s5805_s25  ;;  %s5938_s25 = smov 108  }
 0xb69   : > { %1394 = vrot.lane.b32.xlu1 %v3141_v19, %s3414_s6 }
 0xb6c   : > { %1392 = vrot.lane.b32.xlu0 %v3140_v5, %s3414_s6  ;;  %s5917_s6 = smov 82  }
 0xbd7   : > { %v1367_v11 = vpop.permute.xlu1 %1366 }
 0xbda   : > { %v3353_v58 = vpop.permute.xlu0 %3352 }
 0xbdb   : > { %v3355_v25 = vunpack.i.h.bf16 %v3353_v58  ;;  %v3354_v62 = vunpack.i.l.bf16 %v3353_v58  ;;  %v1395_v29 = vpop.permute.xlu1 %1394  ;;  %v3151_v58 = vld [vmem:[%s5689_s1 + $0x288] sm:$0xff] }
 0xbdc   : > { %v1403_v43 = vmul.f32 %v1395_v29, %v4508_v26 }
 0xbdd   : > { %v1369_v15 = vsel %vm350_vm15, %v3355_v25, %v1367_v11  ;;  %v1368_v4 = vsel %vm350_vm15, %v3354_v62, %v3355_v25 }
 0xbde   : > { %v1393_v47 = vpop.permute.xlu0 %1392  ;;  %v3240_v41 = vpack.c.bf16 %v1369_v15, %v509_v7  ;;  %v3242_v42 = vpack.c.bf16 %v1368_v4, %v508_v51 }
 0xbdf   : > { %v1397_v54 = vsel %vm1396_vm3, %v1393_v47, %v1395_v29  ;;  %v1401_v36 = vmul.f32 %v1393_v47, %v3615_v28  ;;  %vm1428_vm3 = vcmask 15360  }
 0xbe0   : > { %v1402_v17 = vmul.f32 %v1397_v54, %v3706_v13  ;;  %3241 = vmatprep.subr.bf16.mxu0 %v3240_v41  ;;  %v3153_v41 = vld [vmem:[%s5689_s1 + $0x298] sm:$0xff]  ;;  %v3154_v54 = vld [vmem:[%s5689_s1 + $0x2a0] sm:$0xff] }
 0xbe1   : > { %1407 = vrot.lane.b32.xlu0 %v1401_v36, %s3379_s19  ;;  %3243 = vmatpush1.bf16.msra.mxu0 %v3242_v42  ;;  %v3152_v42 = vld [vmem:[%s5689_s1 + $0x290] sm:$0xff] }
 0xbe2   : > { %1409 = vrot.lane.b32.xlu1 %v1402_v17, %s3379_s19  ;;  %v3156_v36 = vld [vmem:[%s5689_s1 + $0x2b0] sm:$0xff]  ;;  %v3158_v17 = vld [vmem:[%s5689_s1 + $0x2c0] sm:$0xff] }
 0xbe5   : > { %1411 = vrot.lane.b32.xlu0 %v1403_v43, %s3379_s19  ;;  %s3421_s19 = smov 122   ;;  %v3160_v43 = vld [vmem:[%s5689_s1 + $0x2d0] sm:$0xff] }
 0xbe6   : > { %1424 = vrot.lane.b32.xlu1 %v3142_v21, %s3415_s8  ;;  %v3162_v21 = vld [vmem:[%s5689_s1 + $0x2e0] sm:$0xff] }
 0xbe9   : > { %1426 = vrot.lane.b32.xlu0 %v3143_v48, %s3415_s8  ;;  %v3164_v48 = vld [vmem:[%s5689_s1 + $0x2f0] sm:$0xff]  ;;  %s5830_s8 = smov 32  }
 0xc53   : > { %v4527_v14 = vpop.permute.xlu0 %1407 }
 0xc54   : > { %v4529_v31 = vpop.permute.xlu1 %1409 }
 0xc57   : > { %v4531_v40 = vpop.permute.xlu0 %1411 }
 0xc58   : > { %v1425_v8 = vpop.permute.xlu1 %1424 }
 0xc59   : > { %v1433_v23 = vmul.f32 %v1425_v8, %v3615_v28 }
 0xc5b   : > { %v1427_v34 = vpop.permute.xlu0 %1426  ;;  %1439 = vrot.lane.b32.xlu1 %v1433_v23, %s3380_s20  ;;  %v3168_v23 = vld [vmem:[%s5689_s1 + $0x310] sm:$0xff] }
 0xc5c   : > { %v1429_v39 = vsel %vm1428_vm3, %v1425_v8, %v1427_v34  ;;  %v1435_v32 = vmul.f32 %v1427_v34, %v4508_v26  ;;  %vm1460_vm3 = vcmask 23552   ;;  %v3166_v8 = vld [vmem:[%s5689_s1 + $0x300] sm:$0xff] }
 0xc5d   : > { %v1434_v61 = vmul.f32 %v1429_v39, %v3706_v13  ;;  %v3170_v34 = vld [vmem:[%s5689_s1 + $0x320] sm:$0xff]  ;;  %v3172_v39 = vld [vmem:[%s5689_s1 + $0x330] sm:$0xff] }
 0xc5f   : > { %1443 = vrot.lane.b32.xlu1 %v1435_v32, %s3380_s20  ;;  %1441 = vrot.lane.b32.xlu0 %v1434_v61, %s3380_s20  ;;  %s5899_s20 = smov 125   ;;  %v3174_v32 = vld [vmem:[%s5689_s1 + $0x340] sm:$0xff]  ;;  %v3176_v61 = vld [vmem:[%s5689_s1 + $0x350] sm:$0xff] }
 0xc63   : > { %1458 = vrot.lane.b32.xlu1 %v3145_v37, %s3416_s11  ;;  %1456 = vrot.lane.b32.xlu0 %v3144_v38, %s3416_s11  ;;  %s3420_s11 = smov 6   ;;  %v3178_v37 = vld [vmem:[%s5689_s1 + $0x360] sm:$0xff]  ;;  %v3180_v38 = vld [vmem:[%s5689_s1 + $0x370] sm:$0xff] }
 0xccd   : > { %v4545_v22 = vpop.permute.xlu1 %1439 }
 0xcd1   : > { %v4547_v55 = vpop.permute.xlu1 %1443  ;;  %v4549_v30 = vpop.permute.xlu0 %1441 }
 0xcd5   : > { %v1459_v9 = vpop.permute.xlu1 %1458  ;;  %v1457_v59 = vpop.permute.xlu0 %1456 }
 0xcd6   : > { %v1461_v53 = vsel %vm1460_vm3, %v1457_v59, %v1459_v9  ;;  %v1465_v10 = vmul.f32 %v1457_v59, %v3615_v28  ;;  %v1467_v60 = vmul.f32 %v1459_v9, %v4508_v26  ;;  %vm1492_vm3 = vcmask 31744   ;;  %v3182_v9 = vld [vmem:[%s5689_s1 + $0x380] sm:$0xff]  ;;  %v3184_v59 = vld [vmem:[%s5689_s1 + $0x390] sm:$0xff] }
 0xcd7   : > { %v1466_v24 = vmul.f32 %v1461_v53, %v3706_v13  ;;  %v3186_v53 = vld [vmem:[%s5689_s1 + $0x3a0] sm:$0xff] }
 0xcd8   : > { %1471 = vrot.lane.b32.xlu0 %v1465_v10, %s5899_s20  ;;  %v3188_v10 = vld [vmem:[%s5689_s1 + $0x3b0] sm:$0xff] }
 0xcd9   : > { %1473 = vrot.lane.b32.xlu1 %v1466_v24, %s5899_s20  ;;  %v3190_v24 = vld [vmem:[%s5689_s1 + $0x3c0] sm:$0xff] }
 0xcdc   : > { %1475 = vrot.lane.b32.xlu0 %v1467_v60, %s5899_s20  ;;  %s5903_s20 = smov 20   ;;  %v3192_v60 = vld [vmem:[%s5689_s1 + $0x3d0] sm:$0xff] }
 0xcdd   : > { %1488 = vrot.lane.b32.xlu1 %v3146_v46, %s3417_s23  ;;  %v3194_v46 = vld [vmem:[%s5689_s1 + $0x3e0] sm:$0xff] }
 0xce0   : > { %1490 = vrot.lane.b32.xlu0 %v3147_v33, %s3417_s23  ;;  %s3418_s23 = smov 5   ;;  %v3196_v33 = vld [vmem:[%s5689_s1 + $0x3f0] sm:$0xff] }
 0xd4a   : > { %v4563_v35 = vpop.permute.xlu0 %1471 }
 0xd4b   : > { %v4565_v0 = vpop.permute.xlu1 %1473 }
 0xd4e   : > { %v4567_v6 = vpop.permute.xlu0 %1475 }
 0xd4f   : > { %v1489_v16 = vpop.permute.xlu1 %1488 }
 0xd50   : > { %v1497_v2 = vmul.f32 %v1489_v16, %v3615_v28 }
 0xd52   : > { %v1491_v52 = vpop.permute.xlu0 %1490  ;;  %1503 = vrot.lane.b32.xlu1 %v1497_v2, %s3388_s7  ;;  %v3200_v2 = vld [vmem:[%s5689_s1 + $0x410] sm:$0xff] }
 0xd53   : > { %v1493_v1 = vsel %vm1492_vm3, %v1489_v16, %v1491_v52  ;;  %v1499_v3 = vmul.f32 %v1491_v52, %v4508_v26  ;;  %vm1524_vm3 = vcmask 39936   ;;  %v3198_v16 = vld [vmem:[%s5689_s1 + $0x400] sm:$0xff] }
 0xd54   : > { %v1498_v18 = vmul.f32 %v1493_v1, %v3706_v13  ;;  %v3202_v52 = vld [vmem:[%s5689_s1 + $0x420] sm:$0xff]  ;;  %v3204_v1 = vld [vmem:[%s5689_s1 + $0x430] sm:$0xff] }
 0xd56   : > { %1507 = vrot.lane.b32.xlu1 %v1499_v3, %s3388_s7  ;;  %1505 = vrot.lane.b32.xlu0 %v1498_v18, %s3388_s7  ;;  %s3419_s7 = smov 123   ;;  %v3206_v3 = vld [vmem:[%s5689_s1 + $0x440] sm:$0xff] }
 0xd5a   : > { %1522 = vrot.lane.b32.xlu1 %v3149_v49, %s3418_s23  ;;  %1520 = vrot.lane.b32.xlu0 %v3148_v63, %s3418_s23  ;;  %s5832_s23 = smov 22   ;;  %v3208_v49 = vld [vmem:[%s5689_s1 + $0x450] sm:$0xff] }
 0xdc4   : > { %v4581_v50 = vpop.permute.xlu1 %1503 }
 0xdc8   : > { %v4583_v56 = vpop.permute.xlu1 %1507  ;;  %v4585_v12 = vpop.permute.xlu0 %1505 }
 0xdcc   : > { %v1523_v19 = vpop.permute.xlu1 %1522  ;;  %v1521_v5 = vpop.permute.xlu0 %1520 }
 0xdcd   : > { %v1525_v11 = vsel %vm1524_vm3, %v1521_v5, %v1523_v19  ;;  %v1529_v45 = vmul.f32 %v1521_v5, %v3615_v28  ;;  %v1531_v44 = vmul.f32 %v1523_v19, %v4508_v26  ;;  %vm1557_vm3 = vcmask 48128   ;;  %v3210_v5 = vld [vmem:[%s5689_s1 + $0x460] sm:$0xff] }
 0xdce   : > { %v1530_v20 = vmul.f32 %v1525_v11, %v3706_v13 }
 0xdcf   : > { %1535 = vrot.lane.b32.xlu0 %v1529_v45, %s3419_s7 }
 0xdd0   : > { %1537 = vrot.lane.b32.xlu1 %v1530_v20, %s3419_s7 }
 0xdd3   : > { %1539 = vrot.lane.b32.xlu0 %v1531_v44, %s3419_s7  ;;  %s5916_s7 = smov 112   ;;  %v3212_v44 = vld [vmem:[%s5689_s1 + $0x470] sm:$0xff] }
 0xdd4   : > { %1553 = vrot.lane.b32.xlu1 %v3150_v57, %s3420_s11  ;;  %v3155_v57 = vld [vmem:[%s5689_s1 + $0x2a8] sm:$0xff] }
 0xdd7   : > { %1555 = vrot.lane.b32.xlu0 %v3151_v58, %s3420_s11  ;;  %s3422_s11 = smov 16  }
 0xe41   : > { %v4596_v25 = vpop.permute.xlu0 %1535 }
 0xe42   : > { %v4598_v62 = vpop.permute.xlu1 %1537 }
 0xe45   : > { %v4600_v29 = vpop.permute.xlu0 %1539 }
 0xe46   : > { %v1554_v27 = vpop.permute.xlu1 %1553 }
 0xe47   : > { %v1562_v7 = vmul.f32 %v1554_v27, %v3615_v28 }
 0xe49   : > { %v1556_v15 = vpop.permute.xlu0 %1555  ;;  %1568 = vrot.lane.b32.xlu1 %v1562_v7, %s3421_s19  ;;  %v3157_v7 = vld [vmem:[%s5689_s1 + $0x2b8] sm:$0xff] }
 0xe4a   : > { %v1558_v51 = vsel %vm1557_vm3, %v1554_v27, %v1556_v15  ;;  %v1564_v4 = vmul.f32 %v1556_v15, %v4508_v26  ;;  %vm1590_vm3 = vcmask 130048   ;;  %v3214_v15 = vld [vmem:[%s5689_s1 + $0x480] sm:$0xff] }
 0xe4b   : > { %v1563_v47 = vmul.f32 %v1558_v51, %v3706_v13  ;;  %v3159_v51 = vld [vmem:[%s5689_s1 + $0x2c8] sm:$0xff] }
 0xe4d   : > { %1572 = vrot.lane.b32.xlu1 %v1564_v4, %s3421_s19  ;;  %1570 = vrot.lane.b32.xlu0 %v1563_v47, %s3421_s19  ;;  %s5901_s19 = smov 18   ;;  %v3161_v4 = vld [vmem:[%s5689_s1 + $0x2d8] sm:$0xff]  ;;  %v3163_v47 = vld [vmem:[%s5689_s1 + $0x2e8] sm:$0xff] }
 0xe51   : > { %1588 = vrot.lane.b32.xlu1 %v3153_v41, %s3422_s11  ;;  %1586 = vrot.lane.b32.xlu0 %v3152_v42, %s3422_s11  ;;  %v3165_v41 = vld [vmem:[%s5689_s1 + $0x2f8] sm:$0xff]  ;;  %v3167_v42 = vld [vmem:[%s5689_s1 + $0x308] sm:$0xff]  ;;  %s5939_s11 = smov 96  }
 0xe55   : > { %1618 = vrot.lane.b32.xlu1 %v3154_v54, %s5900_s30  ;;  %v3169_v54 = vld [vmem:[%s5689_s1 + $0x318] sm:$0xff] }
 0xe59   : > { %1649 = vrot.lane.b32.xlu1 %v3156_v36, %s5901_s19  ;;  %v3171_v36 = vld [vmem:[%s5689_s1 + $0x328] sm:$0xff] }
 0xe5d   : > { %1680 = vrot.lane.b32.xlu1 %v3158_v17, %s5902_s18  ;;  %v3173_v17 = vld [vmem:[%s5689_s1 + $0x338] sm:$0xff] }
 0xe61   : > { %1711 = vrot.lane.b32.xlu1 %v3160_v43, %s5903_s20  ;;  %v3175_v43 = vld [vmem:[%s5689_s1 + $0x348] sm:$0xff] }
 0xe65   : > { %1742 = vrot.lane.b32.xlu1 %v3162_v21, %s5904_s9  ;;  %v3177_v21 = vld [vmem:[%s5689_s1 + $0x358] sm:$0xff] }
 0xe69   : > { %1774 = vrot.lane.b32.xlu1 %v3164_v48, %s5832_s23  ;;  %s3445_s23 = smov 46  }
 0xe6d   : > { %1807 = vrot.lane.b32.xlu1 %v3166_v8, %s5830_s8  ;;  %v3179_v8 = vld [vmem:[%s5689_s1 + $0x368] sm:$0xff]  ;;  %s5930_s8 = smov 52  }
 0xe71   : > { %1839 = vrot.lane.b32.xlu1 %v3168_v23, %s5828_s12  ;;  %s5915_s12 = smov 81  }
 0xe75   : > { %1870 = vrot.lane.b32.xlu1 %v3170_v34, %s5817_s22  ;;  %s5824_s22 = smov 54   ;;  %v3181_v34 = vld [vmem:[%s5689_s1 + $0x378] sm:$0xff] }
 0xe79   : > { %1901 = vrot.lane.b32.xlu1 %v3172_v39, %s5818_s21  ;;  %s5907_s21 = smov 64   ;;  %v3183_v39 = vld [vmem:[%s5689_s1 + $0x388] sm:$0xff] }
 0xe7d   : > { %1932 = vrot.lane.b32.xlu1 %v3174_v32, %s5819_s5  ;;  %s5908_s5 = smov 65  }
 0xe81   : > { %1963 = vrot.lane.b32.xlu1 %v3176_v61, %s5905_s29  ;;  %v3185_v61 = vld [vmem:[%s5689_s1 + $0x398] sm:$0xff] }
 0xe85   : > { %1995 = vrot.lane.b32.xlu1 %v3178_v37, %s5827_s28  ;;  %s5914_s28 = smov 80  }
 0xe89   : > { %2028 = vrot.lane.b32.xlu1 %v3180_v38, %s5825_s26  ;;  %s5919_s26 = smov 22   ;;  %v3187_v38 = vld [vmem:[%s5689_s1 + $0x3a8] sm:$0xff] }
 0xe8d   : > { %2060 = vrot.lane.b32.xlu1 %v3182_v9, %s5823_s27  ;;  %s5912_s27 = smov 69   ;;  %v3189_v9 = vld [vmem:[%s5689_s1 + $0x3b8] sm:$0xff] }
 0xe91   : > { %2091 = vrot.lane.b32.xlu1 %v3184_v59, %s5820_s10  ;;  %s5909_s10 = smov 66  }
 0xe95   : > { %2122 = vrot.lane.b32.xlu1 %v3186_v53, %s5821_s17  ;;  %s5910_s17 = smov 67   ;;  %v3191_v53 = vld [vmem:[%s5689_s1 + $0x3c8] sm:$0xff] }
 0xe99   : > { %2153 = vrot.lane.b32.xlu1 %v3188_v10, %s5822_s24  ;;  %s5911_s24 = smov 68  }
 0xe9d   : > { %2184 = vrot.lane.b32.xlu1 %v3190_v24, %s5906_s14  ;;  %v3193_v24 = vld [vmem:[%s5689_s1 + $0x3d8] sm:$0xff] }
 0xea1   : > { %2216 = vrot.lane.b32.xlu1 %v3192_v60, %s5824_s22  ;;  %s5829_s22 = smov 70   ;;  %v3195_v60 = vld [vmem:[%s5689_s1 + $0x3e8] sm:$0xff] }
 0xea5   : > { %2249 = vrot.lane.b32.xlu1 %v3194_v46, %s5907_s21 }
 0xea9   : > { %2280 = vrot.lane.b32.xlu1 %v3196_v33, %s5908_s5  ;;  %v3197_v33 = vld [vmem:[%s5689_s1 + $0x3f8] sm:$0xff] }
 0xead   : > { %2311 = vrot.lane.b32.xlu1 %v3198_v16, %s5909_s10 }
 0xeb1   : > { %2342 = vrot.lane.b32.xlu1 %v3200_v2, %s5910_s17  ;;  %v3199_v2 = vld [vmem:[%s5689_s1 + $0x408] sm:$0xff] }
 0xeb5   : > { %2373 = vrot.lane.b32.xlu1 %v3202_v52, %s5911_s24  ;;  %v3201_v52 = vld [vmem:[%s5689_s1 + $0x418] sm:$0xff] }
 0xeb9   : > { %2404 = vrot.lane.b32.xlu1 %v3204_v1, %s5912_s27 }
 0xebb   : > { %v4718_v18 = vpop.permute.xlu1 %1568 }
 0xebd   : > { %2436 = vrot.lane.b32.xlu1 %v3206_v3, %s5829_s22  ;;  %s5924_s22 = smov 36   ;;  %v3203_v3 = vld [vmem:[%s5689_s1 + $0x428] sm:$0xff] }
 0xebf   : > { %v4724_v63 = vpop.permute.xlu1 %1572  ;;  %v4726_v19 = vpop.permute.xlu0 %1570 }
 0xec0   : > { %5913 = vst [vmem:[#allocation4_spill] sm:$0xff] %v4724_v63 }
 0xec1   : > { %2469 = vrot.lane.b32.xlu1 %v3208_v49, %s5914_s28 }
 0xec3   : > { %v1587_v11 = vpop.permute.xlu0 %1586  ;;  %v4733_v20 = vpop.permute.xlu1 %1588 }
 0xec4   : > { %v1595_v45 = vmul.f32 %v1587_v11, %v3615_v28  ;;  %v1591_v58 = vsel %vm1590_vm3, %v1587_v11, %v4733_v20  ;;  %v3207_v11 = vld [vmem:[%s5689_s1 + $0x448] sm:$0xff]  ;;  %vm5952_vm3 = vcmask 302080  }
 0xec5   : > { %2500 = vrot.lane.b32.xlu1 %v3210_v5, %s5915_s12  ;;  %v1596_v27 = vmul.f32 %v1591_v58, %v3706_v13  ;;  %v3205_v5 = vld [vmem:[%s5689_s1 + $0x438] sm:$0xff]  ;;  %v3211_v58 = vld [vmem:[%s5689_s1 + $0x468] sm:$0xff] }
 0xec6   : > { %1601 = vrot.lane.b32.xlu0 %v1595_v45, %s5916_s7 }
 0xec7   : > { %v1619_v48 = vpop.permute.xlu1 %1618 }
 0xec9   : > { %2532 = vrot.lane.b32.xlu1 %v3212_v44, %s5917_s6  ;;  %v3209_v44 = vld [vmem:[%s5689_s1 + $0x458] sm:$0xff] }
 0xeca   : > { %1620 = vrot.lane.b32.xlu0 %v3155_v57, %s5900_s30  ;;  %s5921_s30 = smov 33  }
 0xecb   : > { %v4799_v23 = vpop.permute.xlu1 %1649 }
 0xecd   : > { %1603 = vrot.lane.b32.xlu1 %v1596_v27, %s5916_s7 }
 0xece   : > { %1651 = vrot.lane.b32.xlu0 %v3157_v7, %s5901_s19  ;;  %s5922_s19 = smov 34   ;;  %v3213_v7 = vld [vmem:[%s5689_s1 + $0x478] sm:$0xff] }
 0xecf   : > { %v4809_v32 = vpop.permute.xlu1 %1680 }
 0xed1   : > { %2564 = vrot.lane.b32.xlu1 %v3214_v15, %s5918_s0 }
 0xed2   : > { %1682 = vrot.lane.b32.xlu0 %v3159_v51, %s5902_s18  ;;  %s5934_s18 = smov 84  }
 0xed3   : > { %v4815_v37 = vpop.permute.xlu1 %1711 }
 0xed6   : > { %1713 = vrot.lane.b32.xlu0 %v3161_v4, %s5903_s20  ;;  %s5936_s20 = smov 85  }
 0xed7   : > { %v4825_v59 = vpop.permute.xlu1 %1742 }
 0xeda   : > { %1744 = vrot.lane.b32.xlu0 %v3163_v47, %s5904_s9  ;;  %s3437_s9 = smov 102  }
 0xedb   : > { %v4831_v10 = vpop.permute.xlu1 %1774 }
 0xede   : > { %1776 = vrot.lane.b32.xlu0 %v3165_v41, %s5919_s26  ;;  %s5923_s26 = smov 35   ;;  %v1597_v41 = vmul.f32 %v4733_v20, %v4508_v26  ;;  %v3217_v20 = vld [vmem:[%s5689_s1 + $0x498] sm:$0xff] }
 0xedf   : > { %v4841_v46 = vpop.permute.xlu1 %1807 }
 0xee2   : > { %1809 = vrot.lane.b32.xlu0 %v3167_v42, %s5920_s15 }
 0xee3   : > { %v4847_v16 = vpop.permute.xlu1 %1839 }
 0xee6   : > { %1841 = vrot.lane.b32.xlu0 %v3169_v54, %s5921_s30  ;;  %s5928_s30 = smov 50   ;;  %v1626_v54 = vmul.f32 %v1619_v48, %v3615_v28 }
 0xee7   : > { %v4857_v1 = vpop.permute.xlu1 %1870 }
 0xeea   : > { %1872 = vrot.lane.b32.xlu0 %v3171_v36, %s5922_s19  ;;  %s5925_s19 = smov 38  }
 0xeeb   : > { %v4863_v49 = vpop.permute.xlu1 %1901 }
 0xeee   : > { %1903 = vrot.lane.b32.xlu0 %v3173_v17, %s5923_s26  ;;  %s5926_s26 = smov 48   ;;  %v3215_v17 = vld [vmem:[%s5689_s1 + $0x488] sm:$0xff] }
 0xeef   : > { %v4873_v45 = vpop.permute.xlu1 %1932 }
 0xef2   : > { %1934 = vrot.lane.b32.xlu0 %v3175_v43, %s5924_s22  ;;  %s5935_s22 = smov 110  }
 0xef3   : > { %v4879_v57 = vpop.permute.xlu1 %1963 }
 0xef6   : > { %1965 = vrot.lane.b32.xlu0 %v3177_v21, %s5905_s29  ;;  %s5927_s29 = smov 49  }
 0xef7   : > { %v4891_v15 = vpop.permute.xlu1 %1995 }
 0xefa   : > { %1997 = vrot.lane.b32.xlu0 %v3179_v8, %s5925_s19  ;;  %s5929_s19 = smov 51  }
 0xefb   : > { %v4900_v36 = vpop.permute.xlu1 %2028 }
 0xefe   : > { %2030 = vrot.lane.b32.xlu0 %v3181_v34, %s5926_s26 }
 0xeff   : > { %v4911_v21 = vpop.permute.xlu1 %2060 }
 0xf02   : > { %2062 = vrot.lane.b32.xlu0 %v3183_v39, %s5927_s29  ;;  %v3216_v39 = vld [vmem:[%s5689_s1 + $0x490] sm:$0xff] }
 0xf06   : > { %2093 = vrot.lane.b32.xlu0 %v3185_v61, %s5928_s30  ;;  %s5931_s30 = smov 54  }
 0xf0a   : > { %2124 = vrot.lane.b32.xlu0 %v3187_v38, %s5929_s19  ;;  %s3449_s19 = smov 42  }
 0xf0e   : > { %2155 = vrot.lane.b32.xlu0 %v3189_v9, %s5930_s8  ;;  %v3218_v9 = vld [vmem:[%s5689_s1 + $0x4a0] sm:$0xff]  ;;  %s5966_s8 = smov 76  }
 0xf12   : > { %2186 = vrot.lane.b32.xlu0 %v3191_v53, %s5906_s14  ;;  %s5933_s14 = smov 111   ;;  %v4926_v53 = vpop.permute.xlu1 %2091 }
 0xf16   : > { %2218 = vrot.lane.b32.xlu0 %v3193_v24, %s5931_s30  ;;  %s5945_s30 = smov 93  }
 0xf1a   : > { %2251 = vrot.lane.b32.xlu0 %v3195_v60, %s5907_s21 }
 0xf1e   : > { %2282 = vrot.lane.b32.xlu0 %v3197_v33, %s5908_s5  ;;  %s3436_s5 = smov 101  }
 0xf22   : > { %2313 = vrot.lane.b32.xlu0 %v3199_v2, %s5909_s10  ;;  %s5937_s10 = smov 109  }
 0xf26   : > { %2344 = vrot.lane.b32.xlu0 %v3201_v52, %s5910_s17  ;;  %s5932_s17 = smov 70   ;;  %v1657_v52 = vmul.f32 %v4799_v23, %v3615_v28 }
 0xf2a   : > { %2375 = vrot.lane.b32.xlu0 %v3203_v3, %s5911_s24  ;;  %v4937_v3 = vpop.permute.xlu1 %2122  ;;  %s3429_s24 = smov 86  }
 0xf2e   : > { %2406 = vrot.lane.b32.xlu0 %v3205_v5, %s5912_s27  ;;  %s3434_s27 = smov 99  }
 0xf32   : > { %2438 = vrot.lane.b32.xlu0 %v3207_v11, %s5932_s17  ;;  %v1688_v11 = vmul.f32 %v4809_v32, %v3615_v28  ;;  %s3433_s17 = smov 98  }
 0xf36   : > { %2471 = vrot.lane.b32.xlu0 %v3209_v44, %s5914_s28  ;;  %v3219_v44 = vld [vmem:[%s5689_s1 + $0x4a8] sm:$0xff] }
 0xf38   : > { %v4885_v27 = vpop.permute.xlu0 %1601 }
 0xf3a   : > { %2502 = vrot.lane.b32.xlu0 %v3211_v58, %s5915_s12  ;;  %s5940_s12 = smov 95  }
 0xf3c   : > { %v1621_v51 = vpop.permute.xlu0 %1620 }
 0xf3d   : > { %v1622_v4 = vsel %vm528_vm7, %v1619_v48, %v1621_v51  ;;  %v1628_v48 = vmul.f32 %v1621_v51, %v4508_v26  ;;  %vm1778_vm7 = vcmask 179200  }
 0xf3e   : > { %v1627_v47 = vmul.f32 %v1622_v4, %v3706_v13  ;;  %2534 = vrot.lane.b32.xlu0 %v3213_v7, %s5917_s6  ;;  %v4954_v7 = vpop.permute.xlu1 %2153  ;;  %s3430_s6 = smov 107  }
 0xf40   : > { %v1652_v42 = vpop.permute.xlu0 %1651  ;;  %1634 = vrot.lane.b32.xlu1 %v1627_v47, %s5933_s14  ;;  %v3220_v47 = vld [vmem:[%s5689_s1 + $0x4b0] sm:$0xff] }
 0xf41   : > { %v1659_v34 = vmul.f32 %v1652_v42, %v4508_v26  ;;  %v1653_v38 = vsel %vm545_vm8, %v4799_v23, %v1652_v42  ;;  %v3221_v23 = vld [vmem:[%s5689_s1 + $0x4b8] sm:$0xff]  ;;  %vm1811_vm8 = vcmask 261120  }
 0xf42   : > { %1605 = vrot.lane.b32.xlu0 %v1597_v41, %s5916_s7  ;;  %v1658_v60 = vmul.f32 %v1653_v38, %v3706_v13  ;;  %v4965_v41 = vpop.permute.xlu1 %2184  ;;  %s5973_s7 = smov 63  }
 0xf44   : > { %v1683_v43 = vpop.permute.xlu0 %1682  ;;  %1632 = vrot.lane.b32.xlu1 %v1626_v54, %s5933_s14 }
 0xf45   : > { %v1684_v24 = vsel %vm579_vm9, %v4809_v32, %v1683_v43  ;;  %v1690_v32 = vmul.f32 %v1683_v43, %v4508_v26  ;;  %vm5941_vm9 = vcmask 277504  }
 0xf46   : > { %2566 = vrot.lane.b32.xlu0 %v3215_v17, %s5918_s0  ;;  %v1689_v2 = vmul.f32 %v1684_v24, %v3706_v13  ;;  %v3222_v17 = vld [vmem:[%s5689_s1 + $0x4c0] sm:$0xff]  ;;  %v3223_v24 = vld [vmem:[%s5689_s1 + $0x4c8] sm:$0xff]  ;;  %s5983_s0 = smov 60  }
 0xf48   : > { %v1714_v8 = vpop.permute.xlu0 %1713  ;;  %2598 = vrot.lane.b32.xlu1 %v3217_v20, %s5934_s18 }
 0xf49   : > { %v1721_v4 = vmul.f32 %v1714_v8, %v4508_v26  ;;  %v1715_v54 = vsel %vm613_vm10, %v4815_v37, %v1714_v8  ;;  %v1719_v8 = vmul.f32 %v4815_v37, %v3615_v28  ;;  %v3225_v37 = vld [vmem:[%s5689_s1 + $0x4d8] sm:$0xff]  ;;  %vm5946_vm10 = vcmask 285696  }
 0xf4a   : > { %1636 = vrot.lane.b32.xlu0 %v1628_v48, %s5933_s14  ;;  %v1720_v20 = vmul.f32 %v1715_v54, %v3706_v13  ;;  %s3439_s14 = smov 90  }
 0xf4c   : > { %v1745_v61 = vpop.permute.xlu0 %1744  ;;  %1667 = vrot.lane.b32.xlu1 %v1659_v34, %s5935_s22  ;;  %v4981_v34 = vpop.permute.xlu1 %2216 }
 0xf4d   : > { %v1746_v43 = vsel %vm648_vm11, %v4825_v59, %v1745_v61  ;;  %vm5947_vm11 = vcmask 293888  }
 0xf4e   : > { %2596 = vrot.lane.b32.xlu0 %v3216_v39, %s5934_s18  ;;  %v1751_v39 = vmul.f32 %v1746_v43, %v3706_v13  ;;  %s5942_s18 = smov 94  }
 0xf50   : > { %v1777_v33 = vpop.permute.xlu0 %1776  ;;  %2628 = vrot.lane.b32.xlu1 %v3218_v9, %s5936_s20  ;;  %v1750_v9 = vmul.f32 %v4825_v59, %v3615_v28 }
 0xf52   : > { %1665 = vrot.lane.b32.xlu0 %v1658_v60, %s5935_s22  ;;  %v4995_v60 = vpop.permute.xlu1 %2249 }
 0xf54   : > { %v4939_v5 = vpop.permute.xlu0 %1809  ;;  %1696 = vrot.lane.b32.xlu1 %v1689_v2, %s5937_s10 }
 0xf56   : > { %1663 = vrot.lane.b32.xlu0 %v1657_v52, %s5935_s22  ;;  %v1752_v52 = vmul.f32 %v1745_v61, %v4508_v26  ;;  %s3431_s22 = smov 97   ;;  %v1779_v61 = vsel %vm1778_vm7, %v4831_v10, %v1777_v33  ;;  %vm2032_vm7 = vcmask 392192  }
 0xf58   : > { %v4948_v58 = vpop.permute.xlu0 %1841  ;;  %1694 = vrot.lane.b32.xlu1 %v1688_v11, %s5937_s10  ;;  %v5006_v11 = vpop.permute.xlu1 %2280 }
 0xf5a   : > { %2630 = vrot.lane.b32.xlu0 %v3219_v44, %s5936_s20  ;;  %v1785_v44 = vmul.f32 %v1777_v33, %v4508_v26  ;;  %s3432_s20 = smov 106   ;;  %v1783_v33 = vmul.f32 %v4831_v10, %v3615_v28  ;;  %v3229_v10 = vld [vmem:[%s5689_s1 + $0x4f8] sm:$0xff] }
 0xf5c   : > { %v4958_v51 = vpop.permute.xlu0 %1872  ;;  %2662 = vrot.lane.b32.xlu1 %v3221_v23, %s3429_s24  ;;  %v3224_v23 = vld [vmem:[%s5689_s1 + $0x4d0] sm:$0xff]  ;;  %v5021_v54 = vpop.permute.xlu1 %2311 }
 0xf5e   : > { %1698 = vrot.lane.b32.xlu0 %v1690_v32, %s5937_s10  ;;  %s3442_s10 = smov 59  }
 0xf60   : > { %v4967_v42 = vpop.permute.xlu0 %1903  ;;  %1729 = vrot.lane.b32.xlu1 %v1721_v4, %s5938_s25  ;;  %v3226_v4 = vld [vmem:[%s5689_s1 + $0x4e0] sm:$0xff] }
 0xf62   : > { %2660 = vrot.lane.b32.xlu0 %v3220_v47, %s3429_s24  ;;  %v1812_v47 = vsel %vm1811_vm8, %v4841_v46, %v4939_v5  ;;  %s5949_s24 = smov 92  }
 0xf64   : > { %v4978_v48 = vpop.permute.xlu0 %1934  ;;  %2693 = vrot.lane.b32.xlu1 %v3222_v17, %s5939_s11  ;;  %v1784_v17 = vmul.f32 %v1779_v61, %v3706_v13  ;;  %v3228_v61 = vld [vmem:[%s5689_s1 + $0x4f0] sm:$0xff] }
 0xf66   : > { %1727 = vrot.lane.b32.xlu0 %v1720_v20, %s5938_s25  ;;  %v1817_v20 = vmul.f32 %v1812_v47, %v3706_v13  ;;  %v3230_v47 = vld [vmem:[%s5689_s1 + $0x500] sm:$0xff] }
 0xf68   : > { %v4987_v38 = vpop.permute.xlu0 %1965  ;;  %1758 = vrot.lane.b32.xlu1 %v1751_v39, %s3430_s6 }
 0xf6a   : > { %1725 = vrot.lane.b32.xlu0 %v1719_v8, %s5938_s25  ;;  %v1816_v8 = vmul.f32 %v4841_v46, %v3615_v28  ;;  %v1818_v46 = vmul.f32 %v4939_v5, %v4508_v26  ;;  %v1843_v5 = vsel %vm683_vm12, %v4847_v16, %v4948_v58  ;;  %vm1999_vm12 = vcmask 310272   ;;  %s3438_s25 = smov 91  }
 0xf6c   : > { %v4997_v2 = vpop.permute.xlu0 %1997  ;;  %1756 = vrot.lane.b32.xlu1 %v1750_v9, %s3430_s6  ;;  %v5034_v9 = vpop.permute.xlu1 %2342 }
 0xf6e   : > { %2695 = vrot.lane.b32.xlu0 %v3223_v24, %s5939_s11  ;;  %v3227_v24 = vld [vmem:[%s5689_s1 + $0x4e8] sm:$0xff] }
 0xf70   : > { %v5004_v59 = vpop.permute.xlu0 %2030  ;;  %2726 = vrot.lane.b32.xlu1 %v3225_v37, %s3431_s22 }
 0xf72   : > { %1760 = vrot.lane.b32.xlu0 %v1752_v52, %s3430_s6  ;;  %v5045_v52 = vpop.permute.xlu1 %2373  ;;  %s5960_s6 = smov 78  }
 0xf74   : > { %v5012_v32 = vpop.permute.xlu0 %2062  ;;  %1793 = vrot.lane.b32.xlu1 %v1785_v44, %s3432_s20 }
 0xf76   : > { %2724 = vrot.lane.b32.xlu0 %v3224_v23, %s3431_s22  ;;  %v1849_v23 = vmul.f32 %v4948_v58, %v4508_v26  ;;  %v1847_v58 = vmul.f32 %v4847_v16, %v3615_v28  ;;  %v3233_v16 = vld [vmem:[%s5689_s1 + $0x518] sm:$0xff]  ;;  %s5976_s22 = smov 62  }
 0xf78   : > { %v5024_v43 = vpop.permute.xlu0 %2093  ;;  %2757 = vrot.lane.b32.xlu1 %v3226_v4, %s3433_s17 }
 0xf7a   : > { %1791 = vrot.lane.b32.xlu0 %v1784_v17, %s3432_s20  ;;  %v5066_v17 = vpop.permute.xlu1 %2404 }
 0xf7c   : > { %v5029_v39 = vpop.permute.xlu0 %2124  ;;  %1824 = vrot.lane.b32.xlu1 %v1817_v20, %s5939_s11  ;;  %v1874_v20 = vsel %vm5941_vm9, %v4857_v1, %v4958_v51  ;;  %vm5954_vm9 = vcmask 400384  }
 0xf7e   : > { %1789 = vrot.lane.b32.xlu0 %v1783_v33, %s3432_s20  ;;  %v1848_v33 = vmul.f32 %v1843_v5, %v3706_v13 }
 0xf80   : > { %v5039_v37 = vpop.permute.xlu0 %2155  ;;  %1822 = vrot.lane.b32.xlu1 %v1816_v8, %s5939_s11 }
 0xf82   : > { %2759 = vrot.lane.b32.xlu0 %v3227_v24, %s3433_s17  ;;  %v1879_v24 = vmul.f32 %v1874_v20, %v3706_v13  ;;  %s3444_s17 = smov 47  }
 0xf84   : > { %v5049_v44 = vpop.permute.xlu0 %2186  ;;  %2792 = vrot.lane.b32.xlu1 %v3229_v10, %s3434_s27  ;;  %v5078_v10 = vpop.permute.xlu1 %2436 }
 0xf86   : > { %1826 = vrot.lane.b32.xlu0 %v1818_v46, %s5939_s11  ;;  %s3435_s11 = smov 100  }
 0xf88   : > { %v5057_v4 = vpop.permute.xlu0 %2218  ;;  %1857 = vrot.lane.b32.xlu1 %v1849_v23, %s5940_s12  ;;  %v1878_v23 = vmul.f32 %v4857_v1, %v3615_v28  ;;  %v1880_v1 = vmul.f32 %v4958_v51, %v4508_v26  ;;  %v1905_v51 = vsel %vm5946_vm10, %v4863_v49, %v4967_v42  ;;  %vm5959_vm10 = vcmask 416768  }
 0xf8a   : > { %2790 = vrot.lane.b32.xlu0 %v3228_v61, %s3434_s27  ;;  %v3231_v61 = vld [vmem:[%s5689_s1 + $0x508] sm:$0xff]  ;;  %s3450_s27 = smov 31  }
 0xf8c   : > { %v5072_v8 = vpop.permute.xlu0 %2251  ;;  %2823 = vrot.lane.b32.xlu1 %v3230_v47, %s3435_s11  ;;  %v5095_v47 = vpop.permute.xlu1 %2469 }
 0xf8d   : > { %5943 = vst [vmem:[#allocation5_spill] sm:$0xff] %v5095_v47 }
 0xf8e   : > { %1855 = vrot.lane.b32.xlu0 %v1848_v33, %s5940_s12  ;;  %v1911_v33 = vmul.f32 %v4967_v42, %v4508_v26  ;;  %v1909_v42 = vmul.f32 %v4863_v49, %v3615_v28  ;;  %v1973_v49 = vmul.f32 %v4987_v38, %v4508_v26 }
 0xf90   : > { %v5080_v46 = vpop.permute.xlu0 %2282  ;;  %1886 = vrot.lane.b32.xlu1 %v1879_v24, %s5942_s18  ;;  %v3232_v24 = vld [vmem:[%s5689_s1 + $0x510] sm:$0xff] }
 0xf92   : > { %1853 = vrot.lane.b32.xlu0 %v1847_v58, %s5940_s12  ;;  %v5107_v58 = vpop.permute.xlu1 %2500  ;;  %s5956_s12 = smov 79  }
 0xf93   : > { %5944 = vst [vmem:[#allocation7_spill] sm:$0xff] %v5107_v58 }
 0xf94   : > { %v5089_v5 = vpop.permute.xlu0 %2313  ;;  %1884 = vrot.lane.b32.xlu1 %v1878_v23, %s5942_s18 }
 0xf96   : > { %2825 = vrot.lane.b32.xlu0 %v3231_v61, %s3435_s11  ;;  %v3234_v61 = vld [vmem:[%s5689_s1 + $0x520] sm:$0xff]  ;;  %s3440_s11 = smov 75  }
 0xf98   : > { %v5099_v20 = vpop.permute.xlu0 %2344  ;;  %2858 = vrot.lane.b32.xlu1 %v3233_v16, %s3436_s5  ;;  %v1936_v16 = vsel %vm5947_vm11, %v4873_v45, %v4978_v48  ;;  %vm5961_vm11 = vcmask 408576  }
 0xf99   : > { %v1941_v58 = vmul.f32 %v1936_v16, %v3706_v13 }
 0xf9a   : > { %1888 = vrot.lane.b32.xlu0 %v1880_v1, %s5942_s18  ;;  %v1910_v1 = vmul.f32 %v1905_v51, %v3706_v13  ;;  %v1940_v51 = vmul.f32 %v4873_v45, %v3615_v28  ;;  %v2000_v45 = vsel %vm1999_vm12, %v4891_v15, %v4997_v2  ;;  %vm5965_vm12 = vcmask 433152   ;;  %s3441_s18 = smov 74  }
 0xf9c   : > { %v5109_v23 = vpop.permute.xlu0 %2375  ;;  %1919 = vrot.lane.b32.xlu1 %v1911_v33, %s5945_s30  ;;  %v5124_v33 = vpop.permute.xlu1 %2532 }
 0xf9d   : > { %5948 = vst [vmem:[#allocation6_spill] sm:$0xff] %v5124_v33 }
 0xf9e   : > { %2856 = vrot.lane.b32.xlu0 %v3232_v24, %s3436_s5 }
 0xfa0   : > { %v5122_v47 = vpop.permute.xlu0 %2406  ;;  %2889 = vrot.lane.b32.xlu1 %v3234_v61, %s3437_s9  ;;  %v3235_v61 = vld [vmem:[%s5689_s1 + $0x528] sm:$0xff]  ;;  %v5139_v33 = vpop.permute.xlu1 %1603 }
 0xfa2   : > { %1917 = vrot.lane.b32.xlu0 %v1910_v1, %s5945_s30 }
 0xfa4   : > { %v5130_v24 = vpop.permute.xlu0 %2438  ;;  %1948 = vrot.lane.b32.xlu1 %v1941_v58, %s5949_s24  ;;  %v1942_v58 = vmul.f32 %v4978_v48, %v4508_v26  ;;  %v2004_v48 = vmul.f32 %v4891_v15, %v3615_v28  ;;  %v2064_v15 = vsel %vm5954_vm9, %v4911_v21, %v5012_v32  ;;  %vm2220_vm9 = vcmask 441344  }
 0xfa6   : > { %1915 = vrot.lane.b32.xlu0 %v1909_v42, %s5945_s30  ;;  %v5152_v42 = vpop.permute.xlu1 %2564  ;;  %s3443_s30 = smov 58  }
 0xfa7   : > { %5951 = vst [vmem:[#allocation11_spill] sm:$0xff] %v5152_v42  ;;  %v1971_v42 = vmul.f32 %v4879_v57, %v3615_v28 }
 0xfa8   : > { %v5141_v16 = vpop.permute.xlu0 %2471  ;;  %1946 = vrot.lane.b32.xlu1 %v1940_v51, %s5949_s24  ;;  %v1967_v51 = vsel %vm5952_vm3, %v4879_v57, %v4987_v38  ;;  %v2033_v57 = vsel %vm2032_vm7, %v4900_v36, %v5004_v59  ;;  %vm5967_vm3 = vcmask 424960  }
 0xfa9   : > { %5950 = vst [vmem:[#allocation8_spill] sm:$0xff] %v5141_v16  ;;  %v2005_v16 = vmul.f32 %v2000_v45, %v3706_v13  ;;  %v2039_v45 = vmul.f32 %v5004_v59, %v4508_v26  ;;  %v2037_v59 = vmul.f32 %v4900_v36, %v3615_v28  ;;  %v2095_v36 = vsel %vm5961_vm11, %v4926_v53, %v5024_v43 }
 0xfaa   : > { %2891 = vrot.lane.b32.xlu0 %v3235_v61, %s3437_s9  ;;  %v1972_v61 = vmul.f32 %v1967_v51, %v3706_v13  ;;  %vm5978_vm11 = vcmask 556032   ;;  %s3447_s9 = smov 44  }
 0xfac   : > { %v5150_v1 = vpop.permute.xlu0 %2502  ;;  %1981 = vrot.lane.b32.xlu1 %v1973_v49, %s3438_s25 }
 0xfae   : > { %1950 = vrot.lane.b32.xlu0 %v1942_v58, %s5949_s24  ;;  %s3448_s24 = smov 43  }
 0xfb0   : > { %v5160_v63 = vpop.permute.xlu0 %2534  ;;  %2012 = vrot.lane.b32.xlu1 %v2005_v16, %s3439_s14  ;;  %v2006_v16 = vmul.f32 %v4997_v2, %v4508_v26  ;;  %v2068_v2 = vmul.f32 %v4911_v21, %v3615_v28  ;;  %v2126_v21 = vsel %vm5959_vm10, %v4937_v3, %v5029_v39  ;;  %vm5974_vm10 = vcmask 531456  }
 0xfb1   : > { %5953 = vst [vmem:[#allocation9_spill] sm:$0xff] %v5160_v63 }
 0xfb2   : > { %1979 = vrot.lane.b32.xlu0 %v1972_v61, %s3438_s25  ;;  %v5164_v49 = vpop.permute.xlu1 %1634  ;;  %v2069_v61 = vmul.f32 %v2064_v15, %v3706_v13 }
 0xfb4   : > { %v5168_v38 = vpop.permute.xlu0 %1605  ;;  %2010 = vrot.lane.b32.xlu1 %v2004_v48, %s3439_s14  ;;  %v2038_v48 = vmul.f32 %v2033_v57, %v3706_v13 }
 0xfb6   : > { %1977 = vrot.lane.b32.xlu0 %v1971_v42, %s3438_s25  ;;  %v5172_v58 = vpop.permute.xlu1 %1632  ;;  %s3451_s25 = smov 30  }
 0xfb8   : > { %v5179_v51 = vpop.permute.xlu0 %2566  ;;  %2047 = vrot.lane.b32.xlu1 %v2039_v45, %s5914_s28 }
 0xfba   : > { %2014 = vrot.lane.b32.xlu0 %v2006_v16, %s3439_s14  ;;  %v5186_v42 = vpop.permute.xlu1 %2598  ;;  %v2101_v16 = vmul.f32 %v5024_v43, %v4508_v26  ;;  %v2099_v43 = vmul.f32 %v4926_v53, %v3615_v28  ;;  %v2157_v53 = vsel %vm5967_vm3, %v4954_v7, %v5039_v37  ;;  %vm5981_vm3 = vcmask 1014784   ;;  %s3453_s14 = smov 28  }
 0xfbb   : > { %5955 = vst [vmem:[#allocation10_spill] sm:$0xff] %v5186_v42 }
 0xfbc   : > { %v5189_v63 = vpop.permute.xlu0 %1636  ;;  %2076 = vrot.lane.b32.xlu1 %v2069_v61, %s5956_s12  ;;  %v2070_v61 = vmul.f32 %v5012_v32, %v4508_v26  ;;  %v2130_v32 = vmul.f32 %v4937_v3, %v3615_v28  ;;  %v2188_v3 = vsel %vm5965_vm12, %v4965_v41, %v5049_v44  ;;  %vm1541_vm12 = vcmask 1006592  }
 0xfbe   : > { %2045 = vrot.lane.b32.xlu0 %v2038_v48, %s5914_s28  ;;  %v5195_v45 = vpop.permute.xlu1 %1667 }
 0xfc0   : > { %v5199_v15 = vpop.permute.xlu0 %2596  ;;  %2074 = vrot.lane.b32.xlu1 %v2068_v2, %s5956_s12  ;;  %v2131_v2 = vmul.f32 %v2126_v21, %v3706_v13 }
 0xfc1   : > { %5957 = vst [vmem:[#allocation13_spill] sm:$0xff] %v5199_v15  ;;  %v2100_v15 = vmul.f32 %v2095_v36, %v3706_v13 }
 0xfc2   : > { %2043 = vrot.lane.b32.xlu0 %v2037_v59, %s5914_s28  ;;  %v5205_v57 = vpop.permute.xlu1 %2628  ;;  %s5962_s28 = smov 77  }
 0xfc3   : > { %5958 = vst [vmem:[#allocation12_spill] sm:$0xff] %v5205_v57 }
 0xfc4   : > { %v5212_v48 = vpop.permute.xlu0 %1665  ;;  %2109 = vrot.lane.b32.xlu1 %v2101_v16, %s5960_s6 }
 0xfc6   : > { %2078 = vrot.lane.b32.xlu0 %v2070_v61, %s5956_s12  ;;  %v5220_v59 = vpop.permute.xlu1 %1696  ;;  %v2163_v61 = vmul.f32 %v5039_v37, %v4508_v26  ;;  %v2161_v37 = vmul.f32 %v4954_v7, %v3615_v28  ;;  %v2221_v7 = vsel %vm2220_vm9, %v4981_v34, %v5057_v4  ;;  %vm5982_vm9 = vcmask 547840   ;;  %s3454_s12 = smov 27  }
 0xfc8   : > { %v5223_v57 = vpop.permute.xlu0 %1663  ;;  %2138 = vrot.lane.b32.xlu1 %v2131_v2, %s5962_s28 }
 0xfca   : > { %2107 = vrot.lane.b32.xlu0 %v2100_v15, %s5960_s6  ;;  %v5229_v16 = vpop.permute.xlu1 %1694  ;;  %v2132_v15 = vmul.f32 %v5029_v39, %v4508_v26  ;;  %v2192_v39 = vmul.f32 %v4965_v41, %v3615_v28  ;;  %v2253_v41 = vsel %vm1210_vm4, %v4995_v60, %v5072_v8 }
 0xfcc   : > { %v5233_v21 = vpop.permute.xlu0 %2630  ;;  %2136 = vrot.lane.b32.xlu1 %v2130_v32, %s5962_s28  ;;  %v2193_v32 = vmul.f32 %v2188_v3, %v3706_v13 }
 0xfcd   : > { %5963 = vst [vmem:[#allocation14_spill] sm:$0xff] %v5233_v21 }
 0xfce   : > { %2105 = vrot.lane.b32.xlu0 %v2099_v43, %s5960_s6  ;;  %v5239_v36 = vpop.permute.xlu1 %2662  ;;  %s3455_s6 = smov 26  }
 0xfcf   : > { %5964 = vst [vmem:[#allocation17_spill] sm:$0xff] %v5239_v36  ;;  %v2162_v36 = vmul.f32 %v2157_v53, %v3706_v13 }
 0xfd0   : > { %v5246_v2 = vpop.permute.xlu0 %1698  ;;  %2171 = vrot.lane.b32.xlu1 %v2163_v61, %s5966_s8 }
 0xfd2   : > { %2140 = vrot.lane.b32.xlu0 %v2132_v15, %s5962_s28  ;;  %v5254_v43 = vpop.permute.xlu1 %1729  ;;  %v2227_v15 = vmul.f32 %v5057_v4, %v4508_v26  ;;  %v2225_v4 = vmul.f32 %v4981_v34, %v3615_v28  ;;  %v2284_v34 = vsel %vm5974_vm10, %v5006_v11, %v5080_v46  ;;  %vm1574_vm10 = vcmask 998400  }
 0xfd4   : > { %v5257_v21 = vpop.permute.xlu0 %2660  ;;  %2200 = vrot.lane.b32.xlu1 %v2193_v32, %s3440_s11 }
 0xfd5   : > { %5968 = vst [vmem:[#allocation15_spill] sm:$0xff] %v5257_v21  ;;  %v2226_v21 = vmul.f32 %v2221_v7, %v3706_v13  ;;  %v1374_v7 = vld [vmem:[%s3609_s13] sm:$0xff] }
 0xfd6   : > { %2169 = vrot.lane.b32.xlu0 %v2162_v36, %s5966_s8  ;;  %v5262_v61 = vpop.permute.xlu1 %2693  ;;  %v2194_v36 = vmul.f32 %v5049_v44, %v4508_v26  ;;  %v2257_v44 = vmul.f32 %v4995_v60, %v3615_v28  ;;  %v2315_v60 = vsel %vm403_vm5, %v5021_v54, %v5089_v5  ;;  %vm5977_vm5 = vcmask 1039360  }
 0xfd7   : > { %5969 = vst [vmem:[#allocation16_spill] sm:$0xff] %v5262_v61 }
 0xfd8   : > { %v5266_v3 = vpop.permute.xlu0 %1727  ;;  %2198 = vrot.lane.b32.xlu1 %v2192_v39, %s3440_s11  ;;  %v2258_v39 = vmul.f32 %v2253_v41, %v3706_v13  ;;  %v2290_v41 = vmul.f32 %v5080_v46, %v4508_v26  ;;  %v2319_v46 = vmul.f32 %v5021_v54, %v3615_v28 }
 0xfda   : > { %2167 = vrot.lane.b32.xlu0 %v2161_v37, %s5966_s8  ;;  %v5271_v53 = vpop.permute.xlu1 %1758 }
 0xfdc   : > { %v5278_v32 = vpop.permute.xlu0 %1725  ;;  %2235 = vrot.lane.b32.xlu1 %v2227_v15, %s3441_s18 }
 0xfde   : > { %2202 = vrot.lane.b32.xlu0 %v2194_v36, %s3440_s11  ;;  %v5283_v37 = vpop.permute.xlu1 %1756 }
 0xfe0   : > { %v5286_v61 = vpop.permute.xlu0 %2695  ;;  %2265 = vrot.lane.b32.xlu1 %v2258_v39, %s5907_s21 }
 0xfe1   : > { %5970 = vst [vmem:[#allocation19_spill] sm:$0xff] %v5286_v61  ;;  %v3138_v61 = vld [vmem:[%s5689_s1 + $0x220] sm:$0xff] }
 0xfe2   : > { %2233 = vrot.lane.b32.xlu0 %v2226_v21, %s3441_s18  ;;  %v5291_v15 = vpop.permute.xlu1 %2726  ;;  %v2259_v21 = vmul.f32 %v5072_v8, %v4508_v26  ;;  %v2289_v8 = vmul.f32 %v2284_v34, %v3706_v13 }
 0xfe3   : > { %5971 = vst [vmem:[#allocation18_spill] sm:$0xff] %v5291_v15 }
 0xfe4   : > { %v5295_v42 = vpop.permute.xlu0 %1760  ;;  %2263 = vrot.lane.b32.xlu1 %v2257_v44, %s5907_s21  ;;  %v1375_v44 = vunpack.c.l.bf16 %v1374_v7 }
 0xfe6   : > { %2231 = vrot.lane.b32.xlu0 %v2225_v4, %s3441_s18  ;;  %v5300_v36 = vpop.permute.xlu1 %1793  ;;  %v2320_v4 = vmul.f32 %v2315_v60, %v3706_v13 }
 0xfe8   : > { %v5308_v39 = vpop.permute.xlu0 %2724  ;;  %2298 = vrot.lane.b32.xlu1 %v2290_v41, %s5973_s7  ;;  %v1380_v41 = vmul.f32 %v3138_v61, %v1375_v44  ;;  %v1445_v61 = vsel %vm280_vm2, %v4545_v22, %v4549_v30  ;;  %v2352_v44 = vmul.f32 %v5099_v20, %v4508_v26  ;;  %v2321_v22 = vmul.f32 %v5089_v5, %v4508_v26 }
 0xfe9   : > { %5972 = vst [vmem:[#allocation20_spill] sm:$0xff] %v5308_v39  ;;  %v1542_v5 = vsel %vm1541_vm12, %v4596_v25, %v4598_v62  ;;  %v2381_v25 = vmul.f32 %v5045_v52, %v3615_v28 }
 0xfea   : > { %2267 = vrot.lane.b32.xlu0 %v2259_v21, %s5907_s21  ;;  %v5316_v15 = vpop.permute.xlu1 %2757  ;;  %v1413_v21 = vsel %vm5977_vm5, %v4527_v14, %v4529_v31  ;;  %v1477_v14 = vsel %vm630_vm6, %v4563_v35, %v4565_v0  ;;  %s5980_s21 = smov 61   ;;  %v2346_v35 = vsel %vm5982_vm9, %v5034_v9, %v5099_v20  ;;  %v3139_v20 = vld [vmem:[%s5689_s1 + $0x228] sm:$0xff]  ;;  %vm5984_vm5 = vcmask 916480  }
 0xfeb   : > { %5975 = vst [vmem:[#allocation23_spill] sm:$0xff] %v5316_v15  ;;  %v2288_v15 = vmul.f32 %v5006_v11, %v3615_v28  ;;  %v1417_v54 = vadd.f32 %v1413_v21, %v1380_v41  ;;  %v2377_v11 = vsel %vm5978_vm11, %v5045_v52, %v5109_v23  ;;  %vm2440_vm11 = vcmask 572416  }
 0xfec   : > { %v5322_v39 = vpop.permute.xlu0 %1791  ;;  %2327 = vrot.lane.b32.xlu1 %v2320_v4, %s5976_s22  ;;  %v2382_v21 = vmul.f32 %v2377_v11, %v3706_v13  ;;  %v1638_v52 = vsel %vm350_vm15, %v5172_v58, %v5164_v49  ;;  %v2383_v58 = vmul.f32 %v5109_v23, %v4508_v26  ;;  %vm5987_vm9 = vcmask 1014784  }
 0xfee   : > { %2296 = vrot.lane.b32.xlu0 %v2289_v8, %s5973_s7  ;;  %v5328_v60 = vpop.permute.xlu1 %1824  ;;  %v1449_v8 = vadd.f32 %v1445_v61, %v1417_v54  ;;  %v1376_v54 = vunpack.c.h.bf16 %v1374_v7 }
 0xff0   : > { %v5335_v34 = vpop.permute.xlu0 %1789  ;;  %2325 = vrot.lane.b32.xlu1 %v2319_v46, %s5976_s22  ;;  %v1481_v46 = vadd.f32 %v1477_v14, %v1449_v8  ;;  %v1575_v14 = vsel %vm1574_vm10, %v4718_v18, %v4726_v19  ;;  %v1607_v8 = vsel %vm5984_vm5, %v4885_v27, %v5139_v33  ;;  %v2414_v27 = vmul.f32 %v5122_v47, %v4508_v26 }
 0xff1   : > { %vm5988_vm5 = vcmask 891904  }
 0xff2   : > { %2294 = vrot.lane.b32.xlu0 %v2288_v15, %s5973_s7  ;;  %v5344_v4 = vpop.permute.xlu1 %1822  ;;  %v1509_v15 = vsel %vm5981_vm3, %v4581_v50, %v4585_v12  ;;  %v2351_v50 = vmul.f32 %v2346_v35, %v3706_v13  ;;  %v2350_v35 = vmul.f32 %v5034_v9, %v3615_v28  ;;  %vm5985_vm3 = vcmask 1039360   ;;  %s3239_s7 = sshll.u32 %s6043_s16, 4 }
 0xff3   : > { %v1414_v18 = vsel %vm5985_vm3, %v4529_v31, %v4531_v40  ;;  %v1669_v31 = vsel %vm385_vm14, %v5223_v57, %v5212_v48  ;;  %vm5994_vm3 = vcmask 662528  }
 0xff4   : > { %v5354_v41 = vpop.permute.xlu0 %2759  ;;  %2360 = vrot.lane.b32.xlu1 %v2352_v44, %s5980_s21  ;;  %v1513_v44 = vadd.f32 %v1509_v15, %v1481_v46 }
 0xff5   : > { %5979 = vst [vmem:[#allocation21_spill] sm:$0xff] %v5354_v41 }
 0xff6   : > { %2329 = vrot.lane.b32.xlu0 %v2321_v22, %s5976_s22  ;;  %v5365_v61 = vpop.permute.xlu1 %2792  ;;  %v1546_v11 = vadd.f32 %v1542_v5, %v1513_v44  ;;  %v1381_v22 = vmul.f32 %v3139_v20, %v1376_v54  ;;  %v1446_v5 = vsel %vm280_vm2, %v4549_v30, %v4547_v55  ;;  %v2441_v54 = vsel %vm2440_vm11, %v5078_v10, %v5130_v24  ;;  %s197_s22 = scalar_lea.vmem %s5692_s4, %s3239_s7 }
 0xff7   : > { %v1478_v55 = vsel %vm630_vm6, %v4565_v0, %v4567_v6  ;;  %vm5986_vm2 = vcmask 564224   ;;  %v2446_v57 = vmul.f32 %v2441_v54, %v3706_v13  ;;  %v1700_v0 = vsel %vm5988_vm5, %v5229_v16, %v5220_v59  ;;  %v5993_v54 = vld [vmem:[#allocation7_spill] sm:$0xff] }
 0xff8   : > { %v5371_v41 = vpop.permute.xlu0 %1826  ;;  %2389 = vrot.lane.b32.xlu1 %v2382_v21, %s5983_s0  ;;  %v1579_v15 = vadd.f32 %v1575_v14, %v1546_v11  ;;  %v1418_v40 = vadd.f32 %v1414_v18, %v1381_v22  ;;  %v2408_v30 = vsel %vm5986_vm2, %v5066_v17, %v5122_v47  ;;  %v1510_v11 = vsel %vm5987_vm9, %v4585_v12, %v4583_v56 }
 0xff9   : > { %vm5989_vm6 = vcmask 883712   ;;  %v2445_v12 = vmul.f32 %v5078_v10, %v3615_v28  ;;  %vm1762_vm11 = vcmask 875520   ;;  %vm5996_vm2 = vcmask 654336  }
 0xffa   : > { %2358 = vrot.lane.b32.xlu0 %v2351_v50, %s5980_s21  ;;  %v5383_v7 = vpop.permute.xlu1 %1857  ;;  %v1611_v21 = vadd.f32 %v1607_v8, %v1579_v15  ;;  %v1450_v20 = vadd.f32 %v1446_v5, %v1418_v40  ;;  %v1543_v8 = vsel %vm1541_vm12, %v4598_v62, %v4600_v29  ;;  %v1731_v22 = vsel %vm5989_vm6, %v5278_v32, %v5266_v3 }
 0xffb   : > { %v2412_v62 = vmul.f32 %v5066_v17, %v3615_v28  ;;  %vm5991_vm12 = vcmask 916480   ;;  %v1763_v32 = vsel %vm1762_vm11, %v5283_v37, %v5271_v53  ;;  %v2447_v37 = vmul.f32 %v5130_v24, %v4508_v26 }
 0xffc   : > { %v5390_v46 = vpop.permute.xlu0 %2790  ;;  %2387 = vrot.lane.b32.xlu1 %v2381_v25, %s5983_s0  ;;  %v1642_v44 = vadd.f32 %v1638_v52, %v1611_v21  ;;  %v1482_v6 = vadd.f32 %v1478_v55, %v1450_v20  ;;  %v2413_v25 = vmul.f32 %v2408_v30, %v3706_v13  ;;  %v1608_v10 = vsel %vm5991_vm12, %v5139_v33, %v5168_v38  ;;  %v5995_v55 = vld [vmem:[#allocation5_spill] sm:$0xff] }
 0xffd   : > { %v1639_v33 = vsel %vm350_vm15, %v5164_v49, %v5189_v63  ;;  %v1670_v63 = vsel %vm385_vm14, %v5212_v48, %v5195_v45  ;;  %vm5997_vm15 = vmmov %vm5988_vm5  ;;  %vm5998_vm9 = vcmask 785408   ;;  %vm6000_vm5 = vcmask 777216  }
 0xffe   : > { %2356 = vrot.lane.b32.xlu0 %v2350_v35, %s5980_s21  ;;  %v5402_v9 = vpop.permute.xlu1 %2823  ;;  %v1673_v14 = vadd.f32 %v1669_v31, %v1642_v44  ;;  %v1514_v56 = vadd.f32 %v1510_v11, %v1482_v6  ;;  %v5990_v35 = vld [vmem:[#allocation4_spill] sm:$0xff]  ;;  %v2504_v31 = vsel %vm5994_vm3, %v5993_v54, %v5150_v1  ;;  %vm5999_vm14 = vmmov %vm5989_vm6  ;;  %vm6003_vm6 = vcmask 678912  }
 0xfff   : > { %v1576_v18 = vsel %vm1574_vm10, %v4726_v19, %v5990_v35  ;;  %v5992_v19 = vld [vmem:[#allocation8_spill] sm:$0xff]  ;;  %vm1795_vm10 = vcmask 867328   ;;  %v2509_v49 = vmul.f32 %v2504_v31, %v3706_v13  ;;  %v1732_v45 = vsel %vm5999_vm14, %v5266_v3, %v5254_v43 }
0x1000   : > { %v5414_v50 = vpop.permute.xlu0 %1855  ;;  %2422 = vrot.lane.b32.xlu1 %v2414_v27, %s3442_s10  ;;  %v1704_v16 = vadd.f32 %v1700_v0, %v1673_v14  ;;  %v1547_v52 = vadd.f32 %v1543_v8, %v1514_v56  ;;  %v2479_v5 = vmul.f32 %v5992_v19, %v4508_v26  ;;  %v1796_v38 = vsel %vm1795_vm10, %v5335_v34, %v5322_v39 }
0x1001   : > { %v2473_v30 = vsel %vm5996_vm2, %v5995_v55, %v5992_v19  ;;  %v1828_v14 = vsel %vm5998_vm9, %v5344_v4, %v5328_v60  ;;  %v1764_v8 = vsel %vm1762_vm11, %v5271_v53, %v5295_v42  ;;  %v6002_v53 = vld [vmem:[#allocation11_spill] sm:$0xff]  ;;  %vm6004_vm11 = vmmov %vm5998_vm9  ;;  %vm6006_vm12 = vcmask 670720  }
0x1002   : > { %2391 = vrot.lane.b32.xlu0 %v2383_v58, %s5983_s0  ;;  %v5425_v23 = vpop.permute.xlu1 %1886  ;;  %v1735_v29 = vadd.f32 %v1731_v22, %v1704_v16  ;;  %v1580_v27 = vadd.f32 %v1576_v18, %v1547_v52  ;;  %v2478_v11 = vmul.f32 %v2473_v30, %v3706_v13  ;;  %v2477_v22 = vmul.f32 %v5995_v55, %v3615_v28  ;;  %v6001_v16 = vld [vmem:[#allocation9_spill] sm:$0xff] }
0x1003   : > { %v2542_v35 = vmul.f32 %v6001_v16, %v4508_v26  ;;  %v2568_v52 = vsel %vm6003_vm6, %v6002_v53, %v5179_v51  ;;  %vm6008_vm3 = vcmask 760832   ;;  %vm6009_vm2 = vcmask 752640  }
0x1004   : > { %v1854_v47 = vpop.permute.xlu0 %1853  ;;  %2453 = vrot.lane.b32.xlu1 %v2446_v57, %s3443_s30  ;;  %v1612_v40 = vadd.f32 %v1608_v10, %v1580_v27  ;;  %v1767_v58 = vadd.f32 %v1763_v32, %v1735_v29  ;;  %v1701_v57 = vsel %vm5997_vm15, %v5220_v59, %v5246_v2  ;;  %v2508_v59 = vmul.f32 %v5993_v54, %v3615_v28  ;;  %v6005_v10 = vld [vmem:[#allocation6_spill] sm:$0xff]  ;;  %vm6010_vm15 = vmmov %vm6008_vm3 }
0x1005   : > { %v1859_v48 = vsel %vm6000_vm5, %v1854_v47, %v5414_v50  ;;  %v1797_v47 = vsel %vm1795_vm10, %v5322_v39, %v5300_v36  ;;  %v2510_v36 = vmul.f32 %v5150_v1, %v4508_v26  ;;  %v2536_v32 = vsel %vm6006_vm12, %v6005_v10, %v6001_v16  ;;  %vm6007_vm10 = vmmov %vm6000_vm5 }
0x1006   : > { %2420 = vrot.lane.b32.xlu0 %v2413_v25, %s3442_s10  ;;  %v1885_v15 = vpop.permute.xlu1 %1884  ;;  %v1643_v20 = vadd.f32 %v1639_v33, %v1612_v40  ;;  %v1800_v34 = vadd.f32 %v1796_v38, %v1767_v58  ;;  %v1860_v27 = vsel %vm6007_vm10, %v5414_v50, %v5383_v7  ;;  %v2541_v33 = vmul.f32 %v2536_v32, %v3706_v13 }
0x1007   : > { %v2572_v50 = vmul.f32 %v6002_v53, %v3615_v28  ;;  %vm1983_vm9 = vcmask 744448   ;;  %vm6015_vm14 = vcmask 695296   ;;  %vm2016_vm5 = vcmask 736256  }
0x1008   : > { %v5449_v21 = vpop.permute.xlu0 %2825  ;;  %2451 = vrot.lane.b32.xlu1 %v2445_v12, %s3443_s30  ;;  %v1674_v0 = vadd.f32 %v1670_v63, %v1643_v20  ;;  %v1832_v4 = vadd.f32 %v1828_v14, %v1800_v34  ;;  %v1890_v12 = vsel %vm490_vm13, %v1885_v15, %v5425_v23  ;;  %v6014_v14 = vld [vmem:[#allocation12_spill] sm:$0xff]  ;;  %vm6017_vm6 = vcmask 687104  }
0x1009   : > { %vm6021_vm12 = vcmask 785408   ;;  %vm6023_vm10 = vcmask 654336  }
0x100a   : > { %2418 = vrot.lane.b32.xlu0 %v2412_v62, %s3442_s10  ;;  %v5461_v17 = vpop.permute.xlu1 %2858  ;;  %v1705_v2 = vadd.f32 %v1701_v57, %v1674_v0  ;;  %v1863_v3 = vadd.f32 %v1859_v48, %v1832_v4  ;;  %v1829_v62 = vsel %vm6004_vm11, %v5328_v60, %v5371_v41  ;;  %v2573_v60 = vmul.f32 %v2568_v52, %v3706_v13  ;;  %v6013_v57 = vld [vmem:[#allocation14_spill] sm:$0xff]  ;;  %v6016_v48 = vld [vmem:[#allocation13_spill] sm:$0xff] }
0x100b   : > { %v2574_v0 = vmul.f32 %v5179_v51, %v4508_v26  ;;  %v6018_v52 = vld [vmem:[#allocation17_spill] sm:$0xff]  ;;  %vm2664_vm11 = vcmask 703488   ;;  %v2638_v32 = vmul.f32 %v6013_v57, %v4508_v26 }
0x100c   : > { %v1889_v44 = vpop.permute.xlu0 %1888  ;;  %2487 = vrot.lane.b32.xlu1 %v2479_v5, %s5926_s26  ;;  %v1736_v43 = vadd.f32 %v1732_v45, %v1705_v2  ;;  %v1894_v15 = vadd.f32 %v1890_v12, %v1863_v3 }
0x100d   : > { %v1891_v54 = vsel %vm490_vm13, %v5425_v23, %v1889_v44  ;;  %v2540_v23 = vmul.f32 %v6005_v10, %v3615_v28  ;;  %vm6011_vm13 = vmmov %vm6009_vm2 }
0x100e   : > { %2455 = vrot.lane.b32.xlu0 %v2447_v37, %s3443_s30  ;;  %v1920_v24 = vpop.permute.xlu1 %1919  ;;  %v1768_v18 = vadd.f32 %v1764_v8, %v1736_v43 }
0x1010   : > { %v5490_v6 = vpop.permute.xlu0 %2856  ;;  %2516 = vrot.lane.b32.xlu1 %v2509_v49, %s3444_s17  ;;  %v1801_v39 = vadd.f32 %v1797_v47, %v1768_v18  ;;  %v6012_v49 = vld [vmem:[#allocation10_spill] sm:$0xff]  ;;  %v2636_v47 = vmul.f32 %v6014_v14, %v3615_v28 }
0x1011   : > { %v2606_v20 = vmul.f32 %v6012_v49, %v4508_v26 }
0x1012   : > { %2485 = vrot.lane.b32.xlu0 %v2478_v11, %s5926_s26  ;;  %v5501_v25 = vpop.permute.xlu1 %2889  ;;  %v1833_v41 = vadd.f32 %v1829_v62, %v1801_v39  ;;  %v2632_v11 = vsel %vm6015_vm14, %v6014_v14, %v6013_v57  ;;  %v2671_v62 = vmul.f32 %v6018_v52, %v4508_v26  ;;  %v6029_v57 = vld [vmem:[#allocation23_spill] sm:$0xff]  ;;  %vm6031_vm14 = vcmask 637952  }
0x1013   : > { %v2637_v4 = vmul.f32 %v2632_v11, %v3706_v13 }
0x1014   : > { %v1918_v56 = vpop.permute.xlu0 %1917  ;;  %2514 = vrot.lane.b32.xlu1 %v2508_v59, %s3444_s17  ;;  %v1864_v38 = vadd.f32 %v1860_v27, %v1833_v41  ;;  %v2600_v59 = vsel %vm6017_vm6, %v6016_v48, %v6012_v49  ;;  %vm6033_vm6 = vmmov %vm6031_vm14 }
0x1015   : > { %v1922_v7 = vsel %vm6010_vm15, %v1918_v56, %v1920_v24  ;;  %v2605_v3 = vmul.f32 %v2600_v59, %v3706_v13  ;;  %vm2761_vm15 = vcmask 801792  }
0x1016   : > { %2483 = vrot.lane.b32.xlu0 %v2477_v22, %s5926_s26  ;;  %v1949_v42 = vpop.permute.xlu1 %1948  ;;  %s3446_s26 = smov 45   ;;  %v1895_v58 = vadd.f32 %v1891_v54, %v1864_v38 }
0x1018   : > { %v1916_v29 = vpop.permute.xlu0 %1915  ;;  %2550 = vrot.lane.b32.xlu1 %v2542_v35, %s3445_s23  ;;  %v1926_v44 = vadd.f32 %v1922_v7, %v1895_v58  ;;  %v2604_v35 = vmul.f32 %v6016_v48, %v3615_v28 }
0x1019   : > { %v1921_v19 = vsel %vm6008_vm3, %v1916_v29, %v1918_v56  ;;  %v6020_v29 = vld [vmem:[#allocation16_spill] sm:$0xff]  ;;  %vm6024_vm3 = vcmask 646144  }
0x101a   : > { %v1925_v5 = vadd.f32 %v1921_v19, %v1894_v15  ;;  %2518 = vrot.lane.b32.xlu0 %v2510_v36, %s3444_s17  ;;  %v1947_v1 = vpop.permute.xlu1 %1946  ;;  %v6019_v15 = vld [vmem:[#allocation19_spill] sm:$0xff]  ;;  %v2701_v7 = vmul.f32 %v6020_v29, %v3615_v28 }
0x101b   : > { %v1952_v31 = vsel %vm6009_vm2, %v1947_v1, %v1949_v42  ;;  %v2697_v10 = vsel %vm6021_vm12, %v6020_v29, %v6019_v15  ;;  %v6022_v19 = vld [vmem:[#allocation15_spill] sm:$0xff]  ;;  %vm6025_vm2 = vmmov %vm6023_vm10  ;;  %v2703_v11 = vmul.f32 %v6019_v15, %v4508_v26 }
0x101c   : > { %v1956_v37 = vadd.f32 %v1952_v31, %v1925_v5  ;;  %v5538_v40 = vpop.permute.xlu0 %2891  ;;  %2580 = vrot.lane.b32.xlu1 %v2573_v60, %s3446_s26  ;;  %v2665_v60 = vsel %vm2664_vm11, %v6022_v19, %v6018_v52  ;;  %v2702_v5 = vmul.f32 %v2697_v10, %v3706_v13  ;;  %vm2827_vm11 = vcmask 818176  }
0x101e   : > { %2548 = vrot.lane.b32.xlu0 %v2541_v33, %s3445_s23  ;;  %v1982_v55 = vpop.permute.xlu1 %1981  ;;  %v2670_v33 = vmul.f32 %v2665_v60, %v3706_v13 }
0x1020   : > { %v1951_v30 = vpop.permute.xlu0 %1950  ;;  %2578 = vrot.lane.b32.xlu1 %v2572_v50, %s3446_s26 }
0x1021   : > { %v1953_v63 = vsel %vm6011_vm13, %v1949_v42, %v1951_v30  ;;  %vm6026_vm13 = vmmov %vm6024_vm3 }
0x1022   : > { %v1957_v34 = vadd.f32 %v1953_v63, %v1926_v44  ;;  %2546 = vrot.lane.b32.xlu0 %v2540_v23, %s3445_s23  ;;  %v2013_v24 = vpop.permute.xlu1 %2012  ;;  %v6027_v63 = vld [vmem:[#allocation18_spill] sm:$0xff] }
0x1023   : > { %v2735_v49 = vmul.f32 %v6027_v63, %v4508_v26 }
0x1024   : > { %v1980_v45 = vpop.permute.xlu0 %1979  ;;  %2614 = vrot.lane.b32.xlu1 %v2606_v20, %s3447_s9 }
0x1025   : > { %v1985_v2 = vsel %vm1983_vm9, %v1980_v45, %v1982_v55  ;;  %v2669_v55 = vmul.f32 %v6022_v19, %v3615_v28 }
0x1026   : > { %v1989_v8 = vadd.f32 %v1985_v2, %v1957_v34  ;;  %2582 = vrot.lane.b32.xlu0 %v2574_v0, %s3446_s26  ;;  %v2011_v22 = vpop.permute.xlu1 %2010 }
0x1027   : > { %v2017_v43 = vsel %vm2016_vm5, %v2011_v22, %v2013_v24 }
0x1028   : > { %v1978_v51 = vpop.permute.xlu0 %1977  ;;  %2644 = vrot.lane.b32.xlu1 %v2637_v4, %s3448_s24 }
0x1029   : > { %v1984_v56 = vsel %vm1983_vm9, %v1978_v51, %v1980_v45  ;;  %vm2728_vm9 = vcmask 793600   ;;  %v6030_v45 = vld [vmem:[#allocation20_spill] sm:$0xff] }
0x102a   : > { %v1988_v12 = vadd.f32 %v1984_v56, %v1956_v37  ;;  %2612 = vrot.lane.b32.xlu0 %v2605_v3, %s3447_s9  ;;  %v2048_v16 = vpop.permute.xlu1 %2047  ;;  %v2729_v48 = vsel %vm2728_vm9, %v6030_v45, %v6027_v63  ;;  %v2766_v56 = vmul.f32 %v6029_v57, %v3615_v28  ;;  %vm2860_vm9 = vcmask 826368  }
0x102c   : > { %v2015_v18 = vpop.permute.xlu0 %2014  ;;  %2642 = vrot.lane.b32.xlu1 %v2636_v47, %s3448_s24  ;;  %v2021_v42 = vadd.f32 %v2017_v43, %v1988_v12  ;;  %v2734_v43 = vmul.f32 %v2729_v48, %v3706_v13  ;;  %v2865_v48 = vmul.f32 %v5490_v6, %v3615_v28 }
0x102d   : > { %v2018_v53 = vsel %vm2016_vm5, %v2013_v24, %v2015_v18  ;;  %v6028_v24 = vld [vmem:[#allocation21_spill] sm:$0xff]  ;;  %vm6032_vm5 = vcmask 629760  }
0x102e   : > { %v2022_v36 = vadd.f32 %v2018_v53, %v1989_v8  ;;  %2610 = vrot.lane.b32.xlu0 %v2604_v35, %s3447_s9  ;;  %v2077_v39 = vpop.permute.xlu1 %2076  ;;  %v2762_v14 = vsel %vm2761_vm15, %v6029_v57, %v6028_v24  ;;  %vm6034_vm12 = vmmov %vm6032_vm5  ;;  %v2801_v53 = vmul.f32 %v5365_v61, %v4508_v26 }
0x102f   : > { %v2767_v2 = vmul.f32 %v2762_v14, %v3706_v13  ;;  %v3456_v14 = vmov 0.0  }
0x1030   : > { %v2046_v27 = vpop.permute.xlu0 %2045  ;;  %2679 = vrot.lane.b32.xlu1 %v2671_v62, %s3449_s19  ;;  %3000 = vmatprep.mubr.f32.mxu0 %v3456_v14 }
0x1031   : > { %v2050_v41 = vsel %vm6023_vm10, %v2046_v27, %v2048_v16  ;;  %v2733_v16 = vmul.f32 %v6030_v45, %v3615_v28  ;;  %vm2794_vm10 = vcmask 809984   ;;  %v3457_v45 = vmov 0  }
0x1032   : > { %v2054_v1 = vadd.f32 %v2050_v41, %v2022_v36  ;;  %2646 = vrot.lane.b32.xlu0 %v2638_v32, %s3448_s24  ;;  %v2075_v54 = vpop.permute.xlu1 %2074  ;;  %v2828_v36 = vsel %vm2827_vm11, %v5402_v9, %v5449_v21  ;;  %v2795_v29 = vsel %vm2794_vm10, %v5390_v46, %v5365_v61  ;;  %vm2552_vm10 = vcmask 375808  }
0x1033   : > { %v2080_v31 = vsel %vm6024_vm3, %v2075_v54, %v2077_v39  ;;  %vm2204_vm3 = vcmask 613376   ;;  %v2833_v32 = vmul.f32 %v2828_v36, %v3706_v13  ;;  %v2800_v41 = vmul.f32 %v2795_v29, %v3706_v13  ;;  %3356 = vset.pattern.permute.xlu0 %v3457_v45 }
0x1034   : > { %v2044_v38 = vpop.permute.xlu0 %2043  ;;  %2709 = vrot.lane.b32.xlu1 %v2702_v5, %s5920_s15  ;;  %v2832_v54 = vmul.f32 %v5402_v9, %v3615_v28 }
0x1035   : > { %v2049_v37 = vsel %vm6025_vm2, %v2044_v38, %v2046_v27  ;;  %vm6035_vm2 = vcmask 621568  }
0x1036   : > { %v2053_v50 = vadd.f32 %v2049_v37, %v2021_v42  ;;  %2677 = vrot.lane.b32.xlu0 %v2670_v33, %s3449_s19  ;;  %v2110_v58 = vpop.permute.xlu1 %2109  ;;  %vm6036_vm15 = vmmov %vm6035_vm2  ;;  %v2799_v33 = vmul.f32 %v5390_v46, %v3615_v28  ;;  %v2834_v46 = vmul.f32 %v5449_v21, %v4508_v26 }
0x1038   : > { %v2079_v23 = vpop.permute.xlu0 %2078  ;;  %2707 = vrot.lane.b32.xlu1 %v2701_v7, %s5920_s15  ;;  %v2084_v44 = vadd.f32 %v2080_v31, %v2053_v50  ;;  %v2867_v50 = vmul.f32 %v5461_v17, %v4508_v26 }
0x1039   : > { %v2081_v30 = vsel %vm6026_vm13, %v2077_v39, %v2079_v23  ;;  %v2768_v39 = vmul.f32 %v6028_v24, %v4508_v26  ;;  %vm2893_vm13 = vcmask 834560  }
0x103a   : > { %v2085_v20 = vadd.f32 %v2081_v30, %v2054_v1  ;;  %2675 = vrot.lane.b32.xlu0 %v2669_v55, %s3449_s19  ;;  %v2139_v34 = vpop.permute.xlu1 %2138  ;;  %v2894_v9 = vsel %vm2893_vm13, %v5501_v25, %v5538_v40  ;;  %vm2681_vm13 = vcmask 343040  }
0x103b   : > { %v2899_v63 = vmul.f32 %v2894_v9, %v3706_v13 }
0x103c   : > { %v2108_v0 = vpop.permute.xlu0 %2107  ;;  %2743 = vrot.lane.b32.xlu1 %v2735_v49, %s3450_s27 }
0x103d   : > { %v2112_v59 = vsel %vm6031_vm14, %v2108_v0, %v2110_v58  ;;  %vm2237_vm14 = vcmask 605184  }
0x103e   : > { %v2116_v4 = vadd.f32 %v2112_v59, %v2085_v20  ;;  %2711 = vrot.lane.b32.xlu0 %v2703_v11, %s5920_s15  ;;  %v2137_v8 = vpop.permute.xlu1 %2136  ;;  %s3452_s15 = smov 29  }
0x103f   : > { %v2142_v22 = vsel %vm6032_vm5, %v2137_v8, %v2139_v34  ;;  %vm6037_vm5 = vcmask 515072  }
0x1040   : > { %v2106_v3 = vpop.permute.xlu0 %2105  ;;  %2774 = vrot.lane.b32.xlu1 %v2767_v2, %s3451_s25 }
0x1041   : > { %v2111_v51 = vsel %vm6033_vm6, %v2106_v3, %v2108_v0  ;;  %vm6039_vm6 = vcmask 490496  }
0x1042   : > { %v2115_v47 = vadd.f32 %v2111_v51, %v2084_v44  ;;  %2741 = vrot.lane.b32.xlu0 %v2734_v43, %s3450_s27  ;;  %v2172_v12 = vpop.permute.xlu1 %2171  ;;  %v2861_v44 = vsel %vm2860_vm9, %v5490_v6, %v5461_v17  ;;  %v2898_v17 = vmul.f32 %v5501_v25, %v3615_v28  ;;  %v2926_v28 = vld [vmem:[%s5691_s3] sm:$0xff]  ;;  %vm6040_vm11 = vmmov %vm6039_vm6  ;;  %vm2778_vm9 = vcmask 244736  }
0x1043   : > { %v2866_v24 = vmul.f32 %v2861_v44, %v3706_v13 }
0x1044   : > { %v2141_v35 = vpop.permute.xlu0 %2140  ;;  %2772 = vrot.lane.b32.xlu1 %v2766_v56, %s3451_s25  ;;  %v2146_v18 = vadd.f32 %v2142_v22, %v2115_v47  ;;  %v2900_v22 = vmul.f32 %v5538_v40, %v4508_v26 }
0x1045   : > { %v2143_v42 = vsel %vm6034_vm12, %v2139_v34, %v2141_v35  ;;  %vm2520_vm12 = vcmask 384000  }
0x1046   : > { %v2147_v52 = vadd.f32 %v2143_v42, %v2116_v4  ;;  %2739 = vrot.lane.b32.xlu0 %v2733_v16, %s3450_s27  ;;  %v2201_v62 = vpop.permute.xlu1 %2200 }
0x1048   : > { %v2170_v15 = vpop.permute.xlu0 %2169  ;;  %2809 = vrot.lane.b32.xlu1 %v2801_v53, %s3452_s15 }
0x1049   : > { %v2174_v10 = vsel %vm6035_vm2, %v2170_v15, %v2172_v12  ;;  %vm2616_vm2 = vcmask 359424  }
0x104a   : > { %v2178_v27 = vadd.f32 %v2174_v10, %v2147_v52  ;;  %2776 = vrot.lane.b32.xlu0 %v2768_v39, %s3451_s25  ;;  %v2199_v19 = vpop.permute.xlu1 %2198 }
0x104b   : > { %v2205_v60 = vsel %vm2204_vm3, %v2199_v19, %v2201_v62 }
0x104c   : > { %v2168_v5 = vpop.permute.xlu0 %2167  ;;  %2840 = vrot.lane.b32.xlu1 %v2833_v32, %s3453_s14 }
0x104d   : > { %v2173_v1 = vsel %vm6036_vm15, %v2168_v5, %v2170_v15  ;;  %vm2648_vm15 = vcmask 351232  }
0x104e   : > { %v2177_v61 = vadd.f32 %v2173_v1, %v2146_v18  ;;  %2807 = vrot.lane.b32.xlu0 %v2800_v41, %s3452_s15  ;;  %v2236_v31 = vpop.permute.xlu1 %2235 }
0x1050   : > { %v2203_v38 = vpop.permute.xlu0 %2202  ;;  %2838 = vrot.lane.b32.xlu1 %v2832_v54, %s3453_s14  ;;  %v2209_v37 = vadd.f32 %v2205_v60, %v2177_v61 }
0x1051   : > { %v2206_v7 = vsel %vm2204_vm3, %v2201_v62, %v2203_v38  ;;  %vm2584_vm3 = vcmask 367616  }
0x1052   : > { %v2210_v58 = vadd.f32 %v2206_v7, %v2178_v27  ;;  %2805 = vrot.lane.b32.xlu0 %v2799_v33, %s3452_s15  ;;  %v2266_v55 = vpop.permute.xlu1 %2265 }
0x1054   : > { %v2234_v23 = vpop.permute.xlu0 %2233  ;;  %2875 = vrot.lane.b32.xlu1 %v2867_v50, %s3454_s12 }
0x1055   : > { %v2239_v30 = vsel %vm2237_vm14, %v2234_v23, %v2236_v31 }
0x1056   : > { %v2243_v49 = vadd.f32 %v2239_v30, %v2210_v58  ;;  %2842 = vrot.lane.b32.xlu0 %v2834_v46, %s3453_s14  ;;  %v2264_v20 = vpop.permute.xlu1 %2263 }
0x1057   : > { %v2269_v34 = vsel %vm1210_vm4, %v2264_v20, %v2266_v55 }
0x1058   : > { %v2232_v57 = vpop.permute.xlu0 %2231  ;;  %2906 = vrot.lane.b32.xlu1 %v2899_v63, %s3455_s6 }
0x1059   : > { %v2238_v21 = vsel %vm2237_vm14, %v2232_v57, %v2234_v23  ;;  %vm2811_vm14 = vcmask 236544  }
0x105a   : > { %v2242_v11 = vadd.f32 %v2238_v21, %v2209_v37  ;;  %2873 = vrot.lane.b32.xlu0 %v2866_v24, %s3454_s12  ;;  %v2299_v0 = vpop.permute.xlu1 %2298 }
0x105c   : > { %v2268_v59 = vpop.permute.xlu0 %2267  ;;  %2904 = vrot.lane.b32.xlu1 %v2898_v17, %s3455_s6  ;;  %v2273_v13 = vadd.f32 %v2269_v34, %v2242_v11 }
0x105d   : > { %v2270_v2 = vsel %vm1210_vm4, %v2266_v55, %v2268_v59  ;;  %vm6038_vm4 = vmmov %vm6037_vm5 }
0x105e   : > { %v2274_v4 = vadd.f32 %v2270_v2, %v2243_v49  ;;  %2871 = vrot.lane.b32.xlu0 %v2865_v48, %s3454_s12  ;;  %v2328_v8 = vpop.permute.xlu1 %2327 }
0x1060   : > { %v2297_v25 = vpop.permute.xlu0 %2296 }
0x1061   : > { %v2301_v43 = vsel %vm6037_vm5, %v2297_v25, %v2299_v0  ;;  %vm2844_vm5 = vcmask 228352  }
0x1062   : > { %v2305_v3 = vadd.f32 %v2301_v43, %v2274_v4  ;;  %2908 = vrot.lane.b32.xlu0 %v2900_v22, %s3455_s6  ;;  %v2326_v51 = vpop.permute.xlu1 %2325 }
0x1063   : > { %v2331_v56 = vsel %vm1280_vm1, %v2326_v51, %v2328_v8 }
0x1064   : > { %v2295_v6 = vpop.permute.xlu0 %2294 }
0x1065   : > { %v2300_v47 = vsel %vm6038_vm4, %v2295_v6, %v2297_v25  ;;  %vm2910_vm4 = vcmask 211968  }
0x1066   : > { %v2304_v12 = vadd.f32 %v2300_v47, %v2273_v13  ;;  %v2361_v16 = vpop.permute.xlu1 %2360  ;;  %2929 = vperm.xlu0 %3356, %v2926_v28  }
0x1068   : > { %v2330_v35 = vpop.permute.xlu0 %2329  ;;  %v2335_v26 = vadd.f32 %v2331_v56, %v2304_v12 }
0x1069   : > { %v2332_v40 = vsel %vm1280_vm1, %v2328_v8, %v2330_v35  ;;  %vm2457_vm1 = vcmask 474112  }
0x106a   : > { %v2336_v18 = vadd.f32 %v2332_v40, %v2305_v3  ;;  %v2390_v42 = vpop.permute.xlu1 %2389 }
0x106c   : > { %v2359_v53 = vpop.permute.xlu0 %2358 }
0x106d   : > { %v2363_v52 = vsel %vm1315_vm0, %v2359_v53, %v2361_v16 }
0x106e   : > { %v2367_v62 = vadd.f32 %v2363_v52, %v2336_v18  ;;  %v2388_v36 = vpop.permute.xlu1 %2387 }
0x106f   : > { %v2393_v39 = vsel %vm6039_vm6, %v2388_v36, %v2390_v42  ;;  %vm2932_vm6 = vcmask 195584  }
0x1070   : > { %v2357_v15 = vpop.permute.xlu0 %2356 }
0x1071   : > { %v2362_v29 = vsel %vm1315_vm0, %v2357_v15, %v2359_v53  ;;  %vm2424_vm0 = vcmask 482304  }
0x1072   : > { %v2366_v10 = vadd.f32 %v2362_v29, %v2335_v26  ;;  %v2423_v32 = vpop.permute.xlu1 %2422 }
0x1074   : > { %v2392_v27 = vpop.permute.xlu0 %2391  ;;  %v2397_v19 = vadd.f32 %v2393_v39, %v2366_v10 }
0x1075   : > { %v2394_v60 = vsel %vm6040_vm11, %v2390_v42, %v2392_v27 }
0x1076   : > { %v2398_v41 = vadd.f32 %v2394_v60, %v2367_v62  ;;  %v2454_v5 = vpop.permute.xlu1 %2453 }
0x1078   : > { %v2421_v1 = vpop.permute.xlu0 %2420 }
0x1079   : > { %v2426_v28 = vsel %vm2424_vm0, %v2421_v1, %v2423_v32 }
0x107a   : > { %v2452_v54 = vpop.permute.xlu1 %2451  ;;  %v2430_v16 = vadd.f32 %v2426_v28, %v2398_v41 }
0x107b   : > { %v2458_v48 = vsel %vm2457_vm1, %v2452_v54, %v2454_v5 }
0x107c   : > { %v2419_v61 = vpop.permute.xlu0 %2418 }
0x107d   : > { %v2425_v14 = vsel %vm2424_vm0, %v2419_v61, %v2421_v1 }
0x107e   : > { %v2488_v31 = vpop.permute.xlu1 %2487  ;;  %v2429_v0 = vadd.f32 %v2425_v14, %v2397_v19 }
0x1080   : > { %v2456_v33 = vpop.permute.xlu0 %2455  ;;  %v2462_v2 = vadd.f32 %v2458_v48, %v2429_v0 }
0x1081   : > { %v2459_v12 = vsel %vm2457_vm1, %v2454_v5, %v2456_v33 }
0x1082   : > { %v2517_v38 = vpop.permute.xlu1 %2516  ;;  %v2463_v53 = vadd.f32 %v2459_v12, %v2430_v16 }
0x1084   : > { %v2486_v37 = vpop.permute.xlu0 %2485 }
0x1085   : > { %v2490_v18 = vsel %vm2032_vm7, %v2486_v37, %v2488_v31 }
0x1086   : > { %v2515_v7 = vpop.permute.xlu1 %2514  ;;  %v2494_v39 = vadd.f32 %v2490_v18, %v2463_v53 }
0x1087   : > { %v2521_v25 = vsel %vm2520_vm12, %v2515_v7, %v2517_v38 }
0x1088   : > { %v2484_v50 = vpop.permute.xlu0 %2483 }
0x1089   : > { %v2489_v59 = vsel %vm2032_vm7, %v2484_v50, %v2486_v37  ;;  %vm2745_vm7 = vcmask 252928  }
0x108a   : > { %v2551_v58 = vpop.permute.xlu1 %2550  ;;  %v2493_v8 = vadd.f32 %v2489_v59, %v2462_v2 }
0x108c   : > { %v2519_v55 = vpop.permute.xlu0 %2518  ;;  %v2525_v51 = vadd.f32 %v2521_v25, %v2493_v8 }
0x108d   : > { %v2522_v62 = vsel %vm2520_vm12, %v2517_v38, %v2519_v55 }
0x108e   : > { %v2581_v9 = vpop.permute.xlu1 %2580  ;;  %v2526_v10 = vadd.f32 %v2522_v62, %v2494_v39 }
0x1090   : > { %v2549_v46 = vpop.permute.xlu0 %2548 }
0x1091   : > { %v2554_v29 = vsel %vm2552_vm10, %v2549_v46, %v2551_v58 }
0x1092   : > { %v2579_v23 = vpop.permute.xlu1 %2578  ;;  %v2558_v5 = vadd.f32 %v2554_v29, %v2526_v10 }
0x1093   : > { %v2585_v35 = vsel %vm2584_vm3, %v2579_v23, %v2581_v9 }
0x1094   : > { %v2547_v44 = vpop.permute.xlu0 %2546 }
0x1095   : > { %v2553_v43 = vsel %vm2552_vm10, %v2547_v44, %v2549_v46 }
0x1096   : > { %v2615_v30 = vpop.permute.xlu1 %2614  ;;  %v2557_v6 = vadd.f32 %v2553_v43, %v2525_v51 }
0x1098   : > { %v2583_v63 = vpop.permute.xlu0 %2582  ;;  %v2589_v42 = vadd.f32 %v2585_v35, %v2557_v6 }
0x1099   : > { %v2586_v60 = vsel %vm2584_vm3, %v2581_v9, %v2583_v63 }
0x109a   : > { %v2645_v49 = vpop.permute.xlu1 %2644  ;;  %v2590_v31 = vadd.f32 %v2586_v60, %v2558_v5 }
0x109c   : > { %v2613_v20 = vpop.permute.xlu0 %2612 }
0x109d   : > { %v2618_v54 = vsel %vm2616_vm2, %v2613_v20, %v2615_v30 }
0x109e   : > { %v2643_v34 = vpop.permute.xlu1 %2642  ;;  %v2622_v37 = vadd.f32 %v2618_v54, %v2590_v31 }
0x109f   : > { %v2649_v32 = vsel %vm2648_vm15, %v2643_v34, %v2645_v49 }
0x10a0   : > { %v2611_v24 = vpop.permute.xlu0 %2610 }
0x10a1   : > { %v2617_v26 = vsel %vm2616_vm2, %v2611_v24, %v2613_v20 }
0x10a2   : > { %v5655_v57 = vpop.permute.xlu1 %2679  ;;  %v2621_v36 = vadd.f32 %v2617_v26, %v2589_v42  ;;  %v2919_v26 = vld [vmem:[%s5690_s2] sm:$0xff] }
0x10a4   : > { %v2647_v21 = vpop.permute.xlu0 %2646  ;;  %v2653_v41 = vadd.f32 %v2649_v32, %v2621_v36 }
0x10a5   : > { %v2650_v38 = vsel %vm2648_vm15, %v2645_v49, %v2647_v21 }
0x10a6   : > { %v2710_v17 = vpop.permute.xlu1 %2709  ;;  %v2654_v46 = vadd.f32 %v2650_v38, %v2622_v37 }
0x10a8   : > { %v2678_v11 = vpop.permute.xlu0 %2677 }
0x10a9   : > { %v2683_v55 = vsel %vm2681_vm13, %v2678_v11, %v5655_v57 }
0x10aa   : > { %v2708_v45 = vpop.permute.xlu1 %2707  ;;  %v2687_v63 = vadd.f32 %v2683_v55, %v2654_v46 }
0x10ab   : > { %v2713_v7 = vsel %vm1811_vm8, %v2708_v45, %v2710_v17 }
0x10ac   : > { %v2676_v13 = vpop.permute.xlu0 %2675 }
0x10ad   : > { %v2682_v27 = vsel %vm2681_vm13, %v2676_v13, %v2678_v11 }
0x10ae   : > { %v2744_v4 = vpop.permute.xlu1 %2743  ;;  %v2686_v61 = vadd.f32 %v2682_v27, %v2653_v41 }
0x10b0   : > { %v2712_v22 = vpop.permute.xlu0 %2711  ;;  %v2717_v9 = vadd.f32 %v2713_v7, %v2686_v61 }
0x10b1   : > { %v2714_v23 = vsel %vm1811_vm8, %v2710_v17, %v2712_v22  ;;  %vm2877_vm8 = vcmask 220160  }
0x10b2   : > { %v2775_v3 = vpop.permute.xlu1 %2774  ;;  %v2718_v49 = vadd.f32 %v2714_v23, %v2687_v63 }
0x10b4   : > { %v2742_v56 = vpop.permute.xlu0 %2741 }
0x10b5   : > { %v2747_v34 = vsel %vm2745_vm7, %v2742_v56, %v2744_v4 }
0x10b6   : > { %v2773_v47 = vpop.permute.xlu1 %2772  ;;  %v2751_v45 = vadd.f32 %v2747_v34, %v2718_v49 }
0x10b7   : > { %v2779_v24 = vsel %vm2778_vm9, %v2773_v47, %v2775_v3 }
0x10b8   : > { %v2740_v40 = vpop.permute.xlu0 %2739 }
0x10b9   : > { %v2746_v50 = vsel %vm2745_vm7, %v2740_v40, %v2742_v56 }
0x10ba   : > { %v2810_v52 = vpop.permute.xlu1 %2809  ;;  %v2750_v44 = vadd.f32 %v2746_v50, %v2717_v9 }
0x10bc   : > { %v2777_v15 = vpop.permute.xlu0 %2776  ;;  %v2783_v0 = vadd.f32 %v2779_v24, %v2750_v44 }
0x10bd   : > { %v2780_v14 = vsel %vm2778_vm9, %v2775_v3, %v2777_v15 }
0x10be   : > { %v2841_v19 = vpop.permute.xlu1 %2840  ;;  %v2784_v13 = vadd.f32 %v2780_v14, %v2751_v45 }
0x10c0   : > { %v2808_v1 = vpop.permute.xlu0 %2807 }
0x10c1   : > { %v2813_v59 = vsel %vm2811_vm14, %v2808_v1, %v2810_v52 }
0x10c2   : > { %v2839_v33 = vpop.permute.xlu1 %2838  ;;  %v2817_v2 = vadd.f32 %v2813_v59, %v2784_v13 }
0x10c3   : > { %v2845_v8 = vsel %vm2844_vm5, %v2839_v33, %v2841_v19 }
0x10c4   : > { %v2806_v58 = vpop.permute.xlu0 %2805 }
0x10c5   : > { %v2812_v21 = vsel %vm2811_vm14, %v2806_v58, %v2808_v1 }
0x10c6   : > { %v2876_v30 = vpop.permute.xlu1 %2875  ;;  %v2816_v57 = vadd.f32 %v2812_v21, %v2783_v0 }
0x10c8   : > { %v2843_v20 = vpop.permute.xlu0 %2842  ;;  %v2849_v4 = vadd.f32 %v2845_v8, %v2816_v57 }
0x10c9   : > { %v2846_v17 = vsel %vm2844_vm5, %v2841_v19, %v2843_v20 }
0x10ca   : > { %v2907_v11 = vpop.permute.xlu1 %2906  ;;  %v2850_v51 = vadd.f32 %v2846_v17, %v2817_v2 }
0x10cc   : > { %v2874_v48 = vpop.permute.xlu0 %2873 }
0x10cd   : > { %v2879_v25 = vsel %vm2877_vm8, %v2874_v48, %v2876_v30 }
0x10ce   : > { %v2905_v3 = vpop.permute.xlu1 %2904  ;;  %v2883_v28 = vadd.f32 %v2879_v25, %v2850_v51 }
0x10cf   : > { %v2911_v12 = vsel %vm2910_vm4, %v2905_v3, %v2907_v11 }
0x10d0   : > { %v2872_v22 = vpop.permute.xlu0 %2871 }
0x10d1   : > { %v2878_v43 = vsel %vm2877_vm8, %v2872_v22, %v2874_v48 }
0x10d2   : > { %v2882_v56 = vadd.f32 %v2878_v43, %v2849_v4 }
0x10d4   : > { %v2909_v6 = vpop.permute.xlu0 %2908  ;;  %v2915_v35 = vadd.f32 %v2911_v12, %v2882_v56 }
0x10d5   : > { %v2912_v47 = vsel %vm2910_vm4, %v2907_v11, %v2909_v6 }
0x10d6   : > { %v2916_v16 = vadd.f32 %v2912_v47, %v2883_v28 }
0x10d8   : > { %2940 = vmatprep.subr.mxu0 %v2916_v16 }
0x10d9   : > { %2941 = vmatpush1.msra.mxu0 %v2915_v35 }
0x10da   : > { %3236 = vmatmul.mubr.msk.f32.vlgmr.msra.gmra.mrb[0].mxu0 %vm2932_vm6, %v2919_v26 }
0x10e5   : > { %v2930_v40 = vpop.permute.xlu0 %2929 }
0x11ad   : > { %v3002_v18 = vpop.f32.mrb[0].mxu0 }
0x11ae   : > { %v3003_v42 = vadd.f32 %v3002_v18, %v2930_v40  ;;  %v3004_v53 = vpop.f32.mrb[1].mxu0 }
0x11af   : > { %v3005_v52 = vadd.f32 %v3004_v53, %v2930_v40 }
0x11b0   : > { %3007 = vst [vmem:[%s197_s22] sm:$0xff] %v3003_v42 }
0x11b1   : > { %3008 = vst [vmem:[%s197_s22 + $0x8] sm:$0xff] %v3005_v52 }
0x11b2 PF: > { %s6041_s21 = sld [smem:[#allocation3_spill]] }
0x11b8   : > { %s14_s15 = sadd.s32 1, %s6041_s21  }
0x11b9   : > { %p11_p4 = scmp.ge.s32.totalorder %s14_s15, 4  }
0x11bb   :  { %13 = sbr.rel (!%p11_p4) target bundleno = 2 (0x2), region = 148 }

</bundles_post_ra>
